<compile_context>
chip_gen: v6e
topology: v6e:2x2x1
jax: 0.10.0
libtpu: 0.0.40
codegen_flags: <defaults>
</compile_context>

<pallas_src>
import math

import jax
import jax.numpy as jnp
from jax.experimental import pallas as pl
from jax.experimental.pallas import tpu as pltpu

LANE = 128  # TPU lane width; channels are padded to a multiple of this in-kernel.


def _round_up(x, m):
    return (x + m - 1) // m * m


def _pad_rows_to(x, mult):
    """Zero-pad axis 0 of a 2-D value up to a multiple of `mult` (for clean transposes)."""
    pad = (-x.shape[0]) % mult
    if pad:
        x = jnp.concatenate([x, jnp.zeros((pad, x.shape[1]), x.dtype)], axis=0)
    return x


# ---------------------------------------------------------------------------
# Fused kernel: conv3x3+ReLU -> conv3x3+ReLU -> 2x2/2 maxpool, one batch element
# ---------------------------------------------------------------------------
def down_conv_kernel(x_ref, w1_ref, b1_ref, w2_ref, b2_ref,
                     bp_ref, pool_ref,
                     xpad_ref, xrow_ref, acc_ref):
    """
    x_ref   : (1, H, W, Cin)      unpadded NHWC input tile
    w*_ref  : (3, 3*Cp, Cp)       weights with (dx, cin) folded into K, zero-padded
    b*_ref  : (1, Cp)             zero-padded bias
    bp_ref  : (1, Cout, H*W)      before_pool, channel-major (lane-dense store)
    pool_ref: (1, Cout, Hh*Wh)    pooled, channel-major
    xpad_ref: (H+2, W+2, Cp)      zero-haloed activation scratch (reused by both convs)
    xrow_ref: ((H+2)*W, 3*Cp)     dx-folded rows (im2col along dx)
    acc_ref : (H*W, Cp)           f32 accumulator / pooling stash
    """
    H, W, Cin = x_ref.shape[1], x_ref.shape[2], x_ref.shape[3]
    Cp = xpad_ref.shape[2]
    Cout = bp_ref.shape[1]
    Hh, Wh = H // 2, W // 2
    f32 = jnp.float32

    def conv3x3_relu(w_ref, b_ref):
        # Fold the 3 dx taps into K: one lane-aligned copy per dx, then 3 matmuls
        # (one per dy, with cheap row-aligned slices) of K = 3*Cp each.
        for dx in range(3):
            piece = xpad_ref[:, dx:dx + W, :]                       # (H+2, W, Cp)
            xrow_ref[:, dx * Cp:(dx + 1) * Cp] = piece.reshape((H + 2) * W, Cp)
        acc_ref[...] = jnp.zeros_like(acc_ref)
        for dy in range(3):
            acc_ref[...] += jnp.dot(
                xrow_ref[dy * W:dy * W + H * W, :], w_ref[dy],
                preferred_element_type=f32)
        return jnp.maximum(acc_ref[...] + b_ref[...], 0.0)          # (H*W, Cp)

    # ---- conv1: zero the haloed scratch, place the (lane-padded) input tile inside.
    xpad_ref[...] = jnp.zeros_like(xpad_ref)
    xin = x_ref[0].astype(f32)                                      # (H, W, Cin)
    if Cp > Cin:
        xin = jnp.concatenate(
            [xin, jnp.zeros((H, W, Cp - Cin), f32)], axis=-1)       # lane-pad to Cp
    xpad_ref[1:H + 1, 1:W + 1, :] = xin
    h1 = conv3x3_relu(w1_ref, b1_ref)

    # ---- conv2: intermediate activation never leaves VMEM (halo stays zero).
    xpad_ref[1:H + 1, 1:W + 1, :] = h1.reshape(H, W, Cp)
    h2 = conv3x3_relu(w2_ref, b2_ref)                               # (H*W, Cp)

    # ---- before_pool: channel-major store => lane-dense writeback, NCHW result
    #      needs only a free trailing reshape in the wrapper (no transpose).
    h2t = jnp.transpose(_pad_rows_to(h2, LANE))                     # (Cp, H*W)
    bp_ref[0] = h2t[:Cout, :H * W].astype(bp_ref.dtype)

    # ---- fused 2x2/2 max-pool on the VMEM tile.
    acc_ref[...] = h2                                               # stash post-ReLU activation
    pw = jnp.maximum(acc_ref[pl.ds(0, H * Wh, 2), :],               # even W columns
                     acc_ref[pl.ds(1, H * Wh, 2), :])               # odd  W columns
    pw = pw.reshape(Hh, 2, Wh, Cp)
    p = jnp.maximum(pw[:, 0], pw[:, 1]).reshape(Hh * Wh, Cp)        # H-direction pairs
    pt = jnp.transpose(_pad_rows_to(p, LANE))                       # (Cp, >= Hh*Wh)
    pool_ref[0] = pt[:Cout, :Hh * Wh].astype(pool_ref.dtype)


# ---------------------------------------------------------------------------
# Wrapper: NCHW in, (pooled NCHW, before_pool NCHW) out
# ---------------------------------------------------------------------------
def down_conv_forward(x_nchw, w1_hwio, b1, w2_hwio, b2):
    B, Cin, H, W = x_nchw.shape
    Cout = w1_hwio.shape[-1]
    assert H % 2 == 0 and W % 2 == 0, "2x2/2 max-pool needs even spatial dims"
    assert W % 8 == 0, "W must be a multiple of 8 (sublane tile) for the fused layout"
    Hh, Wh = H // 2, W // 2
    Cp = _round_up(max(Cin, Cout), LANE)          # in-kernel channel padding only

    # Pack weights once (tiny, one-time): HWIO -> (dy, dx*Cp + cin, cout), zero-padded.
    def pack_w(w, cin):
        wp = jnp.pad(w, ((0, 0), (0, 0), (0, Cp - cin), (0, Cp - Cout)))
        return wp.reshape(3, 3 * Cp, Cp).astype(jnp.float32)

    w1p = pack_w(w1_hwio, Cin)
    w2p = pack_w(w2_hwio, Cout)
    b1p = jnp.pad(b1, (0, Cp - Cout)).reshape(1, Cp).astype(jnp.float32)
    b2p = jnp.pad(b2, (0, Cp - Cout)).reshape(1, Cp).astype(jnp.float32)

    # Input side only: NCHW -> NHWC (channels on lanes for the matmuls).
    x_nhwc = jnp.transpose(x_nchw, (0, 2, 3, 1))

    bp_flat, pool_flat = pl.pallas_call(
        down_conv_kernel,
        out_shape=(
            jax.ShapeDtypeStruct((B, Cout, H * W), x_nchw.dtype),    # before_pool
            jax.ShapeDtypeStruct((B, Cout, Hh * Wh), x_nchw.dtype),  # pooled
        ),
        grid_spec=pltpu.PrefetchScalarGridSpec(
            num_scalar_prefetch=0,
            grid=(B,),
            in_specs=[
                pl.BlockSpec((1, H, W, Cin), lambda b: (b, 0, 0, 0)),
                pl.BlockSpec((3, 3 * Cp, Cp), lambda b: (0, 0, 0)),
                pl.BlockSpec((1, Cp), lambda b: (0, 0)),
                pl.BlockSpec((3, 3 * Cp, Cp), lambda b: (0, 0, 0)),
                pl.BlockSpec((1, Cp), lambda b: (0, 0)),
            ],
            out_specs=[
                pl.BlockSpec((1, Cout, H * W), lambda b: (b, 0, 0)),
                pl.BlockSpec((1, Cout, Hh * Wh), lambda b: (b, 0, 0)),
            ],
            scratch_shapes=[
                pltpu.VMEM((H + 2, W + 2, Cp), jnp.float32),     # haloed activation
                pltpu.VMEM(((H + 2) * W, 3 * Cp), jnp.float32),  # dx-folded rows
                pltpu.VMEM((H * W, Cp), jnp.float32),            # accumulator / pool stash
            ],
        ),
        compiler_params=pltpu.CompilerParams(
            dimension_semantics=("parallel",),        # batch axis can shard across cores
            vmem_limit_bytes=32 * 1024 * 1024,
        ),
    )(x_nhwc, w1p, b1p, w2p, b2p)

    # Trailing-dim reshapes only (no HBM transpose): already channel-major.
    before_pool = bp_flat.reshape(B, Cout, H, W)
    pooled = pool_flat.reshape(B, Cout, Hh, Wh)
    return pooled, before_pool


down_conv_forward = jax.jit(down_conv_forward)


# ---------------------------------------------------------------------------
# Pure-JAX reference (verification only)
# ---------------------------------------------------------------------------
def ref_forward(x_nchw, w1, b1, w2, b2):
    x = jnp.transpose(x_nchw, (0, 2, 3, 1))

    def conv(h, w, b):
        y = jax.lax.conv_general_dilated(
            h, w, window_strides=(1, 1), padding=((1, 1), (1, 1)),
            dimension_numbers=("NHWC", "HWIO", "NHWC"),
            precision=jax.lax.Precision.HIGHEST)
        return jax.nn.relu(y + b)

    h = conv(conv(x, w1, b1), w2, b2)
    p = jax.lax.reduce_window(h, -jnp.inf, jax.lax.max,
                              (1, 2, 2, 1), (1, 2, 2, 1), "VALID")
    return jnp.transpose(p, (0, 3, 1, 2)), jnp.transpose(h, (0, 3, 1, 2))


# ---------------------------------------------------------------------------
# Demo
# ---------------------------------------------------------------------------
if __name__ == "__main__":
    B, Cin, Cout, H, W = 2, 4, 8, 16, 16

    key = jax.random.PRNGKey(0)
    kx, k1, k2, k3, k4 = jax.random.split(key, 5)

    # Deterministic init mimicking PyTorch Conv2d default (uniform +-1/sqrt(fan_in)).
    bound1 = 1.0 / math.sqrt(Cin * 3 * 3)
    bound2 = 1.0 / math.sqrt(Cout * 3 * 3)
    w1 = jax.random.uniform(k1, (3, 3, Cin, Cout), jnp.float32, -bound1, bound1)
    b1 = jax.random.uniform(k2, (Cout,), jnp.float32, -bound1, bound1)
    w2 = jax.random.uniform(k3, (3, 3, Cout, Cout), jnp.float32, -bound2, bound2)
    b2 = jax.random.uniform(k4, (Cout,), jnp.float32, -bound2, bound2)

    x = jax.random.normal(kx, (B, Cin, H, W), jnp.float32)   # NCHW input

    pooled, before_pool = down_conv_forward(x, w1, b1, w2, b2)
    jax.block_until_ready((pooled, before_pool))

    assert pooled.shape == (B, Cout, H // 2, W // 2)
    assert before_pool.shape == (B, Cout, H, W)

    ref_pooled, ref_before = ref_forward(x, w1, b1, w2, b2)
    assert jnp.allclose(before_pool, ref_before, atol=1e-3, rtol=1e-3)
    assert jnp.allclose(pooled, ref_pooled, atol=1e-3, rtol=1e-3)

    print("KERNEL_OK")
</pallas_src>

<mosaic_0001>
module attributes {stable_mosaic.version = 11 : i64} {
  func.func @down_conv_kernel(%arg0: i32, %arg1: memref<1x16x16x4xf32, #tpu.memory_space<vmem>>, %arg2: memref<3x384x128xf32, #tpu.memory_space<vmem>>, %arg3: memref<1x128xf32, #tpu.memory_space<vmem>>, %arg4: memref<3x384x128xf32, #tpu.memory_space<vmem>>, %arg5: memref<1x128xf32, #tpu.memory_space<vmem>>, %arg6: memref<1x8x256xf32, #tpu.memory_space<vmem>>, %arg7: memref<1x8x64xf32, #tpu.memory_space<vmem>>, %arg8: memref<18x18x128xf32, #tpu.memory_space<vmem>>, %arg9: memref<288x384xf32, #tpu.memory_space<vmem>>, %arg10: memref<256x128xf32, #tpu.memory_space<vmem>>) attributes {dimension_semantics = [#tpu.dimension_semantics<parallel>], iteration_bounds = array<i64: 2>, scalar_prefetch = 0 : i64, scratch_operands = 3 : i64, tpu.core_type = #tpu.core_type<tc>, window_params = [{transform_indices = @transform_0, window_bounds = array<i64: 1, 16, 16, 4>}, {pipeline_mode = #tpu.pipeline_mode<synchronous>, transform_indices = @transform_1, window_bounds = array<i64: 3, 384, 128>}, {pipeline_mode = #tpu.pipeline_mode<synchronous>, transform_indices = @transform_2, window_bounds = array<i64: 1, 128>}, {pipeline_mode = #tpu.pipeline_mode<synchronous>, transform_indices = @transform_3, window_bounds = array<i64: 3, 384, 128>}, {pipeline_mode = #tpu.pipeline_mode<synchronous>, transform_indices = @transform_4, window_bounds = array<i64: 1, 128>}, {transform_indices = @transform_5, window_bounds = array<i64: 1, 8, 256>}, {transform_indices = @transform_6, window_bounds = array<i64: 1, 8, 64>}]} {
    %cst = arith.constant 0.000000e+00 : f32
    %0 = vector.broadcast %cst : f32 to vector<18x18x128xf32>
    %c0 = arith.constant 0 : index
    %c0_0 = arith.constant 0 : index
    %c0_1 = arith.constant 0 : index
    %1 = vector.load %arg8[%c0, %c0_0, %c0_1] : memref<18x18x128xf32, #tpu.memory_space<vmem>>, vector<18x18x128xf32>
    tpu.vector_store %arg8[%c0, %c0_0, %c0_1], %0 {strides = array<i32>} : memref<18x18x128xf32, #tpu.memory_space<vmem>>, vector<18x18x128xf32>,
    %c0_2 = arith.constant 0 : index
    %c0_3 = arith.constant 0 : index
    %c0_4 = arith.constant 0 : index
    %c0_5 = arith.constant 0 : index
    %2 = vector.load %arg1[%c0_2, %c0_3, %c0_4, %c0_5] : memref<1x16x16x4xf32, #tpu.memory_space<vmem>>, vector<1x16x16x4xf32>
    %3 = vector.shape_cast %2 : vector<1x16x16x4xf32> to vector<16x16x4xf32>
    %cst_6 = arith.constant 0.000000e+00 : f32
    %4 = vector.broadcast %cst_6 : f32 to vector<16x16x124xf32>
    %5 = tpu.concatenate %3, %4 in 2 : vector<16x16x4xf32>, vector<16x16x124xf32> -> vector<16x16x128xf32>
    %c1 = arith.constant 1 : index
    %c1_7 = arith.constant 1 : index
    %c0_8 = arith.constant 0 : index
    %6 = vector.load %arg8[%c1, %c1_7, %c0_8] : memref<18x18x128xf32, #tpu.memory_space<vmem>>, vector<16x16x128xf32>
    tpu.vector_store %arg8[%c1, %c1_7, %c0_8], %5 {strides = array<i32>} : memref<18x18x128xf32, #tpu.memory_space<vmem>>, vector<16x16x128xf32>,
    %c0_9 = arith.constant 0 : index
    %c0_10 = arith.constant 0 : index
    %c0_11 = arith.constant 0 : index
    %7 = vector.load %arg8[%c0_9, %c0_10, %c0_11] : memref<18x18x128xf32, #tpu.memory_space<vmem>>, vector<18x16x128xf32>
    %8 = vector.shape_cast %7 : vector<18x16x128xf32> to vector<288x128xf32>
    %c0_12 = arith.constant 0 : index
    %c0_13 = arith.constant 0 : index
    %9 = vector.load %arg9[%c0_12, %c0_13] : memref<288x384xf32, #tpu.memory_space<vmem>>, vector<288x128xf32>
    tpu.vector_store %arg9[%c0_12, %c0_13], %8 {strides = array<i32>} : memref<288x384xf32, #tpu.memory_space<vmem>>, vector<288x128xf32>,
    %c0_14 = arith.constant 0 : index
    %c1_15 = arith.constant 1 : index
    %c0_16 = arith.constant 0 : index
    %10 = vector.load %arg8[%c0_14, %c1_15, %c0_16] : memref<18x18x128xf32, #tpu.memory_space<vmem>>, vector<18x16x128xf32>
    %11 = vector.shape_cast %10 : vector<18x16x128xf32> to vector<288x128xf32>
    %c0_17 = arith.constant 0 : index
    %c128 = arith.constant 128 : index
    %12 = vector.load %arg9[%c0_17, %c128] : memref<288x384xf32, #tpu.memory_space<vmem>>, vector<288x128xf32>
    tpu.vector_store %arg9[%c0_17, %c128], %11 {strides = array<i32>} : memref<288x384xf32, #tpu.memory_space<vmem>>, vector<288x128xf32>,
    %c0_18 = arith.constant 0 : index
    %c2 = arith.constant 2 : index
    %c0_19 = arith.constant 0 : index
    %13 = vector.load %arg8[%c0_18, %c2, %c0_19] : memref<18x18x128xf32, #tpu.memory_space<vmem>>, vector<18x16x128xf32>
    %14 = vector.shape_cast %13 : vector<18x16x128xf32> to vector<288x128xf32>
    %c0_20 = arith.constant 0 : index
    %c256 = arith.constant 256 : index
    %15 = vector.load %arg9[%c0_20, %c256] : memref<288x384xf32, #tpu.memory_space<vmem>>, vector<288x128xf32>
    tpu.vector_store %arg9[%c0_20, %c256], %14 {strides = array<i32>} : memref<288x384xf32, #tpu.memory_space<vmem>>, vector<288x128xf32>,
    %cst_21 = arith.constant 0.000000e+00 : f32
    %16 = vector.broadcast %cst_21 : f32 to vector<256x128xf32>
    %c0_22 = arith.constant 0 : index
    %c0_23 = arith.constant 0 : index
    %17 = vector.load %arg10[%c0_22, %c0_23] : memref<256x128xf32, #tpu.memory_space<vmem>>, vector<256x128xf32>
    tpu.vector_store %arg10[%c0_22, %c0_23], %16 {strides = array<i32>} : memref<256x128xf32, #tpu.memory_space<vmem>>, vector<256x128xf32>,
    %c0_24 = arith.constant 0 : index
    %c0_25 = arith.constant 0 : index
    %18 = vector.load %arg10[%c0_24, %c0_25] : memref<256x128xf32, #tpu.memory_space<vmem>>, vector<256x128xf32>
    %c0_26 = arith.constant 0 : index
    %c0_27 = arith.constant 0 : index
    %19 = vector.load %arg9[%c0_26, %c0_27] : memref<288x384xf32, #tpu.memory_space<vmem>>, vector<256x384xf32>
    %c0_28 = arith.constant 0 : index
    %c0_29 = arith.constant 0 : index
    %c0_30 = arith.constant 0 : index
    %20 = vector.load %arg2[%c0_28, %c0_29, %c0_30] : memref<3x384x128xf32, #tpu.memory_space<vmem>>, vector<1x384x128xf32>
    %21 = vector.shape_cast %20 : vector<1x384x128xf32> to vector<384x128xf32>
    %cst_31 = arith.constant dense<0.000000e+00> : vector<256x128xf32>
    %22 = tpu.matmul %19, %21, %cst_31 {dimension_numbers = #tpu.dot_dimension_numbers<[1], [0], [0], [1], [0, 0, 1, 1], [], []>} : vector<256x384xf32>, vector<384x128xf32>, vector<256x128xf32> -> vector<256x128xf32>
    %23 = arith.addf %18, %22 : vector<256x128xf32>
    %c0_32 = arith.constant 0 : index
    %c0_33 = arith.constant 0 : index
    %24 = vector.load %arg10[%c0_32, %c0_33] : memref<256x128xf32, #tpu.memory_space<vmem>>, vector<256x128xf32>
    tpu.vector_store %arg10[%c0_32, %c0_33], %23 {strides = array<i32>} : memref<256x128xf32, #tpu.memory_space<vmem>>, vector<256x128xf32>,
    %c0_34 = arith.constant 0 : index
    %c0_35 = arith.constant 0 : index
    %25 = vector.load %arg10[%c0_34, %c0_35] : memref<256x128xf32, #tpu.memory_space<vmem>>, vector<256x128xf32>
    %c16 = arith.constant 16 : index
    %c0_36 = arith.constant 0 : index
    %26 = vector.load %arg9[%c16, %c0_36] : memref<288x384xf32, #tpu.memory_space<vmem>>, vector<256x384xf32>
    %c1_37 = arith.constant 1 : index
    %c0_38 = arith.constant 0 : index
    %c0_39 = arith.constant 0 : index
    %27 = vector.load %arg2[%c1_37, %c0_38, %c0_39] : memref<3x384x128xf32, #tpu.memory_space<vmem>>, vector<1x384x128xf32>
    %28 = vector.shape_cast %27 : vector<1x384x128xf32> to vector<384x128xf32>
    %cst_40 = arith.constant dense<0.000000e+00> : vector<256x128xf32>
    %29 = tpu.matmul %26, %28, %cst_40 {dimension_numbers = #tpu.dot_dimension_numbers<[1], [0], [0], [1], [0, 0, 1, 1], [], []>} : vector<256x384xf32>, vector<384x128xf32>, vector<256x128xf32> -> vector<256x128xf32>
    %30 = arith.addf %25, %29 : vector<256x128xf32>
    %c0_41 = arith.constant 0 : index
    %c0_42 = arith.constant 0 : index
    %31 = vector.load %arg10[%c0_41, %c0_42] : memref<256x128xf32, #tpu.memory_space<vmem>>, vector<256x128xf32>
    tpu.vector_store %arg10[%c0_41, %c0_42], %30 {strides = array<i32>} : memref<256x128xf32, #tpu.memory_space<vmem>>, vector<256x128xf32>,
    %c0_43 = arith.constant 0 : index
    %c0_44 = arith.constant 0 : index
    %32 = vector.load %arg10[%c0_43, %c0_44] : memref<256x128xf32, #tpu.memory_space<vmem>>, vector<256x128xf32>
    %c32 = arith.constant 32 : index
    %c0_45 = arith.constant 0 : index
    %33 = vector.load %arg9[%c32, %c0_45] : memref<288x384xf32, #tpu.memory_space<vmem>>, vector<256x384xf32>
    %c2_46 = arith.constant 2 : index
    %c0_47 = arith.constant 0 : index
    %c0_48 = arith.constant 0 : index
    %34 = vector.load %arg2[%c2_46, %c0_47, %c0_48] : memref<3x384x128xf32, #tpu.memory_space<vmem>>, vector<1x384x128xf32>
    %35 = vector.shape_cast %34 : vector<1x384x128xf32> to vector<384x128xf32>
    %cst_49 = arith.constant dense<0.000000e+00> : vector<256x128xf32>
    %36 = tpu.matmul %33, %35, %cst_49 {dimension_numbers = #tpu.dot_dimension_numbers<[1], [0], [0], [1], [0, 0, 1, 1], [], []>} : vector<256x384xf32>, vector<384x128xf32>, vector<256x128xf32> -> vector<256x128xf32>
    %37 = arith.addf %32, %36 : vector<256x128xf32>
    %c0_50 = arith.constant 0 : index
    %c0_51 = arith.constant 0 : index
    %38 = vector.load %arg10[%c0_50, %c0_51] : memref<256x128xf32, #tpu.memory_space<vmem>>, vector<256x128xf32>
    tpu.vector_store %arg10[%c0_50, %c0_51], %37 {strides = array<i32>} : memref<256x128xf32, #tpu.memory_space<vmem>>, vector<256x128xf32>,
    %c0_52 = arith.constant 0 : index
    %c0_53 = arith.constant 0 : index
    %39 = vector.load %arg10[%c0_52, %c0_53] : memref<256x128xf32, #tpu.memory_space<vmem>>, vector<256x128xf32>
    %c0_54 = arith.constant 0 : index
    %c0_55 = arith.constant 0 : index
    %40 = vector.load %arg3[%c0_54, %c0_55] : memref<1x128xf32, #tpu.memory_space<vmem>>, vector<1x128xf32>
    %41 = vector.broadcast %40 : vector<1x128xf32> to vector<256x128xf32>
    %42 = arith.addf %39, %41 : vector<256x128xf32>
    %cst_56 = arith.constant 0.000000e+00 : f32
    %43 = vector.broadcast %cst_56 : f32 to vector<256x128xf32>
    %44 = arith.maximumf %42, %43 : vector<256x128xf32>
    %45 = vector.shape_cast %44 : vector<256x128xf32> to vector<16x16x128xf32>
    %c1_57 = arith.constant 1 : index
    %c1_58 = arith.constant 1 : index
    %c0_59 = arith.constant 0 : index
    %46 = vector.load %arg8[%c1_57, %c1_58, %c0_59] : memref<18x18x128xf32, #tpu.memory_space<vmem>>, vector<16x16x128xf32>
    tpu.vector_store %arg8[%c1_57, %c1_58, %c0_59], %45 {strides = array<i32>} : memref<18x18x128xf32, #tpu.memory_space<vmem>>, vector<16x16x128xf32>,
    %c0_60 = arith.constant 0 : index
    %c0_61 = arith.constant 0 : index
    %c0_62 = arith.constant 0 : index
    %47 = vector.load %arg8[%c0_60, %c0_61, %c0_62] : memref<18x18x128xf32, #tpu.memory_space<vmem>>, vector<18x16x128xf32>
    %48 = vector.shape_cast %47 : vector<18x16x128xf32> to vector<288x128xf32>
    %c0_63 = arith.constant 0 : index
    %c0_64 = arith.constant 0 : index
    %49 = vector.load %arg9[%c0_63, %c0_64] : memref<288x384xf32, #tpu.memory_space<vmem>>, vector<288x128xf32>
    tpu.vector_store %arg9[%c0_63, %c0_64], %48 {strides = array<i32>} : memref<288x384xf32, #tpu.memory_space<vmem>>, vector<288x128xf32>,
    %c0_65 = arith.constant 0 : index
    %c1_66 = arith.constant 1 : index
    %c0_67 = arith.constant 0 : index
    %50 = vector.load %arg8[%c0_65, %c1_66, %c0_67] : memref<18x18x128xf32, #tpu.memory_space<vmem>>, vector<18x16x128xf32>
    %51 = vector.shape_cast %50 : vector<18x16x128xf32> to vector<288x128xf32>
    %c0_68 = arith.constant 0 : index
    %c128_69 = arith.constant 128 : index
    %52 = vector.load %arg9[%c0_68, %c128_69] : memref<288x384xf32, #tpu.memory_space<vmem>>, vector<288x128xf32>
    tpu.vector_store %arg9[%c0_68, %c128_69], %51 {strides = array<i32>} : memref<288x384xf32, #tpu.memory_space<vmem>>, vector<288x128xf32>,
    %c0_70 = arith.constant 0 : index
    %c2_71 = arith.constant 2 : index
    %c0_72 = arith.constant 0 : index
    %53 = vector.load %arg8[%c0_70, %c2_71, %c0_72] : memref<18x18x128xf32, #tpu.memory_space<vmem>>, vector<18x16x128xf32>
    %54 = vector.shape_cast %53 : vector<18x16x128xf32> to vector<288x128xf32>
    %c0_73 = arith.constant 0 : index
    %c256_74 = arith.constant 256 : index
    %55 = vector.load %arg9[%c0_73, %c256_74] : memref<288x384xf32, #tpu.memory_space<vmem>>, vector<288x128xf32>
    tpu.vector_store %arg9[%c0_73, %c256_74], %54 {strides = array<i32>} : memref<288x384xf32, #tpu.memory_space<vmem>>, vector<288x128xf32>,
    %cst_75 = arith.constant 0.000000e+00 : f32
    %56 = vector.broadcast %cst_75 : f32 to vector<256x128xf32>
    %c0_76 = arith.constant 0 : index
    %c0_77 = arith.constant 0 : index
    %57 = vector.load %arg10[%c0_76, %c0_77] : memref<256x128xf32, #tpu.memory_space<vmem>>, vector<256x128xf32>
    tpu.vector_store %arg10[%c0_76, %c0_77], %56 {strides = array<i32>} : memref<256x128xf32, #tpu.memory_space<vmem>>, vector<256x128xf32>,
    %c0_78 = arith.constant 0 : index
    %c0_79 = arith.constant 0 : index
    %58 = vector.load %arg10[%c0_78, %c0_79] : memref<256x128xf32, #tpu.memory_space<vmem>>, vector<256x128xf32>
    %c0_80 = arith.constant 0 : index
    %c0_81 = arith.constant 0 : index
    %59 = vector.load %arg9[%c0_80, %c0_81] : memref<288x384xf32, #tpu.memory_space<vmem>>, vector<256x384xf32>
    %c0_82 = arith.constant 0 : index
    %c0_83 = arith.constant 0 : index
    %c0_84 = arith.constant 0 : index
    %60 = vector.load %arg4[%c0_82, %c0_83, %c0_84] : memref<3x384x128xf32, #tpu.memory_space<vmem>>, vector<1x384x128xf32>
    %61 = vector.shape_cast %60 : vector<1x384x128xf32> to vector<384x128xf32>
    %cst_85 = arith.constant dense<0.000000e+00> : vector<256x128xf32>
    %62 = tpu.matmul %59, %61, %cst_85 {dimension_numbers = #tpu.dot_dimension_numbers<[1], [0], [0], [1], [0, 0, 1, 1], [], []>} : vector<256x384xf32>, vector<384x128xf32>, vector<256x128xf32> -> vector<256x128xf32>
    %63 = arith.addf %58, %62 : vector<256x128xf32>
    %c0_86 = arith.constant 0 : index
    %c0_87 = arith.constant 0 : index
    %64 = vector.load %arg10[%c0_86, %c0_87] : memref<256x128xf32, #tpu.memory_space<vmem>>, vector<256x128xf32>
    tpu.vector_store %arg10[%c0_86, %c0_87], %63 {strides = array<i32>} : memref<256x128xf32, #tpu.memory_space<vmem>>, vector<256x128xf32>,
    %c0_88 = arith.constant 0 : index
    %c0_89 = arith.constant 0 : index
    %65 = vector.load %arg10[%c0_88, %c0_89] : memref<256x128xf32, #tpu.memory_space<vmem>>, vector<256x128xf32>
    %c16_90 = arith.constant 16 : index
    %c0_91 = arith.constant 0 : index
    %66 = vector.load %arg9[%c16_90, %c0_91] : memref<288x384xf32, #tpu.memory_space<vmem>>, vector<256x384xf32>
    %c1_92 = arith.constant 1 : index
    %c0_93 = arith.constant 0 : index
    %c0_94 = arith.constant 0 : index
    %67 = vector.load %arg4[%c1_92, %c0_93, %c0_94] : memref<3x384x128xf32, #tpu.memory_space<vmem>>, vector<1x384x128xf32>
    %68 = vector.shape_cast %67 : vector<1x384x128xf32> to vector<384x128xf32>
    %cst_95 = arith.constant dense<0.000000e+00> : vector<256x128xf32>
    %69 = tpu.matmul %66, %68, %cst_95 {dimension_numbers = #tpu.dot_dimension_numbers<[1], [0], [0], [1], [0, 0, 1, 1], [], []>} : vector<256x384xf32>, vector<384x128xf32>, vector<256x128xf32> -> vector<256x128xf32>
    %70 = arith.addf %65, %69 : vector<256x128xf32>
    %c0_96 = arith.constant 0 : index
    %c0_97 = arith.constant 0 : index
    %71 = vector.load %arg10[%c0_96, %c0_97] : memref<256x128xf32, #tpu.memory_space<vmem>>, vector<256x128xf32>
    tpu.vector_store %arg10[%c0_96, %c0_97], %70 {strides = array<i32>} : memref<256x128xf32, #tpu.memory_space<vmem>>, vector<256x128xf32>,
    %c0_98 = arith.constant 0 : index
    %c0_99 = arith.constant 0 : index
    %72 = vector.load %arg10[%c0_98, %c0_99] : memref<256x128xf32, #tpu.memory_space<vmem>>, vector<256x128xf32>
    %c32_100 = arith.constant 32 : index
    %c0_101 = arith.constant 0 : index
    %73 = vector.load %arg9[%c32_100, %c0_101] : memref<288x384xf32, #tpu.memory_space<vmem>>, vector<256x384xf32>
    %c2_102 = arith.constant 2 : index
    %c0_103 = arith.constant 0 : index
    %c0_104 = arith.constant 0 : index
    %74 = vector.load %arg4[%c2_102, %c0_103, %c0_104] : memref<3x384x128xf32, #tpu.memory_space<vmem>>, vector<1x384x128xf32>
    %75 = vector.shape_cast %74 : vector<1x384x128xf32> to vector<384x128xf32>
    %cst_105 = arith.constant dense<0.000000e+00> : vector<256x128xf32>
    %76 = tpu.matmul %73, %75, %cst_105 {dimension_numbers = #tpu.dot_dimension_numbers<[1], [0], [0], [1], [0, 0, 1, 1], [], []>} : vector<256x384xf32>, vector<384x128xf32>, vector<256x128xf32> -> vector<256x128xf32>
    %77 = arith.addf %72, %76 : vector<256x128xf32>
    %c0_106 = arith.constant 0 : index
    %c0_107 = arith.constant 0 : index
    %78 = vector.load %arg10[%c0_106, %c0_107] : memref<256x128xf32, #tpu.memory_space<vmem>>, vector<256x128xf32>
    tpu.vector_store %arg10[%c0_106, %c0_107], %77 {strides = array<i32>} : memref<256x128xf32, #tpu.memory_space<vmem>>, vector<256x128xf32>,
    %c0_108 = arith.constant 0 : index
    %c0_109 = arith.constant 0 : index
    %79 = vector.load %arg10[%c0_108, %c0_109] : memref<256x128xf32, #tpu.memory_space<vmem>>, vector<256x128xf32>
    %c0_110 = arith.constant 0 : index
    %c0_111 = arith.constant 0 : index
    %80 = vector.load %arg5[%c0_110, %c0_111] : memref<1x128xf32, #tpu.memory_space<vmem>>, vector<1x128xf32>
    %81 = vector.broadcast %80 : vector<1x128xf32> to vector<256x128xf32>
    %82 = arith.addf %79, %81 : vector<256x128xf32>
    %cst_112 = arith.constant 0.000000e+00 : f32
    %83 = vector.broadcast %cst_112 : f32 to vector<256x128xf32>
    %84 = arith.maximumf %82, %83 : vector<256x128xf32>
    %85 = tpu.transpose %84, [1, 0] : vector<256x128xf32> -> vector<128x256xf32>
    %86 = vector.extract_strided_slice %85 {offsets = [0, 0], sizes = [8, 256], strides = [1, 1]} : vector<128x256xf32> to vector<8x256xf32>
    %c0_113 = arith.constant 0 : index
    %c0_114 = arith.constant 0 : index
    %c0_115 = arith.constant 0 : index
    %87 = vector.load %arg6[%c0_113, %c0_114, %c0_115] : memref<1x8x256xf32, #tpu.memory_space<vmem>>, vector<1x8x256xf32>
    %88 = vector.shape_cast %87 : vector<1x8x256xf32> to vector<8x256xf32>
    %89 = vector.shape_cast %86 : vector<8x256xf32> to vector<1x8x256xf32>
    tpu.vector_store %arg6[%c0_113, %c0_114, %c0_115], %89 {strides = array<i32>} : memref<1x8x256xf32, #tpu.memory_space<vmem>>, vector<1x8x256xf32>,
    %c0_116 = arith.constant 0 : index
    %c0_117 = arith.constant 0 : index
    %90 = vector.load %arg10[%c0_116, %c0_117] : memref<256x128xf32, #tpu.memory_space<vmem>>, vector<256x128xf32>
    tpu.vector_store %arg10[%c0_116, %c0_117], %84 {strides = array<i32>} : memref<256x128xf32, #tpu.memory_space<vmem>>, vector<256x128xf32>,
    %c0_118 = arith.constant 0 : index
    %c0_119 = arith.constant 0 : index
    %91 = tpu.strided_load %arg10[%c0_118, %c0_119] {strides = array<i32: 2, 1>} : memref<256x128xf32, #tpu.memory_space<vmem>>, vector<128x128xf32>
    %c1_120 = arith.constant 1 : index
    %c0_121 = arith.constant 0 : index
    %92 = tpu.strided_load %arg10[%c1_120, %c0_121] {strides = array<i32: 2, 1>} : memref<256x128xf32, #tpu.memory_space<vmem>>, vector<128x128xf32>
    %93 = arith.maximumf %91, %92 : vector<128x128xf32>
    %94 = vector.shape_cast %93 : vector<128x128xf32> to vector<8x2x8x128xf32>
    %95 = vector.extract_strided_slice %94 {offsets = [0, 0, 0, 0], sizes = [8, 1, 8, 128], strides = [1, 1, 1, 1]} : vector<8x2x8x128xf32> to vector<8x1x8x128xf32>
    %96 = vector.shape_cast %95 : vector<8x1x8x128xf32> to vector<8x8x128xf32>
    %97 = vector.extract_strided_slice %94 {offsets = [0, 1, 0, 0], sizes = [8, 1, 8, 128], strides = [1, 1, 1, 1]} : vector<8x2x8x128xf32> to vector<8x1x8x128xf32>
    %98 = vector.shape_cast %97 : vector<8x1x8x128xf32> to vector<8x8x128xf32>
    %99 = arith.maximumf %96, %98 : vector<8x8x128xf32>
    %100 = vector.shape_cast %99 : vector<8x8x128xf32> to vector<64x128xf32>
    %cst_122 = arith.constant 0.000000e+00 : f32
    %101 = vector.broadcast %cst_122 : f32 to vector<64x128xf32>
    %102 = tpu.concatenate %100, %101 in 0 : vector<64x128xf32>, vector<64x128xf32> -> vector<128x128xf32>
    %103 = tpu.transpose %102, [1, 0] : vector<128x128xf32> -> vector<128x128xf32>
    %104 = vector.extract_strided_slice %103 {offsets = [0, 0], sizes = [8, 64], strides = [1, 1]} : vector<128x128xf32> to vector<8x64xf32>
    %c0_123 = arith.constant 0 : index
    %c0_124 = arith.constant 0 : index
    %c0_125 = arith.constant 0 : index
    %105 = vector.load %arg7[%c0_123, %c0_124, %c0_125] : memref<1x8x64xf32, #tpu.memory_space<vmem>>, vector<1x8x64xf32>
    %106 = vector.shape_cast %105 : vector<1x8x64xf32> to vector<8x64xf32>
    %107 = vector.shape_cast %104 : vector<8x64xf32> to vector<1x8x64xf32>
    tpu.vector_store %arg7[%c0_123, %c0_124, %c0_125], %107 {strides = array<i32>} : memref<1x8x64xf32, #tpu.memory_space<vmem>>, vector<1x8x64xf32>,
    return
  }
  func.func @transform_0(%arg0: i32) -> (i32, i32, i32, i32) {
    %c0_i32 = arith.constant 0 : i32
    %c0_i32_0 = arith.constant 0 : i32
    %c0_i32_1 = arith.constant 0 : i32
    %c0_i32_2 = arith.constant 0 : i32
    return %arg0, %c0_i32, %c0_i32_0, %c0_i32_1 : i32, i32, i32, i32
  }
  func.func @transform_1(%arg0: i32) -> (i32, i32, i32) {
    %c0_i32 = arith.constant 0 : i32
    %c0_i32_0 = arith.constant 0 : i32
    %c0_i32_1 = arith.constant 0 : i32
    %c0_i32_2 = arith.constant 0 : i32
    return %c0_i32, %c0_i32_0, %c0_i32_1 : i32, i32, i32
  }
  func.func @transform_2(%arg0: i32) -> (i32, i32) {
    %c0_i32 = arith.constant 0 : i32
    %c0_i32_0 = arith.constant 0 : i32
    %c0_i32_1 = arith.constant 0 : i32
    return %c0_i32, %c0_i32_0 : i32, i32
  }
  func.func @transform_3(%arg0: i32) -> (i32, i32, i32) {
    %c0_i32 = arith.constant 0 : i32
    %c0_i32_0 = arith.constant 0 : i32
    %c0_i32_1 = arith.constant 0 : i32
    %c0_i32_2 = arith.constant 0 : i32
    return %c0_i32, %c0_i32_0, %c0_i32_1 : i32, i32, i32
  }
  func.func @transform_4(%arg0: i32) -> (i32, i32) {
    %c0_i32 = arith.constant 0 : i32
    %c0_i32_0 = arith.constant 0 : i32
    %c0_i32_1 = arith.constant 0 : i32
    return %c0_i32, %c0_i32_0 : i32, i32
  }
  func.func @transform_5(%arg0: i32) -> (i32, i32, i32) {
    %c0_i32 = arith.constant 0 : i32
    %c0_i32_0 = arith.constant 0 : i32
    %c0_i32_1 = arith.constant 0 : i32
    return %arg0, %c0_i32, %c0_i32_0 : i32, i32, i32
  }
  func.func @transform_6(%arg0: i32) -> (i32, i32, i32) {
    %c0_i32 = arith.constant 0 : i32
    %c0_i32_0 = arith.constant 0 : i32
    %c0_i32_1 = arith.constant 0 : i32
    return %arg0, %c0_i32, %c0_i32_0 : i32, i32, i32
  }
}

</mosaic_0001>

<bundles_post_ra>
// kernel: down_conv_forward.1
= control target key start
LH: loop header
LB: loop body
LE: loop exit
PB: predicated region body
PF: predicated region fallthrough
CT: control target
= control target key end

     0   :  { %s6799_s21 = smov 0   ;;  %s9790_s0 = inlined_call_operand.vmem [shape: f32[2,16,16,4], index: 0, kind: input, shape index: {}]   ;;  %s9791_s1 = inlined_call_operand.vmem [shape: f32[3,384,128], index: 1, kind: input, shape index: {}]   ;;  %s9792_s2 = inlined_call_operand.vmem [shape: f32[1,128], index: 2, kind: input, shape index: {}]   ;;  %s9793_s3 = inlined_call_operand.vmem [shape: f32[3,384,128], index: 3, kind: input, shape index: {}]   ;;  %s9794_s4 = inlined_call_operand.vmem [shape: f32[1,128], index: 4, kind: input, shape index: {}]   ;;  %s9795_s5 = inlined_call_operand.vmem [shape: f32[2,8,256], index: 5, kind: output, shape index: {0}]   ;;  %s9796_s6 = inlined_call_operand.vmem [shape: f32[2,8,64], index: 6, kind: output, shape index: {1}]  }
   0x1 LB: > { %s5598_s22 = sadd.s32 4294967295, %s6761_s21   ;;  %p5602_p0 = scmp.ge.s32.totalorder %s6761_s21, 1  ;;  %s6761_s21 = sphi %s6799_s21, %s17_s21  }
   0x2   : > { %p215_p1 = scmp.lt.s32.totalorder %s6761_s21, 3 }
   0x4   : > { %p216_p2 = pnand %p5602_p0, %p215_p1 }
   0x6   : > { %219 = sbr.rel (%p216_p2) target bundleno = 1115 (0x45b), region = 40 }
   0xb   : > { %v838_v0 = vld [vmem:[%s9791_s1 + $0x178] sm:$0xff]  ;;  %v6816_v2 = vld [vmem:[%s9791_s1 + $0x170] sm:$0xff]  ;;  %p6820_p3 = scmp.lt.s32.totalorder %s5598_s22, 1  ;;  %v9797_v3 = vmov 0.0   ;;  %v836_v5 = vld [vmem:[%s9791_s1 + $0x168] sm:$0xff]  ;;  %vm349_vm0 = vcmask 31744  }
   0xc   : > { %v806_v1 = vld [vmem:[%s9791_s1 + $0x78] sm:$0xff]  ;;  %839 = vmatprep.subr.mxu0 %v9797_v3  ;;  %263 = vst [vmem:[#allocation2] sm:$0xff] %v9797_v3  ;;  %264 = vst [vmem:[#allocation2 + $0x8] sm:$0xff] %v9797_v3  ;;  %6094 = vmatprep.subr.mxu1 %v838_v0  ;;  %v805_v4 = vld [vmem:[%s9791_s1 + $0x70] sm:$0xff]  ;;  %vm5510_vm1 = vcmask 523264  }
   0xd   : > { %265 = vst [vmem:[#allocation2 + $0x10] sm:$0x3] %v9797_v3  ;;  %266 = vst [vmem:[#allocation2 + $0x18] sm:$0xff] %v9797_v3  ;;  %840 = vmatpush1.msra.mxu0 %v806_v1  ;;  %6095 = vmatpush3.msra.mxu1 %v838_v0  ;;  %s10009_s22 = smov (!%p6820_p3, %s5598_s22), 1  ;;  %v804_v6 = vld [vmem:[%s9791_s1 + $0x68] sm:$0xff]  ;;  %v835_v7 = vld [vmem:[%s9791_s1 + $0x160] sm:$0xff] }
   0xe   : > { %267 = vst [vmem:[#allocation2 + $0x20] sm:$0xff] %v9797_v3  ;;  %268 = vst [vmem:[#allocation2 + $0x28] sm:$0x3] %v9797_v3  ;;  %841 = vmatprep.subr.mxu0 %v9797_v3  ;;  %6096 = vmatprep.subr.mxu1 %v6816_v2  ;;  %v803_v8 = vld [vmem:[%s9791_s1 + $0x60] sm:$0xff]  ;;  %v834_v9 = vld [vmem:[%s9791_s1 + $0x158] sm:$0xff]  ;;  %s5804_s18 = sshll.u32 %s10009_s22, 8 }
   0xf   : > { %269 = vst [vmem:[#allocation2 + $0x30] sm:$0xff] %v9797_v3  ;;  %270 = vst [vmem:[#allocation2 + $0x38] sm:$0xff] %v9797_v3  ;;  %842 = vmatpush1.msra.mxu0 %v805_v4  ;;  %6097 = vmatpush3.msra.mxu1 %v6816_v2  ;;  %v802_v10 = vld [vmem:[%s9791_s1 + $0x58] sm:$0xff]  ;;  %v833_v11 = vld [vmem:[%s9791_s1 + $0x150] sm:$0xff]  ;;  %s6922_s29 = scalar_lea.vmem %s9790_s0, %s5804_s18  ;;  %s5805_s17 = sshll.u32 %s10009_s22, 4 }
  0x10   : > { %271 = vst [vmem:[#allocation2 + $0x40] sm:$0x3] %v9797_v3  ;;  %272 = vst [vmem:[#allocation2 + $0x48] sm:$0xff] %v9797_v3  ;;  %843 = vmatprep.subr.mxu0 %v9797_v3  ;;  %6098 = vmatprep.subr.mxu1 %v836_v5  ;;  %v801_v12 = vld [vmem:[%s9791_s1 + $0x50] sm:$0xff]  ;;  %v832_v13 = vld [vmem:[%s9791_s1 + $0x148] sm:$0xff]  ;;  %s258_s20 = scalar_lea.vmem %s9795_s5, %s5805_s17  ;;  %s5607_s23 = sshll.u32 %s10009_s22, 3 }
  0x11   : > { %273 = vst [vmem:[#allocation2 + $0x50] sm:$0xff] %v9797_v3  ;;  %274 = vst [vmem:[#allocation2 + $0x58] sm:$0x3] %v9797_v3  ;;  %844 = vmatpush1.msra.mxu0 %v804_v6  ;;  %6099 = vmatpush3.msra.mxu1 %v836_v5  ;;  %v800_v14 = vld [vmem:[%s9791_s1 + $0x48] sm:$0xff]  ;;  %v831_v15 = vld [vmem:[%s9791_s1 + $0x140] sm:$0xff]  ;;  %s262_s26 = scalar_lea.vmem %s9796_s6, %s5607_s23 }
  0x12   : > { %275 = vst [vmem:[#allocation2 + $0x60] sm:$0xff] %v9797_v3  ;;  %276 = vst [vmem:[#allocation2 + $0x68] sm:$0xff] %v9797_v3  ;;  %845 = vmatprep.subr.mxu0 %v9797_v3  ;;  %6100 = vmatprep.subr.mxu1 %v835_v7  ;;  %v6935_v16 = vld [vmem:[%s6922_s29] sm:$0xff]  ;;  %v6938_v17 = vld [vmem:[%s6922_s29 + $0x8] sm:$0xff] }
  0x13   : > { %277 = vst [vmem:[#allocation2 + $0x70] sm:$0x3] %v9797_v3  ;;  %278 = vst [vmem:[#allocation2 + $0x78] sm:$0xff] %v9797_v3  ;;  %846 = vmatpush1.msra.mxu0 %v803_v8  ;;  %6101 = vmatpush3.msra.mxu1 %v835_v7  ;;  %v799_v18 = vld [vmem:[%s9791_s1 + $0x40] sm:$0xff]  ;;  %v350_v19 = vsel %vm349_vm0, %v6935_v16, 0.0  ;;  %v351_v20 = vsel %vm349_vm0, %v6938_v17, 0.0 }
  0x14   : > { %279 = vst [vmem:[#allocation2 + $0x80] sm:$0xff] %v9797_v3  ;;  %280 = vst [vmem:[#allocation2 + $0x88] sm:$0x3] %v9797_v3  ;;  %847 = vmatprep.subr.mxu0 %v9797_v3  ;;  %6102 = vmatprep.subr.mxu1 %v834_v9  ;;  %v830_v21 = vld [vmem:[%s9791_s1 + $0x138] sm:$0xff]  ;;  %v6952_v22 = vld [vmem:[%s6922_s29 + $0x10] sm:$0xff] }
  0x15   : > { %281 = vst [vmem:[#allocation2 + $0x90] sm:$0xff] %v9797_v3  ;;  %282 = vst [vmem:[#allocation2 + $0x98] sm:$0xff] %v9797_v3  ;;  %848 = vmatpush1.msra.mxu0 %v802_v10  ;;  %6103 = vmatpush3.msra.mxu1 %v834_v9  ;;  %v6955_v23 = vld [vmem:[%s6922_s29 + $0x18] sm:$0xff]  ;;  %v352_v25 = vsel %vm349_vm0, %v6952_v22, 0.0  ;;  %v829_v27 = vld [vmem:[%s9791_s1 + $0x130] sm:$0xff] }
  0x16   : > { %283 = vst [vmem:[#allocation2 + $0xa0] sm:$0x3] %v9797_v3  ;;  %284 = vst [vmem:[#allocation2 + $0xa8] sm:$0xff] %v9797_v3  ;;  %849 = vmatprep.subr.mxu0 %v9797_v3  ;;  %6104 = vmatprep.subr.mxu1 %v833_v11  ;;  %v798_v24 = vld [vmem:[%s9791_s1 + $0x38] sm:$0xff]  ;;  %v353_v26 = vsel %vm349_vm0, %v6955_v23, 0.0  ;;  %v6969_v28 = vld [vmem:[%s6922_s29 + $0x20] sm:$0xff] }
  0x17   : > { %285 = vst [vmem:[#allocation2 + $0xb0] sm:$0xff] %v9797_v3  ;;  %286 = vst [vmem:[#allocation2 + $0xb8] sm:$0x3] %v9797_v3  ;;  %850 = vmatpush1.msra.mxu0 %v801_v12  ;;  %6105 = vmatpush3.msra.mxu1 %v833_v11  ;;  %v6972_v29 = vld [vmem:[%s6922_s29 + $0x28] sm:$0xff]  ;;  %v797_v30 = vld [vmem:[%s9791_s1 + $0x30] sm:$0xff]  ;;  %v354_v31 = vsel %vm349_vm0, %v6969_v28, 0.0 }
  0x18   : > { %287 = vst [vmem:[#allocation2 + $0xc0] sm:$0xff] %v9797_v3  ;;  %288 = vst [vmem:[#allocation2 + $0xc8] sm:$0xff] %v9797_v3  ;;  %851 = vmatprep.subr.mxu0 %v9797_v3  ;;  %6106 = vmatprep.subr.mxu1 %v832_v13  ;;  %v355_v32 = vsel %vm349_vm0, %v6972_v29, 0.0  ;;  %v828_v33 = vld [vmem:[%s9791_s1 + $0x128] sm:$0xff]  ;;  %v6986_v34 = vld [vmem:[%s6922_s29 + $0x30] sm:$0xff] }
  0x19   : > { %289 = vst [vmem:[#allocation2 + $0xd0] sm:$0x3] %v9797_v3  ;;  %290 = vst [vmem:[#allocation2 + $0xd8] sm:$0xff] %v9797_v3  ;;  %852 = vmatpush1.msra.mxu0 %v800_v14  ;;  %6107 = vmatpush3.msra.mxu1 %v832_v13  ;;  %v6989_v35 = vld [vmem:[%s6922_s29 + $0x38] sm:$0xff]  ;;  %v796_v36 = vld [vmem:[%s9791_s1 + $0x28] sm:$0xff]  ;;  %v356_v37 = vsel %vm349_vm0, %v6986_v34, 0.0 }
  0x1a   : > { %291 = vst [vmem:[#allocation2 + $0xe0] sm:$0xff] %v9797_v3  ;;  %292 = vst [vmem:[#allocation2 + $0xe8] sm:$0x3] %v9797_v3  ;;  %853 = vmatprep.subr.mxu0 %v9797_v3  ;;  %6108 = vmatprep.subr.mxu1 %v831_v15  ;;  %v357_v38 = vsel %vm349_vm0, %v6989_v35, 0.0  ;;  %v827_v39 = vld [vmem:[%s9791_s1 + $0x120] sm:$0xff]  ;;  %v7006_v41 = vld [vmem:[%s6922_s29 + $0x48] sm:$0xff] }
  0x1b   : > { %293 = vst [vmem:[#allocation2 + $0xf0] sm:$0xff] %v9797_v3  ;;  %294 = vst [vmem:[#allocation2 + $0xf8] sm:$0xff] %v9797_v3  ;;  %854 = vmatpush1.msra.mxu0 %v799_v18  ;;  %6109 = vmatpush3.msra.mxu1 %v831_v15  ;;  %v7003_v40 = vld [vmem:[%s6922_s29 + $0x40] sm:$0xff]  ;;  %v359_v44 = vsel %vm349_vm0, %v7006_v41, 0.0  ;;  %v826_v45 = vld [vmem:[%s9791_s1 + $0x118] sm:$0xff] }
  0x1c   : > { %295 = vst [vmem:[#allocation2 + $0x100] sm:$0x3] %v9797_v3  ;;  %296 = vst [vmem:[#allocation2 + $0x108] sm:$0xff] %v9797_v3  ;;  %855 = vmatprep.subr.mxu0 %v9797_v3  ;;  %6110 = vmatprep.subr.mxu1 %v830_v21  ;;  %v795_v42 = vld [vmem:[%s9791_s1 + $0x20] sm:$0xff]  ;;  %v358_v43 = vsel %vm349_vm0, %v7003_v40, 0.0  ;;  %v794_v46 = vld [vmem:[%s9791_s1 + $0x18] sm:$0xff] }
  0x1d   : > { %297 = vst [vmem:[#allocation2 + $0x110] sm:$0xff] %v9797_v3  ;;  %298 = vst [vmem:[#allocation2 + $0x118] sm:$0x3] %v9797_v3  ;;  %856 = vmatpush1.msra.mxu0 %v798_v24  ;;  %6111 = vmatpush3.msra.mxu1 %v830_v21  ;;  %v7024_v47 = vld [vmem:[%s6922_s29 + $0x50] sm:$0xff]  ;;  %v7030_v49 = vld [vmem:[%s6922_s29 + $0x58] sm:$0xff] }
  0x1e   : > { %299 = vst [vmem:[#allocation2 + $0x120] sm:$0xff] %v9797_v3  ;;  %300 = vst [vmem:[#allocation2 + $0x128] sm:$0xff] %v9797_v3  ;;  %857 = vmatprep.subr.mxu0 %v9797_v3  ;;  %6112 = vmatprep.subr.mxu1 %v829_v27  ;;  %v825_v48 = vld [vmem:[%s9791_s1 + $0x110] sm:$0xff]  ;;  %v360_v50 = vsel %vm349_vm0, %v7024_v47, 0.0  ;;  %v361_v52 = vsel %vm349_vm0, %v7030_v49, 0.0  ;;  %v824_v53 = vld [vmem:[%s9791_s1 + $0x108] sm:$0xff] }
  0x1f   : > { %301 = vst [vmem:[#allocation2 + $0x130] sm:$0x3] %v9797_v3  ;;  %302 = vst [vmem:[#allocation2 + $0x138] sm:$0xff] %v9797_v3  ;;  %858 = vmatpush1.msra.mxu0 %v797_v30  ;;  %6113 = vmatpush3.msra.mxu1 %v829_v27  ;;  %v793_v51 = vld [vmem:[%s9791_s1 + $0x10] sm:$0xff]  ;;  %v7044_v54 = vld [vmem:[%s6922_s29 + $0x60] sm:$0xff] }
  0x20   : > { %303 = vst [vmem:[#allocation2 + $0x140] sm:$0xff] %v9797_v3  ;;  %304 = vst [vmem:[#allocation2 + $0x148] sm:$0x3] %v9797_v3  ;;  %859 = vmatprep.subr.mxu0 %v9797_v3  ;;  %6114 = vmatprep.subr.mxu1 %v828_v33  ;;  %v7047_v55 = vld [vmem:[%s6922_s29 + $0x68] sm:$0xff]  ;;  %v362_v57 = vsel %vm349_vm0, %v7044_v54, 0.0  ;;  %v823_v59 = vld [vmem:[%s9791_s1 + $0x100] sm:$0xff] }
  0x21   : > { %305 = vst [vmem:[#allocation2 + $0x150] sm:$0xff] %v9797_v3  ;;  %306 = vst [vmem:[#allocation2 + $0x158] sm:$0xff] %v9797_v3  ;;  %860 = vmatpush1.msra.mxu0 %v796_v36  ;;  %6115 = vmatpush3.msra.mxu1 %v828_v33  ;;  %v792_v56 = vld [vmem:[%s9791_s1 + $0x8] sm:$0xff]  ;;  %v363_v58 = vsel %vm349_vm0, %v7047_v55, 0.0  ;;  %v791_v60 = vld [vmem:[%s9791_s1] sm:$0xff] }
  0x22   : > { %307 = vst [vmem:[#allocation2 + $0x160] sm:$0x3] %v9797_v3  ;;  %308 = vst [vmem:[#allocation2 + $0x168] sm:$0xff] %v9797_v3  ;;  %861 = vmatprep.subr.mxu0 %v9797_v3  ;;  %6116 = vmatprep.subr.mxu1 %v827_v39  ;;  %v559_v61 = vld [vmem:[#allocation2 + $0x2] sm:$0xff]  ;;  %v7065_v62 = vld [vmem:[%s6922_s29 + $0x70] sm:$0xff] }
  0x23   : > { %309 = vst [vmem:[#allocation2 + $0x170] sm:$0xff] %v9797_v3  ;;  %310 = vst [vmem:[#allocation2 + $0x178] sm:$0x3] %v9797_v3  ;;  %862 = vmatpush1.msra.mxu0 %v795_v42  ;;  %6117 = vmatpush3.msra.mxu1 %v827_v39  ;;  %v7068_v63 = vld [vmem:[%s6922_s29 + $0x78] sm:$0xff]  ;;  %v560_v0 = vld [vmem:[#allocation2 + $0xa] sm:$0xff]  ;;  %v364_v2 = vsel %vm349_vm0, %v7065_v62, 0.0 }
  0x24   : > { %311 = vst [vmem:[#allocation2 + $0x180] sm:$0xff] %v9797_v3  ;;  %312 = vst [vmem:[#allocation2 + $0x188] sm:$0xff] %v9797_v3  ;;  %863 = vmatprep.subr.mxu0 %v9797_v3  ;;  %6118 = vmatprep.subr.mxu1 %v826_v45  ;;  %v822_v1 = vld [vmem:[%s9791_s1 + $0xf8] sm:$0xff]  ;;  %v365_v4 = vsel %vm349_vm0, %v7068_v63, 0.0  ;;  %v7082_v6 = vld [vmem:[%s6922_s29 + $0x80] sm:$0xff] }
  0x25   : > { %313 = vst [vmem:[#allocation2 + $0x190] sm:$0x3] %v9797_v3  ;;  %314 = vst [vmem:[#allocation2 + $0x198] sm:$0xff] %v9797_v3  ;;  %864 = vmatpush1.msra.mxu0 %v794_v46  ;;  %6119 = vmatpush3.msra.mxu1 %v826_v45  ;;  %v5623_v5 = vld [vmem:[%s9791_s1 + $0x1f8] sm:$0xff]  ;;  %v7085_v7 = vld [vmem:[%s6922_s29 + $0x88] sm:$0xff]  ;;  %v366_v9 = vsel %vm349_vm0, %v7082_v6, 0.0 }
  0x26   : > { %315 = vst [vmem:[#allocation2 + $0x1a0] sm:$0xff] %v9797_v3  ;;  %316 = vst [vmem:[#allocation2 + $0x1a8] sm:$0x3] %v9797_v3  ;;  %865 = vmatprep.subr.mxu0 %v9797_v3  ;;  %6120 = vmatprep.subr.mxu1 %v825_v48  ;;  %v821_v8 = vld [vmem:[%s9791_s1 + $0xf0] sm:$0xff]  ;;  %v367_v10 = vsel %vm349_vm0, %v7085_v7, 0.0  ;;  %v7100_v13 = vld [vmem:[%s6922_s29 + $0x98] sm:$0xff] }
  0x27   : > { %383 = vst [vmem:[#allocation2 + $0x19] sm:$0xff] %v350_v19  ;;  %384 = vst [vmem:[#allocation2 + $0x21] sm:$0xff] %v351_v20  ;;  %866 = vmatpush1.msra.mxu0 %v793_v51  ;;  %6121 = vmatpush3.msra.mxu1 %v825_v48  ;;  %v7097_v12 = vld [vmem:[%s6922_s29 + $0x90] sm:$0xff]  ;;  %v369_v18 = vsel %vm349_vm0, %v7100_v13, 0.0  ;;  %v7112_v20 = vld [vmem:[%s6922_s29 + $0xa0] sm:$0xff] }
  0x28   : > { %385 = vst [vmem:[#allocation2 + $0x31] sm:$0xff] %v352_v25  ;;  %386 = vst [vmem:[#allocation2 + $0x39] sm:$0xff] %v353_v26  ;;  %867 = vmatprep.subr.mxu0 %v9797_v3  ;;  %6122 = vmatprep.subr.mxu1 %v824_v53  ;;  %v5622_v14 = vld [vmem:[%s9791_s1 + $0x1f0] sm:$0xff]  ;;  %v368_v15 = vsel %vm349_vm0, %v7097_v12, 0.0  ;;  %v820_v21 = vld [vmem:[%s9791_s1 + $0xe8] sm:$0xff]  ;;  %v370_v26 = vsel %vm349_vm0, %v7112_v20, 0.0 }
  0x29   : > { %387 = vst [vmem:[#allocation2 + $0x49] sm:$0xff] %v354_v31  ;;  %388 = vst [vmem:[#allocation2 + $0x51] sm:$0xff] %v355_v32  ;;  %868 = vmatpush1.msra.mxu0 %v792_v56  ;;  %6123 = vmatpush3.msra.mxu1 %v824_v53  ;;  %v5621_v24 = vld [vmem:[%s9791_s1 + $0x1e8] sm:$0xff]  ;;  %v7129_v30 = vld [vmem:[%s6922_s29 + $0xb0] sm:$0xff] }
  0x2a   : > { %389 = vst [vmem:[#allocation2 + $0x61] sm:$0xff] %v356_v37  ;;  %390 = vst [vmem:[#allocation2 + $0x69] sm:$0xff] %v357_v38  ;;  %869 = vmatprep.subr.mxu0 %v9797_v3  ;;  %6124 = vmatprep.subr.mxu1 %v823_v59  ;;  %v7121_v25 = vld [vmem:[%s6922_s29 + $0xa8] sm:$0xff]  ;;  %v7132_v31 = vld [vmem:[%s6922_s29 + $0xb8] sm:$0xff]  ;;  %v372_v36 = vsel %vm349_vm0, %v7129_v30, 0.0 }
  0x2b   : > { %391 = vst [vmem:[#allocation2 + $0x79] sm:$0xff] %v358_v43  ;;  %392 = vst [vmem:[#allocation2 + $0x81] sm:$0xff] %v359_v44  ;;  %870 = vmatpush1.msra.mxu0 %v791_v60  ;;  %6125 = vmatpush3.msra.mxu1 %v823_v59  ;;  %v371_v27 = vsel %vm349_vm0, %v7121_v25, 0.0  ;;  %v819_v32 = vld [vmem:[%s9791_s1 + $0xe0] sm:$0xff]  ;;  %v373_v37 = vsel %vm349_vm0, %v7132_v31, 0.0  ;;  %v818_v43 = vld [vmem:[%s9791_s1 + $0xd8] sm:$0xff] }
  0x2c   : > { %393 = vst [vmem:[#allocation2 + $0x91] sm:$0xff] %v360_v50  ;;  %394 = vst [vmem:[#allocation2 + $0x99] sm:$0xff] %v361_v52  ;;  %6126 = vmatprep.mubr.f32.mxu1 %v559_v61  ;;  %871 = vmatprep.subr.mxu0 %v9797_v3  ;;  %v5620_v38 = vld [vmem:[%s9791_s1 + $0x1e0] sm:$0xff]  ;;  %v5619_v44 = vld [vmem:[%s9791_s1 + $0x1d8] sm:$0xff] }
  0x2d   : > { %395 = vst [vmem:[#allocation2 + $0xa9] sm:$0xff] %v362_v57  ;;  %396 = vst [vmem:[#allocation2 + $0xb1] sm:$0xff] %v363_v58  ;;  %6127 = vmatmul.mubr.f32.vlgmr.msra.gmra.mxu1 %v560_v0  ;;  %1530 = vmatprep.subr.mxu1 %v9797_v3  ;;  %v7152_v42 = vld [vmem:[%s6922_s29 + $0xc0] sm:$0xff]  ;;  %v7162_v45 = vld [vmem:[%s6922_s29 + $0xc8] sm:$0xff] }
  0x2e   : > { %397 = vst [vmem:[#allocation2 + $0xc1] sm:$0xff] %v364_v2  ;;  %398 = vst [vmem:[#allocation2 + $0xc9] sm:$0xff] %v365_v4  ;;  %v561_v11 = vld [vmem:[#allocation2 + $0x1a] sm:$0xff]  ;;  %872 = vmatpush2.msra.mxu0 %v822_v1  ;;  %1531 = vmatpush1.msra.mxu1 %v5623_v5  ;;  %v562_v19 = vld [vmem:[#allocation2 + $0x22] sm:$0xff]  ;;  %v374_v46 = vsel %vm349_vm0, %v7152_v42, 0.0  ;;  %v375_v50 = vsel %vm349_vm0, %v7162_v45, 0.0 }
  0x2f   : > { %399 = vst [vmem:[#allocation2 + $0xd9] sm:$0xff] %v366_v9  ;;  %400 = vst [vmem:[#allocation2 + $0xe1] sm:$0xff] %v367_v10  ;;  %873 = vmatprep.subr.mxu0 %v9797_v3  ;;  %1532 = vmatprep.subr.mxu1 %v9797_v3  ;;  %v7138_v33 = vld [vmem:[#allocation2 + $0x32] sm:$0xff]  ;;  %v7149_v39 = vld [vmem:[#allocation2 + $0x3a] sm:$0xff] }
  0x30   : > { %401 = vst [vmem:[#allocation2 + $0xf1] sm:$0xff] %v368_v15  ;;  %402 = vst [vmem:[#allocation2 + $0xf9] sm:$0xff] %v369_v18  ;;  %874 = vmatpush2.msra.mxu0 %v821_v8  ;;  %6129 = vmatprep.mubr.f32.mxu1 %v561_v11  ;;  %v817_v48 = vld [vmem:[%s9791_s1 + $0xd0] sm:$0xff]  ;;  %v7180_v53 = vld [vmem:[%s6922_s29 + $0xd8] sm:$0xff] }
  0x31   : > { %1533 = vmatpush1.msra.mxu1 %v5622_v14  ;;  %875 = vmatprep.subr.mxu0 %v9797_v3  ;;  %403 = vst [vmem:[#allocation2 + $0x109] sm:$0xff] %v370_v26  ;;  %404 = vst [vmem:[#allocation2 + $0x111] sm:$0xff] %v371_v27  ;;  %v7174_v51 = vld [vmem:[#allocation2 + $0x4a] sm:$0xff]  ;;  %v377_v58 = vsel %vm349_vm0, %v7180_v53, 0.0  ;;  %v7191_v59 = vld [vmem:[#allocation2 + $0x52] sm:$0xff] }
  0x32   : > { %6130 = vmatmul.mubr.f32.gmra.mxu1 %v562_v19  ;;  %1534 = vmatprep.subr.mxu1 %v9797_v3  ;;  %405 = vst [vmem:[#allocation2 + $0x121] sm:$0xff] %v372_v36  ;;  %406 = vst [vmem:[#allocation2 + $0x129] sm:$0xff] %v373_v37  ;;  %v7177_v52 = vld [vmem:[%s6922_s29 + $0xd0] sm:$0xff]  ;;  %v7194_v60 = vld [vmem:[%s6922_s29 + $0xe0] sm:$0xff] }
  0x33   : > { %876 = vmatpush2.msra.mxu0 %v820_v21  ;;  %1535 = vmatpush1.msra.mxu1 %v5621_v24  ;;  %407 = vst [vmem:[#allocation2 + $0x139] sm:$0xff] %v374_v46  ;;  %408 = vst [vmem:[#allocation2 + $0x141] sm:$0xff] %v375_v50  ;;  %v5618_v56 = vld [vmem:[%s9791_s1 + $0x1d0] sm:$0xff]  ;;  %v376_v57 = vsel %vm349_vm0, %v7177_v52, 0.0  ;;  %v816_v61 = vld [vmem:[%s9791_s1 + $0xc8] sm:$0xff]  ;;  %v378_v2 = vsel %vm349_vm0, %v7194_v60, 0.0 }
  0x34   : > { %877 = vmatprep.subr.mxu0 %v9797_v3  ;;  %1536 = vmatprep.subr.mxu1 %v9797_v3  ;;  %409 = vst [vmem:[#allocation2 + $0x151] sm:$0xff] %v376_v57  ;;  %410 = vst [vmem:[#allocation2 + $0x159] sm:$0xff] %v377_v58  ;;  %v5617_v0 = vld [vmem:[%s9791_s1 + $0x1c8] sm:$0xff]  ;;  %v815_v5 = vld [vmem:[%s9791_s1 + $0xc0] sm:$0xff] }
  0x35   : > { %878 = vmatpush2.msra.mxu0 %v819_v32  ;;  %6132 = vmatprep.mubr.f32.mxu1 %v7138_v33  ;;  %v7204_v1 = vld [vmem:[%s6922_s29 + $0xe8] sm:$0xff]  ;;  %411 = vst [vmem:[#allocation2 + $0x169] sm:$0xff] %v378_v2  ;;  %v5616_v9 = vld [vmem:[%s9791_s1 + $0x1c0] sm:$0xff]  ;;  %v814_v11 = vld [vmem:[%s9791_s1 + $0xb8] sm:$0xff] }
  0x36   : > { %1537 = vmatpush1.msra.mxu1 %v5620_v38  ;;  %879 = vmatprep.subr.mxu0 %v9797_v3  ;;  %v379_v4 = vsel %vm349_vm0, %v7204_v1, 0.0  ;;  %v7216_v8 = vld [vmem:[#allocation2 + $0x62] sm:$0xff]  ;;  %v7223_v10 = vld [vmem:[#allocation2 + $0x6a] sm:$0xff]  ;;  %v5615_v14 = vld [vmem:[%s9791_s1 + $0x1b8] sm:$0xff] }
  0x37   : > { %6133 = vmatmul.mubr.f32.gmra.mxu1 %v7149_v39  ;;  %1538 = vmatprep.subr.mxu1 %v9797_v3  ;;  %412 = vst [vmem:[#allocation2 + $0x171] sm:$0xff] %v379_v4  ;;  %v813_v15 = vld [vmem:[%s9791_s1 + $0xb0] sm:$0xff]  ;;  %v7238_v18 = vld [vmem:[#allocation2 + $0x7a] sm:$0xff]  ;;  %v7245_v21 = vld [vmem:[#allocation2 + $0x82] sm:$0xff] }
  0x38   : > { %880 = vmatpush2.msra.mxu0 %v818_v43  ;;  %1539 = vmatpush1.msra.mxu1 %v5619_v44  ;;  %v5614_v19 = vld [vmem:[%s9791_s1 + $0x1b0] sm:$0xff]  ;;  %v812_v24 = vld [vmem:[%s9791_s1 + $0xa8] sm:$0xff]  ;;  %v811_v27 = vld [vmem:[%s9791_s1 + $0xa0] sm:$0xff] }
  0x39   : > { %881 = vmatprep.subr.mxu0 %v9797_v3  ;;  %1540 = vmatprep.subr.mxu1 %v9797_v3  ;;  %v5613_v26 = vld [vmem:[%s9791_s1 + $0x1a8] sm:$0xff]  ;;  %v7260_v32 = vld [vmem:[#allocation2 + $0x92] sm:$0xff]  ;;  %v5612_v36 = vld [vmem:[%s9791_s1 + $0x1a0] sm:$0xff] }
  0x3a   : > { %882 = vmatpush2.msra.mxu0 %v817_v48  ;;  %6135 = vmatprep.mubr.f32.mxu1 %v7174_v51  ;;  %v7267_v37 = vld [vmem:[#allocation2 + $0x9a] sm:$0xff]  ;;  %v809_v44 = vld [vmem:[%s9791_s1 + $0x90] sm:$0xff]  ;;  %v5609_v57 = vld [vmem:[%s9791_s1 + $0x188] sm:$0xff] }
  0x3b   : > { %1541 = vmatpush1.msra.mxu1 %v5618_v56  ;;  %883 = vmatprep.subr.mxu0 %v9797_v3  ;;  %v810_v38 = vld [vmem:[%s9791_s1 + $0x98] sm:$0xff]  ;;  %v7282_v46 = vld [vmem:[#allocation2 + $0xaa] sm:$0xff]  ;;  %v807_v58 = vld [vmem:[%s9791_s1 + $0x80] sm:$0xff] }
  0x3c   : > { %6136 = vmatmul.mubr.f32.gmra.mxu1 %v7191_v59  ;;  %1542 = vmatprep.subr.mxu1 %v9797_v3  ;;  %v5611_v43 = vld [vmem:[%s9791_s1 + $0x198] sm:$0xff]  ;;  %v5610_v48 = vld [vmem:[%s9791_s1 + $0x190] sm:$0xff]  ;;  %v808_v56 = vld [vmem:[%s9791_s1 + $0x88] sm:$0xff] }
  0x3d   : > { %884 = vmatpush2.msra.mxu0 %v816_v61  ;;  %1543 = vmatpush1.msra.mxu1 %v5617_v0  ;;  %v7289_v50 = vld [vmem:[#allocation2 + $0xb2] sm:$0xff]  ;;  %v487_v61 = vld [vmem:[#allocation2 + $0x1] sm:$0xff]  ;;  %v7311_v4 = vld [vmem:[#allocation2 + $0xca] sm:$0xff] }
  0x3e   : > { %885 = vmatprep.subr.mxu0 %v9797_v3  ;;  %1544 = vmatprep.subr.mxu1 %v9797_v3  ;;  %v7304_v0 = vld [vmem:[#allocation2 + $0xc2] sm:$0xff] }
  0x3f   : > { %886 = vmatpush2.msra.mxu0 %v815_v5  ;;  %6138 = vmatprep.mubr.f32.mxu1 %v7216_v8  ;;  %v5608_v2 = vld [vmem:[%s9791_s1 + $0x180] sm:$0xff]  ;;  %v5655_v5 = vld [vmem:[%s9791_s1 + $0x2f8] sm:$0xff] }
  0x40   : > { %1545 = vmatpush1.msra.mxu1 %v5616_v9  ;;  %887 = vmatprep.subr.mxu0 %v9797_v3  ;;  %v5639_v9 = vld [vmem:[%s9791_s1 + $0x278] sm:$0xff] }
  0x41   : > { %6139 = vmatmul.mubr.f32.gmra.mxu1 %v7223_v10  ;;  %1546 = vmatprep.subr.mxu1 %v9797_v3 }
  0x42   : > { %888 = vmatpush2.msra.mxu0 %v814_v11  ;;  %1547 = vmatpush1.msra.mxu1 %v5615_v14  ;;  %v488_v11 = vld [vmem:[#allocation2 + $0x9] sm:$0xff]  ;;  %v7323_v14 = vld [vmem:[#allocation2 + $0xda] sm:$0xff] }
  0x43   : > { %889 = vmatprep.subr.mxu0 %v9797_v3  ;;  %1548 = vmatprep.subr.mxu1 %v9797_v3 }
  0x44   : > { %890 = vmatpush2.msra.mxu0 %v813_v15  ;;  %6141 = vmatprep.mubr.f32.mxu1 %v7238_v18  ;;  %v5638_v15 = vld [vmem:[%s9791_s1 + $0x270] sm:$0xff] }
  0x45   : > { %1549 = vmatpush1.msra.mxu1 %v5614_v19  ;;  %891 = vmatprep.subr.mxu0 %v9797_v3  ;;  %v7328_v19 = vld [vmem:[#allocation2 + $0xe2] sm:$0xff] }
  0x46   : > { %6142 = vmatmul.mubr.f32.gmra.mxu1 %v7245_v21  ;;  %1550 = vmatprep.subr.mxu1 %v9797_v3 }
  0x47   : > { %892 = vmatpush2.msra.mxu0 %v812_v24  ;;  %1551 = vmatpush1.msra.mxu1 %v5613_v26  ;;  %v5637_v24 = vld [vmem:[%s9791_s1 + $0x268] sm:$0xff]  ;;  %v7335_v26 = vld [vmem:[#allocation2 + $0xf2] sm:$0xff] }
  0x48   : > { %893 = vmatprep.subr.mxu0 %v9797_v3  ;;  %1552 = vmatprep.subr.mxu1 %v9797_v3 }
  0x49   : > { %894 = vmatpush2.msra.mxu0 %v811_v27  ;;  %6144 = vmatprep.mubr.f32.mxu1 %v7260_v32  ;;  %v5654_v27 = vld [vmem:[%s9791_s1 + $0x2f0] sm:$0xff] }
  0x4a   : > { %1553 = vmatpush1.msra.mxu1 %v5612_v36  ;;  %895 = vmatprep.subr.mxu0 %v9797_v3  ;;  %v5636_v36 = vld [vmem:[%s9791_s1 + $0x260] sm:$0xff] }
  0x4b   : > { %6145 = vmatmul.mubr.f32.gmra.mxu1 %v7267_v37  ;;  %1554 = vmatprep.subr.mxu1 %v9797_v3 }
  0x4c   : > { %896 = vmatpush2.msra.mxu0 %v810_v38  ;;  %1555 = vmatpush1.msra.mxu1 %v5611_v43  ;;  %v7348_v38 = vld [vmem:[#allocation2 + $0x18] sm:$0xff] }
  0x4d   : > { %897 = vmatprep.subr.mxu0 %v9797_v3  ;;  %1556 = vmatprep.subr.mxu1 %v9797_v3  ;;  %v7351_v43 = vld [vmem:[#allocation2 + $0xfa] sm:$0xff] }
  0x4e   : > { %898 = vmatpush2.msra.mxu0 %v809_v44  ;;  %6147 = vmatprep.mubr.f32.mxu1 %v7282_v46  ;;  %v5635_v44 = vld [vmem:[%s9791_s1 + $0x258] sm:$0xff] }
  0x4f   : > { %1557 = vmatpush1.msra.mxu1 %v5610_v48  ;;  %899 = vmatprep.subr.mxu0 %v9797_v3  ;;  %v7360_v48 = vld [vmem:[#allocation2 + $0x10a] sm:$0xff] }
  0x50   : > { %6148 = vmatmul.mubr.f32.gmra.mxu1 %v7289_v50  ;;  %1558 = vmatprep.subr.mxu1 %v9797_v3  ;;  %9849 = vst [vmem:[#allocation5_spill] sm:$0xff] %v7360_v48 }
  0x51   : > { %900 = vmatpush2.msra.mxu0 %v808_v56  ;;  %1559 = vmatpush1.msra.mxu1 %v5609_v57  ;;  %v5634_v56 = vld [vmem:[%s9791_s1 + $0x250] sm:$0xff]  ;;  %v7365_v57 = vld [vmem:[#allocation2 + $0x20] sm:$0xff] }
  0x52   : > { %901 = vmatprep.subr.mxu0 %v9797_v3  ;;  %1560 = vmatprep.subr.mxu1 %v9797_v3 }
  0x53   : > { %902 = vmatpush2.msra.mxu0 %v807_v58  ;;  %903 = vmatprep.mubr.f32.mxu0 %v487_v61  ;;  %v7367_v58 = vld [vmem:[#allocation2 + $0x112] sm:$0xff]  ;;  %v5633_v61 = vld [vmem:[%s9791_s1 + $0x248] sm:$0xff] }
  0x54   : > { %6150 = vmatprep.mubr.f32.mxu1 %v7304_v0  ;;  %1561 = vmatpush1.msra.mxu1 %v5608_v2  ;;  %9850 = vst [vmem:[#allocation6_spill] sm:$0xff] %v7367_v58  ;;  %v7376_v2 = vld [vmem:[#allocation2 + $0x122] sm:$0xff] }
  0x55   : > { %904 = vmatmul.mubr.f32.vlgmr.msra.gmra.mxu0 %v9797_v3  ;;  %6151 = vmatmul.mubr.f32.gmra.mxu1 %v7311_v4  ;;  %9851 = vst [vmem:[#allocation7_spill] sm:$0xff] %v7376_v2 }
  0x56   : > { %1562 = vmatprep.subr.mxu1 %v9797_v3  ;;  %6174 = vmatprep.subr.mxu0 %v5655_v5 }
  0x57   : > { %1563 = vmatpush2.msra.mxu1 %v5639_v9  ;;  %6175 = vmatpush3.msra.mxu0 %v5655_v5  ;;  %v5653_v5 = vld [vmem:[%s9791_s1 + $0x2e8] sm:$0xff]  ;;  %v5632_v9 = vld [vmem:[%s9791_s1 + $0x240] sm:$0xff] }
  0x58   : > { %1564 = vmatprep.subr.mxu1 %v9797_v3  ;;  %908 = vmatprep.mubr.f32.mxu0 %v488_v11  ;;  %v7389_v11 = vld [vmem:[#allocation2 + $0x30] sm:$0xff] }
  0x59   : > { %6153 = vmatprep.mubr.f32.mxu1 %v7323_v14  ;;  %1565 = vmatpush2.msra.mxu1 %v5638_v15  ;;  %v7392_v15 = vld [vmem:[#allocation2 + $0x12a] sm:$0xff] }
  0x5a   : > { %909 = vmatmul.mubr.f32.gmra.mxu0 %v9797_v3  ;;  %6154 = vmatmul.mubr.f32.gmra.mxu1 %v7328_v19  ;;  %9852 = vst [vmem:[#allocation8_spill] sm:$0xff] %v7392_v15 }
  0x5b   : > { %1566 = vmatprep.subr.mxu1 %v9797_v3  ;;  %6693 = vmatprep.mubr.msk.f32.mxu0 %vm349_vm0, %v6935_v16 }
  0x5c   : > { %1567 = vmatpush2.msra.mxu1 %v5637_v24  ;;  %6156 = vmatprep.mubr.f32.mxu1 %v7335_v26  ;;  %v5631_v24 = vld [vmem:[%s9791_s1 + $0x238] sm:$0xff] }
  0x5d   : > { %1568 = vmatprep.subr.mxu1 %v9797_v3  ;;  %6176 = vmatprep.subr.mxu0 %v5654_v27 }
  0x5e   : > { %1569 = vmatpush2.msra.mxu1 %v5636_v36  ;;  %914 = vmatmul.mubr.f32.gmra.mxu0 %v7348_v38  ;;  %v5630_v36 = vld [vmem:[%s9791_s1 + $0x230] sm:$0xff] }
  0x5f   : > { %6157 = vmatmul.mubr.f32.gmra.mxu1 %v7351_v43  ;;  %1570 = vmatprep.subr.mxu1 %v9797_v3 }
  0x60   : > { %1571 = vmatpush2.msra.mxu1 %v5635_v44  ;;  %6177 = vmatpush3.msra.mxu0 %v5654_v27  ;;  %v7401_v27 = vld [vmem:[#allocation2 + $0x13a] sm:$0xff]  ;;  %v7407_v44 = vld [vmem:[%s6922_s29 + $0xf0] sm:$0xff] }
  0x61   : > { %1572 = vmatprep.subr.mxu1 %v9797_v3  ;;  %6694 = vmatprep.mubr.msk.f32.mxu0 %vm349_vm0, %v6938_v17  ;;  %9853 = vst [vmem:[#allocation9_spill] sm:$0xff] %v7401_v27 }
  0x62   : > { %6159 = vmatprep.mubr.f32.mxu1 %v7360_v48  ;;  %1573 = vmatpush2.msra.mxu1 %v5634_v56  ;;  %v7409_v56 = vld [vmem:[#allocation2 + $0x38] sm:$0xff] }
  0x63   : > { %919 = vmatmul.mubr.f32.gmra.mxu0 %v7365_v57  ;;  %6160 = vmatmul.mubr.f32.gmra.mxu1 %v7367_v58  ;;  %v5627_v58 = vld [vmem:[%s9791_s1 + $0x218] sm:$0xff] }
  0x64   : > { %1574 = vmatprep.subr.mxu1 %v9797_v3  ;;  %6695 = vmatprep.mubr.msk.f32.mxu0 %vm349_vm0, %v6952_v22  ;;  %v7459_v48 = vld [vmem:[#allocation2 + $0x172] sm:$0xff] }
  0x65   : > { %1575 = vmatpush2.msra.mxu1 %v5633_v61  ;;  %6162 = vmatprep.mubr.f32.mxu1 %v7376_v2  ;;  %v7411_v61 = vld [vmem:[#allocation2 + $0x142] sm:$0xff]  ;;  %v7443_v2 = vld [vmem:[#allocation2 + $0x15a] sm:$0xff]  ;;  %9858 = vst [vmem:[#allocation13_spill] sm:$0xff] %v7459_v48 }
  0x66   : > { %1576 = vmatprep.subr.mxu1 %v9797_v3  ;;  %6178 = vmatprep.subr.mxu0 %v5653_v5  ;;  %9854 = vst [vmem:[#allocation10_spill] sm:$0xff] %v7411_v61 }
  0x67   : > { %1577 = vmatpush2.msra.mxu1 %v5632_v9  ;;  %924 = vmatmul.mubr.f32.gmra.mxu0 %v7389_v11  ;;  %v380_v9 = vsel %vm349_vm0, %v7407_v44, 0.0 }
  0x68   : > { %6163 = vmatmul.mubr.f32.gmra.mxu1 %v7392_v15  ;;  %1578 = vmatprep.subr.mxu1 %v9797_v3  ;;  %413 = vst [vmem:[#allocation2 + $0x181] sm:$0xff] %v380_v9  ;;  %v7430_v15 = vld [vmem:[%s6922_s29 + $0xf8] sm:$0xff]  ;;  %v9856_v9 = vmov 0.0  }
  0x69   : > { %1579 = vmatpush2.msra.mxu1 %v5631_v24  ;;  %6179 = vmatpush3.msra.mxu0 %v5653_v5  ;;  %v5629_v5 = vld [vmem:[%s9791_s1 + $0x228] sm:$0xff]  ;;  %v7422_v24 = vld [vmem:[#allocation2 + $0x152] sm:$0xff] }
  0x6a   : > { %1580 = vmatprep.subr.mxu1 %v9797_v3  ;;  %6696 = vmatprep.mubr.msk.f32.mxu0 %vm349_vm0, %v6955_v23  ;;  %9855 = vst [vmem:[#allocation11_spill] sm:$0xff] %v7422_v24  ;;  %v5652_v3 = vld [vmem:[%s9791_s1 + $0x2e0] sm:$0xff] }
  0x6b   : > { %6165 = vmatprep.mubr.f32.mxu1 %v7401_v27  ;;  %1581 = vmatpush2.msra.mxu1 %v5630_v36  ;;  %v5628_v36 = vld [vmem:[%s9791_s1 + $0x220] sm:$0xff]  ;;  %v7438_v27 = vld [vmem:[#allocation2 + $0x48] sm:$0xff] }
  0x6c   : > { %929 = vmatmul.mubr.f32.gmra.mxu0 %v7409_v56  ;;  %6166 = vmatmul.mubr.f32.gmra.mxu1 %v7411_v61  ;;  %v381_v61 = vsel %vm349_vm0, %v7430_v15, 0.0 }
  0x6d   : > { %1582 = vmatprep.subr.mxu1 %v9856_v9  ;;  %6697 = vmatprep.mubr.msk.f32.mxu0 %vm349_vm0, %v6969_v28  ;;  %414 = vst [vmem:[#allocation2 + $0x189] sm:$0xff] %v381_v61  ;;  %v5626_v61 = vld [vmem:[%s9791_s1 + $0x210] sm:$0xff] }
  0x6e   : > { %1583 = vmatpush2.msra.mxu1 %v5629_v5  ;;  %6168 = vmatprep.mubr.f32.mxu1 %v7422_v24  ;;  %v7452_v5 = vld [vmem:[#allocation2 + $0x16a] sm:$0xff] }
  0x6f   : > { %1584 = vmatprep.subr.mxu1 %v9856_v9  ;;  %6180 = vmatprep.subr.mxu0 %v5652_v3  ;;  %9857 = vst [vmem:[#allocation12_spill] sm:$0xff] %v7452_v5  ;;  %v7457_v24 = vld [vmem:[#allocation2 + $0x50] sm:$0xff] }
  0x70   : > { %1585 = vmatpush2.msra.mxu1 %v5628_v36  ;;  %934 = vmatmul.mubr.f32.gmra.mxu0 %v7438_v27  ;;  %v5625_v36 = vld [vmem:[%s9791_s1 + $0x208] sm:$0xff] }
  0x71   : > { %6169 = vmatmul.mubr.f32.gmra.mxu1 %v7443_v2  ;;  %1586 = vmatprep.subr.mxu1 %v9856_v9 }
  0x72   : > { %1587 = vmatpush2.msra.mxu1 %v5627_v58  ;;  %6181 = vmatpush3.msra.mxu0 %v5652_v3  ;;  %v5651_v3 = vld [vmem:[%s9791_s1 + $0x2d8] sm:$0xff]  ;;  %v5624_v58 = vld [vmem:[%s9791_s1 + $0x200] sm:$0xff] }
  0x73   : > { %1588 = vmatprep.subr.mxu1 %v9856_v9  ;;  %6698 = vmatprep.mubr.msk.f32.mxu0 %vm349_vm0, %v6972_v29 }
  0x74   : > { %6171 = vmatprep.mubr.f32.mxu1 %v7452_v5  ;;  %1589 = vmatpush2.msra.mxu1 %v5626_v61  ;;  %v7479_v61 = vld [vmem:[#allocation2 + $0x60] sm:$0xff]  ;;  %v7489_v5 = vld [vmem:[#allocation2 + $0x68] sm:$0xff] }
  0x75   : > { %939 = vmatmul.mubr.f32.gmra.mxu0 %v7457_v24  ;;  %6172 = vmatmul.mubr.f32.gmra.mxu1 %v7459_v48  ;;  %v5650_v48 = vld [vmem:[%s9791_s1 + $0x2d0] sm:$0xff] }
  0x76   : > { %1590 = vmatprep.subr.mxu1 %v9856_v9  ;;  %6699 = vmatprep.mubr.msk.f32.mxu0 %vm349_vm0, %v6986_v34 }
  0x77   : > { %1591 = vmatpush2.msra.mxu1 %v5625_v36  ;;  %6700 = vmatprep.mubr.msk.f32.mxu1 %vm349_vm0, %v6935_v16  ;;  %v5671_v36 = vld [vmem:[%s9791_s1 + $0x378] sm:$0xff]  ;;  %v5649_v16 = vld [vmem:[%s9791_s1 + $0x2c8] sm:$0xff] }
  0x78   : > { %1592 = vmatprep.subr.mxu1 %v9856_v9  ;;  %6182 = vmatprep.subr.mxu0 %v5651_v3 }
  0x79   : > { %1593 = vmatpush2.msra.mxu1 %v5624_v58  ;;  %944 = vmatmul.mubr.f32.gmra.mxu0 %v7479_v61  ;;  %v7538_v58 = vld [vmem:[#allocation2 + $0x90] sm:$0xff] }
  0x7a   : > { %1595 = vmatmul.mubr.f32.vlgmr.msra.gmra.mxu1 %v7348_v38  ;;  %6183 = vmatpush3.msra.mxu0 %v5651_v3  ;;  %v7506_v38 = vld [vmem:[#allocation2 + $0x78] sm:$0xff]  ;;  %v7523_v3 = vld [vmem:[#allocation2 + $0x80] sm:$0xff] }
  0x7b   : > { %6701 = vmatprep.mubr.msk.f32.mxu0 %vm349_vm0, %v6989_v35  ;;  %6702 = vmatprep.mubr.msk.f32.mxu1 %vm349_vm0, %v6938_v17  ;;  %v5670_v17 = vld [vmem:[%s9791_s1 + $0x370] sm:$0xff] }
  0x7c   : > { %6184 = vmatprep.subr.mxu0 %v5650_v48  ;;  %2221 = vmatprep.subr.mxu1 %v9856_v9  ;;  %v7513_v9 = vld [vmem:[#allocation2] sm:$0xff] }
  0x7d   : > { %949 = vmatmul.mubr.f32.gmra.mxu0 %v7489_v5  ;;  %2222 = vmatpush1.msra.mxu1 %v5671_v36  ;;  %v5647_v36 = vld [vmem:[%s9791_s1 + $0x2b8] sm:$0xff] }
  0x7e   : > { %1600 = vmatmul.mubr.f32.gmra.mxu1 %v7365_v57  ;;  %6703 = vmatprep.mubr.msk.f32.mxu0 %vm349_vm0, %v7003_v40  ;;  %v5648_v57 = vld [vmem:[%s9791_s1 + $0x2c0] sm:$0xff] }
  0x7f   : > { %6704 = vmatprep.mubr.msk.f32.mxu1 %vm349_vm0, %v6952_v22  ;;  %6185 = vmatpush3.msra.mxu0 %v5650_v48  ;;  %v5669_v22 = vld [vmem:[%s9791_s1 + $0x368] sm:$0xff]  ;;  %v5668_v48 = vld [vmem:[%s9791_s1 + $0x360] sm:$0xff] }
  0x80   : > { %6186 = vmatprep.subr.mxu0 %v5649_v16  ;;  %2223 = vmatprep.subr.mxu1 %v7513_v9 }
  0x81   : > { %954 = vmatmul.mubr.f32.gmra.mxu0 %v7506_v38  ;;  %2224 = vmatpush1.msra.mxu1 %v5670_v17  ;;  %v5646_v17 = vld [vmem:[%s9791_s1 + $0x2b0] sm:$0xff] }
  0x82   : > { %1605 = vmatmul.mubr.f32.gmra.mxu1 %v7389_v11  ;;  %6705 = vmatprep.mubr.msk.f32.mxu0 %vm349_vm0, %v7006_v41 }
  0x83   : > { %6706 = vmatprep.mubr.msk.f32.mxu1 %vm349_vm0, %v6955_v23  ;;  %6187 = vmatpush3.msra.mxu0 %v5649_v16  ;;  %v5667_v23 = vld [vmem:[%s9791_s1 + $0x358] sm:$0xff]  ;;  %v5666_v16 = vld [vmem:[%s9791_s1 + $0x350] sm:$0xff] }
  0x84   : > { %2225 = vmatprep.subr.mxu1 %v7513_v9  ;;  %6188 = vmatprep.subr.mxu0 %v5648_v57 }
  0x85   : > { %959 = vmatmul.mubr.f32.gmra.mxu0 %v7523_v3  ;;  %2226 = vmatpush1.msra.mxu1 %v5669_v22  ;;  %v5664_v22 = vld [vmem:[%s9791_s1 + $0x340] sm:$0xff] }
  0x86   : > { %1610 = vmatmul.mubr.f32.gmra.mxu1 %v7409_v56  ;;  %6707 = vmatprep.mubr.msk.f32.mxu0 %vm349_vm0, %v7024_v47 }
  0x87   : > { %6708 = vmatprep.mubr.msk.f32.mxu1 %vm349_vm0, %v6969_v28  ;;  %2227 = vmatprep.subr.mxu1 %v7513_v9  ;;  %v7554_v28 = vld [vmem:[#allocation2 + $0x98] sm:$0xff] }
  0x88   : > { %6189 = vmatpush3.msra.mxu0 %v5648_v57  ;;  %2228 = vmatpush1.msra.mxu1 %v5668_v48  ;;  %v7569_v57 = vld [vmem:[#allocation2 + $0xa8] sm:$0xff]  ;;  %v7584_v48 = vld [vmem:[#allocation2 + $0xb0] sm:$0xff] }
  0x89   : > { %964 = vmatmul.mubr.f32.gmra.mxu0 %v7538_v58  ;;  %2229 = vmatprep.subr.mxu1 %v7513_v9 }
  0x8a   : > { %1615 = vmatmul.mubr.f32.gmra.mxu1 %v7438_v27  ;;  %6709 = vmatprep.mubr.msk.f32.mxu0 %vm349_vm0, %v7030_v49 }
  0x8b   : > { %6710 = vmatprep.mubr.msk.f32.mxu1 %vm349_vm0, %v6972_v29  ;;  %2230 = vmatpush1.msra.mxu1 %v5667_v23  ;;  %v5665_v29 = vld [vmem:[%s9791_s1 + $0x348] sm:$0xff] }
  0x8c   : > { %6190 = vmatprep.subr.mxu0 %v5647_v36  ;;  %2231 = vmatprep.subr.mxu1 %v7513_v9  ;;  %v5645_v23 = vld [vmem:[%s9791_s1 + $0x2a8] sm:$0xff] }
  0x8d   : > { %969 = vmatmul.mubr.f32.gmra.mxu0 %v7554_v28  ;;  %2232 = vmatpush1.msra.mxu1 %v5666_v16  ;;  %v5644_v16 = vld [vmem:[%s9791_s1 + $0x2a0] sm:$0xff] }
  0x8e   : > { %1620 = vmatmul.mubr.f32.gmra.mxu1 %v7457_v24  ;;  %6711 = vmatprep.mubr.msk.f32.mxu0 %vm349_vm0, %v7044_v54 }
  0x8f   : > { %6712 = vmatprep.mubr.msk.f32.mxu1 %vm349_vm0, %v6986_v34  ;;  %6191 = vmatpush3.msra.mxu0 %v5647_v36  ;;  %v5663_v34 = vld [vmem:[%s9791_s1 + $0x338] sm:$0xff]  ;;  %v5662_v36 = vld [vmem:[%s9791_s1 + $0x330] sm:$0xff] }
  0x90   : > { %2233 = vmatprep.subr.mxu1 %v7513_v9  ;;  %6192 = vmatprep.subr.mxu0 %v5646_v17 }
  0x91   : > { %974 = vmatmul.mubr.f32.gmra.mxu0 %v7569_v57  ;;  %2234 = vmatpush1.msra.mxu1 %v5665_v29  ;;  %v5660_v29 = vld [vmem:[%s9791_s1 + $0x320] sm:$0xff] }
  0x92   : > { %1625 = vmatmul.mubr.f32.gmra.mxu1 %v7479_v61  ;;  %6713 = vmatprep.mubr.msk.f32.mxu0 %vm349_vm0, %v7047_v55 }
  0x93   : > { %6714 = vmatprep.mubr.msk.f32.mxu1 %vm349_vm0, %v6989_v35  ;;  %2235 = vmatprep.subr.mxu1 %v7513_v9  ;;  %v7600_v35 = vld [vmem:[#allocation2 + $0xc0] sm:$0xff] }
  0x94   : > { %6193 = vmatpush3.msra.mxu0 %v5646_v17  ;;  %2236 = vmatpush1.msra.mxu1 %v5664_v22  ;;  %v7615_v17 = vld [vmem:[#allocation2 + $0xc8] sm:$0xff]  ;;  %v7630_v22 = vld [vmem:[#allocation2 + $0xd8] sm:$0xff] }
  0x95   : > { %979 = vmatmul.mubr.f32.gmra.mxu0 %v7584_v48  ;;  %2237 = vmatprep.subr.mxu1 %v7513_v9 }
  0x96   : > { %1630 = vmatmul.mubr.f32.gmra.mxu1 %v7489_v5  ;;  %6715 = vmatprep.mubr.msk.f32.mxu0 %vm349_vm0, %v7065_v62 }
  0x97   : > { %6716 = vmatprep.mubr.msk.f32.mxu1 %vm349_vm0, %v7003_v40  ;;  %2238 = vmatpush1.msra.mxu1 %v5663_v34  ;;  %v5661_v40 = vld [vmem:[%s9791_s1 + $0x328] sm:$0xff]  ;;  %v5643_v34 = vld [vmem:[%s9791_s1 + $0x298] sm:$0xff] }
  0x98   : > { %6194 = vmatprep.subr.mxu0 %v5645_v23  ;;  %2239 = vmatprep.subr.mxu1 %v7513_v9 }
  0x99   : > { %984 = vmatmul.mubr.f32.gmra.mxu0 %v7600_v35  ;;  %2240 = vmatpush1.msra.mxu1 %v5662_v36  ;;  %v5642_v36 = vld [vmem:[%s9791_s1 + $0x290] sm:$0xff] }
  0x9a   : > { %1635 = vmatmul.mubr.f32.gmra.mxu1 %v7506_v38  ;;  %6717 = vmatprep.mubr.msk.f32.mxu0 %vm349_vm0, %v7068_v63 }
  0x9b   : > { %6718 = vmatprep.mubr.msk.f32.mxu1 %vm349_vm0, %v7006_v41  ;;  %6195 = vmatpush3.msra.mxu0 %v5645_v23  ;;  %v5659_v41 = vld [vmem:[%s9791_s1 + $0x318] sm:$0xff]  ;;  %v5658_v23 = vld [vmem:[%s9791_s1 + $0x310] sm:$0xff] }
  0x9c   : > { %2241 = vmatprep.subr.mxu1 %v7513_v9  ;;  %6196 = vmatprep.subr.mxu0 %v5644_v16 }
  0x9d   : > { %989 = vmatmul.mubr.f32.gmra.mxu0 %v7615_v17  ;;  %2242 = vmatpush1.msra.mxu1 %v5661_v40  ;;  %v5656_v40 = vld [vmem:[%s9791_s1 + $0x300] sm:$0xff] }
  0x9e   : > { %1640 = vmatmul.mubr.f32.gmra.mxu1 %v7523_v3  ;;  %6719 = vmatprep.mubr.msk.f32.mxu0 %vm349_vm0, %v7082_v6 }
  0x9f   : > { %6720 = vmatprep.mubr.msk.f32.mxu1 %vm349_vm0, %v7024_v47  ;;  %2243 = vmatprep.subr.mxu1 %v7513_v9  ;;  %v7646_v47 = vld [vmem:[#allocation2 + $0xe0] sm:$0xff] }
  0xa0   : > { %6197 = vmatpush3.msra.mxu0 %v5644_v16  ;;  %2244 = vmatpush1.msra.mxu1 %v5660_v29  ;;  %v7661_v16 = vld [vmem:[#allocation2 + $0xf0] sm:$0xff]  ;;  %v7676_v29 = vld [vmem:[#allocation2 + $0xf8] sm:$0xff] }
  0xa1   : > { %994 = vmatmul.mubr.f32.gmra.mxu0 %v7630_v22  ;;  %2245 = vmatprep.subr.mxu1 %v7513_v9 }
  0xa2   : > { %1645 = vmatmul.mubr.f32.gmra.mxu1 %v7538_v58  ;;  %6721 = vmatprep.mubr.msk.f32.mxu0 %vm349_vm0, %v7085_v7 }
  0xa3   : > { %6722 = vmatprep.mubr.msk.f32.mxu1 %vm349_vm0, %v7030_v49  ;;  %2246 = vmatpush1.msra.mxu1 %v5659_v41  ;;  %v5657_v49 = vld [vmem:[%s9791_s1 + $0x308] sm:$0xff] }
  0xa4   : > { %6198 = vmatprep.subr.mxu0 %v5643_v34  ;;  %2247 = vmatprep.subr.mxu1 %v7513_v9  ;;  %v5641_v41 = vld [vmem:[%s9791_s1 + $0x288] sm:$0xff] }
  0xa5   : > { %999 = vmatmul.mubr.f32.gmra.mxu0 %v7646_v47  ;;  %2248 = vmatpush1.msra.mxu1 %v5658_v23  ;;  %v5640_v23 = vld [vmem:[%s9791_s1 + $0x280] sm:$0xff] }
  0xa6   : > { %1650 = vmatmul.mubr.f32.gmra.mxu1 %v7554_v28  ;;  %6723 = vmatprep.mubr.msk.f32.mxu0 %vm349_vm0, %v7097_v12 }
  0xa7   : > { %6724 = vmatprep.mubr.msk.f32.mxu1 %vm349_vm0, %v7044_v54  ;;  %6199 = vmatpush3.msra.mxu0 %v5643_v34  ;;  %v5687_v54 = vld [vmem:[%s9791_s1 + $0x3f8] sm:$0xff]  ;;  %v5686_v34 = vld [vmem:[%s9791_s1 + $0x3f0] sm:$0xff] }
  0xa8   : > { %2249 = vmatprep.subr.mxu1 %v7513_v9  ;;  %6200 = vmatprep.subr.mxu0 %v5642_v36 }
  0xa9   : > { %1004 = vmatmul.mubr.f32.gmra.mxu0 %v7661_v16  ;;  %2250 = vmatpush1.msra.mxu1 %v5657_v49  ;;  %v5684_v49 = vld [vmem:[%s9791_s1 + $0x3e0] sm:$0xff] }
  0xaa   : > { %1655 = vmatmul.mubr.f32.gmra.mxu1 %v7569_v57  ;;  %6725 = vmatprep.mubr.msk.f32.mxu0 %vm349_vm0, %v7100_v13 }
  0xab   : > { %6726 = vmatprep.mubr.msk.f32.mxu1 %vm349_vm0, %v7047_v55  ;;  %2251 = vmatprep.subr.mxu1 %v7513_v9  ;;  %v7692_v55 = vld [vmem:[#allocation2 + $0x108] sm:$0xff] }
  0xac   : > { %6201 = vmatpush3.msra.mxu0 %v5642_v36  ;;  %2252 = vmatpush1.msra.mxu1 %v5656_v40  ;;  %v7707_v36 = vld [vmem:[#allocation2 + $0x110] sm:$0xff]  ;;  %v7722_v40 = vld [vmem:[#allocation2 + $0x120] sm:$0xff] }
  0xad   : > { %1009 = vmatmul.mubr.f32.gmra.mxu0 %v7676_v29  ;;  %2253 = vmatprep.subr.mxu1 %v7513_v9 }
  0xae   : > { %1660 = vmatmul.mubr.f32.gmra.mxu1 %v7584_v48  ;;  %6727 = vmatprep.mubr.msk.f32.mxu0 %vm349_vm0, %v7112_v20 }
  0xaf   : > { %6728 = vmatprep.mubr.msk.f32.mxu1 %vm349_vm0, %v7065_v62  ;;  %2254 = vmatpush2.msra.mxu1 %v5687_v54  ;;  %v5685_v62 = vld [vmem:[%s9791_s1 + $0x3e8] sm:$0xff]  ;;  %v7735_v54 = vld [vmem:[%s9791_s1 + $0x478] sm:$0xff] }
  0xb0   : > { %6202 = vmatprep.subr.mxu0 %v5641_v41  ;;  %2255 = vmatprep.subr.mxu1 %v7513_v9 }
  0xb1   : > { %1014 = vmatmul.mubr.f32.gmra.mxu0 %v7692_v55  ;;  %2256 = vmatpush2.msra.mxu1 %v5686_v34  ;;  %v5681_v34 = vld [vmem:[%s9791_s1 + $0x3c8] sm:$0xff] }
  0xb2   : > { %1665 = vmatmul.mubr.f32.gmra.mxu1 %v7600_v35  ;;  %6729 = vmatprep.mubr.msk.f32.mxu0 %vm349_vm0, %v7121_v25 }
  0xb3   : > { %6730 = vmatprep.mubr.msk.f32.mxu1 %vm349_vm0, %v7068_v63  ;;  %6203 = vmatpush3.msra.mxu0 %v5641_v41  ;;  %v5683_v63 = vld [vmem:[%s9791_s1 + $0x3d8] sm:$0xff]  ;;  %v5682_v41 = vld [vmem:[%s9791_s1 + $0x3d0] sm:$0xff] }
  0xb4   : > { %2257 = vmatprep.subr.mxu1 %v7513_v9  ;;  %6204 = vmatprep.subr.mxu0 %v5640_v23 }
  0xb5   : > { %1019 = vmatmul.mubr.f32.gmra.mxu0 %v7707_v36  ;;  %2258 = vmatpush2.msra.mxu1 %v5685_v62  ;;  %v7769_v62 = vld [vmem:[#allocation2 + $0x140] sm:$0xff] }
  0xb6   : > { %1670 = vmatmul.mubr.f32.gmra.mxu1 %v7615_v17  ;;  %6731 = vmatprep.mubr.msk.f32.mxu0 %vm349_vm0, %v7129_v30 }
  0xb7   : > { %6732 = vmatprep.mubr.msk.f32.mxu1 %vm349_vm0, %v7082_v6  ;;  %2259 = vmatprep.subr.mxu1 %v7513_v9  ;;  %v7740_v6 = vld [vmem:[#allocation2 + $0x128] sm:$0xff] }
  0xb8   : > { %6205 = vmatpush3.msra.mxu0 %v5640_v23  ;;  %2260 = vmatpush2.msra.mxu1 %v5684_v49  ;;  %v7756_v23 = vld [vmem:[#allocation2 + $0x138] sm:$0xff]  ;;  %v5678_v49 = vld [vmem:[%s9791_s1 + $0x3b0] sm:$0xff] }
  0xb9   : > { %1024 = vmatmul.mubr.f32.gmra.mxu0 %v7722_v40  ;;  %2261 = vmatprep.subr.mxu1 %v7513_v9 }
  0xba   : > { %1675 = vmatmul.mubr.f32.gmra.mxu1 %v7630_v22  ;;  %6733 = vmatprep.mubr.msk.f32.mxu0 %vm349_vm0, %v7132_v31 }
  0xbb   : > { %6734 = vmatprep.mubr.msk.f32.mxu1 %vm349_vm0, %v7085_v7  ;;  %2262 = vmatpush2.msra.mxu1 %v5683_v63  ;;  %v5680_v7 = vld [vmem:[%s9791_s1 + $0x3c0] sm:$0xff]  ;;  %v7784_v63 = vld [vmem:[#allocation2 + $0x150] sm:$0xff] }
  0xbc   : > { %2263 = vmatprep.subr.mxu1 %v7513_v9  ;;  %6254 = vmatprep.subr.mxu0 %v7735_v54 }
  0xbd   : > { %1029 = vmatmul.mubr.f32.gmra.mxu0 %v7740_v6  ;;  %2264 = vmatpush2.msra.mxu1 %v5682_v41  ;;  %v7797_v41 = vld [vmem:[#allocation2 + $0x158] sm:$0xff] }
  0xbe   : > { %1680 = vmatmul.mubr.f32.gmra.mxu1 %v7646_v47  ;;  %6735 = vmatprep.mubr.msk.f32.mxu0 %vm349_vm0, %v7152_v42 }
  0xbf   : > { %6736 = vmatprep.mubr.msk.f32.mxu1 %vm349_vm0, %v7097_v12  ;;  %2265 = vmatprep.subr.mxu1 %v7513_v9  ;;  %v5679_v12 = vld [vmem:[%s9791_s1 + $0x3b8] sm:$0xff] }
  0xc0   : > { %2266 = vmatpush2.msra.mxu1 %v5681_v34  ;;  %v5675_v34 = vld [vmem:[%s9791_s1 + $0x398] sm:$0xff] }
  0xc1   : > { %1034 = vmatmul.mubr.f32.gmra.mxu0 %v7756_v23  ;;  %2267 = vmatprep.subr.mxu1 %v7513_v9 }
  0xc2   : > { %1685 = vmatmul.mubr.f32.gmra.mxu1 %v7661_v16  ;;  %6737 = vmatprep.mubr.msk.f32.mxu0 %vm349_vm0, %v7162_v45 }
  0xc3   : > { %6738 = vmatprep.mubr.msk.f32.mxu1 %vm349_vm0, %v7100_v13  ;;  %2268 = vmatpush2.msra.mxu1 %v5680_v7  ;;  %v5677_v13 = vld [vmem:[%s9791_s1 + $0x3a8] sm:$0xff] }
  0xc4   : > { %2269 = vmatprep.subr.mxu1 %v7513_v9  ;;  %v7812_v7 = vld [vmem:[#allocation2 + $0x168] sm:$0xff] }
  0xc5   : > { %1039 = vmatmul.mubr.f32.gmra.mxu0 %v7769_v62  ;;  %2270 = vmatpush2.msra.mxu1 %v5679_v12  ;;  %v7825_v12 = vld [vmem:[#allocation2 + $0x170] sm:$0xff] }
  0xc6   : > { %1690 = vmatmul.mubr.f32.gmra.mxu1 %v7676_v29  ;;  %6739 = vmatprep.mubr.msk.f32.mxu0 %vm349_vm0, %v7177_v52 }
  0xc7   : > { %6740 = vmatprep.mubr.msk.f32.mxu1 %vm349_vm0, %v7112_v20  ;;  %2271 = vmatprep.subr.mxu1 %v7513_v9  ;;  %v5676_v20 = vld [vmem:[%s9791_s1 + $0x3a0] sm:$0xff] }
  0xc8   : > { %2272 = vmatpush2.msra.mxu1 %v5678_v49  ;;  %v5672_v49 = vld [vmem:[%s9791_s1 + $0x380] sm:$0xff] }
  0xc9   : > { %1044 = vmatmul.mubr.f32.gmra.mxu0 %v7784_v63  ;;  %2273 = vmatprep.subr.mxu1 %v7513_v9 }
  0xca   : > { %1695 = vmatmul.mubr.f32.gmra.mxu1 %v7692_v55  ;;  %6741 = vmatprep.mubr.msk.f32.mxu0 %vm349_vm0, %v7180_v53 }
  0xcb   : > { %6742 = vmatprep.mubr.msk.f32.mxu1 %vm349_vm0, %v7121_v25  ;;  %2274 = vmatpush2.msra.mxu1 %v5677_v13  ;;  %v5674_v25 = vld [vmem:[%s9791_s1 + $0x390] sm:$0xff]  ;;  %v6584_v13 = vld [vmem:[#allocation2 + $0x1a] sm:$0xff] }
  0xcc   : > { %2275 = vmatprep.subr.mxu1 %v7513_v9 }
  0xcd   : > { %1049 = vmatmul.mubr.f32.gmra.mxu0 %v7797_v41  ;;  %2276 = vmatpush2.msra.mxu1 %v5676_v20  ;;  %v5702_v20 = vld [vmem:[%s9791_s1 + $0x470] sm:$0xff] }
  0xce   : > { %1700 = vmatmul.mubr.f32.gmra.mxu1 %v7707_v36  ;;  %6743 = vmatprep.mubr.msk.f32.mxu0 %vm349_vm0, %v7194_v60 }
  0xcf   : > { %6744 = vmatprep.mubr.msk.f32.mxu1 %vm349_vm0, %v7129_v30  ;;  %2277 = vmatprep.subr.mxu1 %v7513_v9  ;;  %v5673_v30 = vld [vmem:[%s9791_s1 + $0x388] sm:$0xff] }
  0xd0   : > { %2278 = vmatpush2.msra.mxu1 %v5675_v34  ;;  %v9862_v34 = vld [vmem:[#allocation8_spill] sm:$0xff] }
  0xd1   : > { %1054 = vmatmul.mubr.f32.gmra.mxu0 %v7812_v7  ;;  %2279 = vmatprep.subr.mxu1 %v7513_v9 }
  0xd2   : > { %1705 = vmatmul.mubr.f32.gmra.mxu1 %v7722_v40  ;;  %6745 = vmatprep.mubr.msk.f32.mxu0 %vm349_vm0, %v7204_v1 }
  0xd3   : > { %6746 = vmatprep.mubr.msk.f32.mxu1 %vm349_vm0, %v7132_v31  ;;  %2280 = vmatpush2.msra.mxu1 %v5674_v25  ;;  %v6585_v31 = vld [vmem:[#allocation2 + $0x22] sm:$0xff]  ;;  %v5691_v25 = vld [vmem:[%s9791_s1 + $0x418] sm:$0xff] }
  0xd4   : > { %2281 = vmatprep.subr.mxu1 %v7513_v9 }
  0xd5   : > { %1059 = vmatmul.mubr.f32.gmra.mxu0 %v7825_v12  ;;  %2282 = vmatpush2.msra.mxu1 %v5673_v30 }
  0xd6   : > { %1710 = vmatmul.mubr.f32.gmra.mxu1 %v7740_v6  ;;  %6206 = vmatprep.mubr.f32.mxu0 %v6584_v13 }
  0xd7   : > { %6747 = vmatprep.mubr.msk.f32.mxu1 %vm349_vm0, %v7152_v42  ;;  %2283 = vmatprep.subr.mxu1 %v7513_v9  ;;  %v5701_v42 = vld [vmem:[%s9791_s1 + $0x468] sm:$0xff] }
  0xd8   : > { %2284 = vmatpush2.msra.mxu1 %v5672_v49  ;;  %v6590_v49 = vld [vmem:[#allocation2 + $0x61] sm:$0xff] }
  0xd9   : > { %6207 = vmatmul.mubr.f32.vlgmr.msra.gmra.mxu0 %v6585_v31  ;;  %v9864_v31 = vld [vmem:[#allocation10_spill] sm:$0xff] }
  0xda   : > { %1715 = vmatmul.mubr.f32.gmra.mxu1 %v7756_v23  ;;  %6255 = vmatpush3.msra.mxu0 %v7735_v54 }
  0xdb   : > { %6748 = vmatprep.mubr.msk.f32.mxu1 %vm349_vm0, %v7162_v45  ;;  %6209 = vmatprep.mubr.f32.mxu0 %v7138_v33  ;;  %v5700_v33 = vld [vmem:[%s9791_s1 + $0x460] sm:$0xff]  ;;  %v5698_v45 = vld [vmem:[%s9791_s1 + $0x450] sm:$0xff] }
  0xdc   : > { %6256 = vmatprep.subr.mxu0 %v5702_v20 }
  0xdd   : > { %6210 = vmatmul.mubr.f32.gmra.mxu0 %v7149_v39  ;;  %v5699_v39 = vld [vmem:[%s9791_s1 + $0x458] sm:$0xff] }
  0xde   : > { %1720 = vmatmul.mubr.f32.gmra.mxu1 %v7769_v62  ;;  %6257 = vmatpush3.msra.mxu0 %v5702_v20  ;;  %v5690_v20 = vld [vmem:[%s9791_s1 + $0x410] sm:$0xff] }
  0xdf   : > { %6749 = vmatprep.mubr.msk.f32.mxu1 %vm349_vm0, %v7177_v52  ;;  %6212 = vmatprep.mubr.f32.mxu0 %v7174_v51  ;;  %v5697_v51 = vld [vmem:[%s9791_s1 + $0x448] sm:$0xff] }
  0xe0   : > { %6258 = vmatprep.subr.mxu0 %v5701_v42 }
  0xe1   : > { %6213 = vmatmul.mubr.f32.gmra.mxu0 %v7191_v59 }
  0xe2   : > { %1725 = vmatmul.mubr.f32.gmra.mxu1 %v7784_v63  ;;  %6259 = vmatpush3.msra.mxu0 %v5701_v42  ;;  %v6591_v42 = vld [vmem:[#allocation2 + $0x69] sm:$0xff] }
  0xe3   : > { %6750 = vmatprep.mubr.msk.f32.mxu1 %vm349_vm0, %v7180_v53  ;;  %6215 = vmatprep.mubr.f32.mxu0 %v7216_v8  ;;  %v7891_v53 = vld [vmem:[#allocation2 + $0x180] sm:$0xff]  ;;  %v7905_v8 = vld [vmem:[#allocation2 + $0x188] sm:$0xff] }
  0xe4   : > { %6260 = vmatprep.subr.mxu0 %v5700_v33 }
  0xe5   : > { %6216 = vmatmul.mubr.f32.gmra.mxu0 %v7223_v10 }
  0xe6   : > { %1730 = vmatmul.mubr.f32.gmra.mxu1 %v7797_v41  ;;  %6261 = vmatpush3.msra.mxu0 %v5700_v33 }
  0xe7   : > { %6751 = vmatprep.mubr.msk.f32.mxu1 %vm349_vm0, %v7194_v60  ;;  %6218 = vmatprep.mubr.f32.mxu0 %v7238_v18  ;;  %v5696_v60 = vld [vmem:[%s9791_s1 + $0x440] sm:$0xff]  ;;  %v5695_v18 = vld [vmem:[%s9791_s1 + $0x438] sm:$0xff] }
  0xe8   : > { %6262 = vmatprep.subr.mxu0 %v5699_v39 }
  0xe9   : > { %6219 = vmatmul.mubr.f32.gmra.mxu0 %v7245_v21  ;;  %v6586_v21 = vld [vmem:[#allocation2 + $0x31] sm:$0xff] }
  0xea   : > { %1735 = vmatmul.mubr.f32.gmra.mxu1 %v7812_v7  ;;  %6263 = vmatpush3.msra.mxu0 %v5699_v39  ;;  %v5689_v39 = vld [vmem:[%s9791_s1 + $0x408] sm:$0xff] }
  0xeb   : > { %6752 = vmatprep.mubr.msk.f32.mxu1 %vm349_vm0, %v7204_v1  ;;  %6221 = vmatprep.mubr.f32.mxu0 %v7260_v32 }
  0xec   : > { %6264 = vmatprep.subr.mxu0 %v5698_v45 }
  0xed   : > { %6222 = vmatmul.mubr.f32.gmra.mxu0 %v7267_v37  ;;  %v7885_v52 = vpop.f32.mrf.mxu1  ;;  %v5694_v37 = vld [vmem:[%s9791_s1 + $0x430] sm:$0xff] }
  0xee   : > { %1740 = vmatmul.mubr.f32.gmra.mxu1 %v7825_v12  ;;  %6265 = vmatpush3.msra.mxu0 %v5698_v45 }
  0xef   : > { %6753 = vmatprep.mubr.msk.f32.mxu1 %vm349_vm0, %v7407_v44  ;;  %6224 = vmatprep.mubr.f32.mxu0 %v7282_v46  ;;  %v7893_v59 = vpop.f32.mrf.mxu1  ;;  %v9861_v44 = vld [vmem:[#allocation7_spill] sm:$0xff] }
  0xf0   : > { %6266 = vmatprep.subr.mxu0 %v5697_v51 }
  0xf1   : > { %6225 = vmatmul.mubr.f32.gmra.mxu0 %v7289_v50  ;;  %v6587_v50 = vld [vmem:[#allocation2 + $0x39] sm:$0xff] }
  0xf2   : > { %1745 = vmatmul.mubr.f32.gmra.mxu1 %v7891_v53  ;;  %6267 = vmatpush3.msra.mxu0 %v5697_v51  ;;  %v7900_v1 = vpop.f32.mrf.mxu1  ;;  %v6592_v51 = vld [vmem:[#allocation2 + $0x79] sm:$0xff] }
  0xf3   : > { %6754 = vmatprep.mubr.msk.f32.mxu1 %vm349_vm0, %v7430_v15  ;;  %6227 = vmatprep.mubr.f32.mxu0 %v7304_v0 }
  0xf4   : > { %6268 = vmatprep.subr.mxu0 %v5696_v60  ;;  %v7907_v10 = vpop.f32.mrf.mxu1 }
  0xf5   : > { %6228 = vmatmul.mubr.f32.gmra.mxu0 %v7311_v4  ;;  %v5693_v4 = vld [vmem:[%s9791_s1 + $0x428] sm:$0xff] }
  0xf6   : > { %1750 = vmatmul.mubr.f32.gmra.mxu1 %v7905_v8  ;;  %6269 = vmatpush3.msra.mxu0 %v5696_v60  ;;  %v7971_v60 = vld [vmem:[#allocation2 + $0x182] sm:$0xff] }
  0xf7   : > { %6230 = vmatprep.mubr.f32.mxu0 %v7323_v14  ;;  %2285 = vmatprep.mubr.f32.mxu1 %v6586_v21  ;;  %v7915_v32 = vpop.f32.mrf.mxu1  ;;  %v9868_v21 = vld [vmem:[#allocation13_spill] sm:$0xff] }
  0xf8   : > { %6270 = vmatprep.subr.mxu0 %v5695_v18 }
  0xf9   : > { %6231 = vmatmul.mubr.f32.gmra.mxu0 %v7328_v19  ;;  %v7921_v46 = vpop.f32.mrf.mxu1  ;;  %v9859_v19 = vld [vmem:[#allocation5_spill] sm:$0xff] }
  0xfa   : > { %2286 = vmatmul.mubr.f32.vlgmr.msra.gmra.mxu1 %v7389_v11  ;;  %6271 = vmatpush3.msra.mxu0 %v5695_v18  ;;  %v6588_v11 = vld [vmem:[#allocation2 + $0x49] sm:$0xff] }
  0xfb   : > { %6233 = vmatprep.mubr.f32.mxu0 %v7335_v26  ;;  %2290 = vmatprep.mubr.f32.mxu1 %v6587_v50  ;;  %v9860_v26 = vld [vmem:[#allocation6_spill] sm:$0xff]  ;;  %v6593_v50 = vld [vmem:[#allocation2 + $0x81] sm:$0xff] }
  0xfc   : > { %6272 = vmatprep.subr.mxu0 %v5694_v37  ;;  %v7925_v0 = vpop.f32.mrf.mxu1 }
  0xfd   : > { %6234 = vmatmul.mubr.f32.gmra.mxu0 %v7351_v43  ;;  %v5692_v43 = vld [vmem:[%s9791_s1 + $0x420] sm:$0xff] }
  0xfe   : > { %2291 = vmatmul.mubr.f32.gmra.mxu1 %v7409_v56  ;;  %6273 = vmatpush3.msra.mxu0 %v5694_v37  ;;  %v7932_v14 = vpop.f32.mrf.mxu1  ;;  %v6589_v56 = vld [vmem:[#allocation2 + $0x51] sm:$0xff] }
  0xff   : > { %6236 = vmatprep.mubr.f32.mxu0 %v9859_v19  ;;  %2295 = vmatprep.mubr.f32.mxu1 %v6588_v11  ;;  %v6594_v11 = vld [vmem:[#allocation2 + $0x91] sm:$0xff] }
 0x100   : > { %6274 = vmatprep.subr.mxu0 %v5693_v4 }
 0x101   : > { %6237 = vmatmul.mubr.f32.gmra.mxu0 %v9860_v26  ;;  %v7939_v15 = vpop.f32.mrf.mxu1  ;;  %v6595_v26 = vld [vmem:[#allocation2 + $0x32] sm:$0xff] }
 0x102   : > { %2296 = vmatmul.mubr.f32.gmra.mxu1 %v7438_v27  ;;  %6275 = vmatpush3.msra.mxu0 %v5693_v4  ;;  %v9863_v27 = vld [vmem:[#allocation9_spill] sm:$0xff] }
 0x103   : > { %6239 = vmatprep.mubr.f32.mxu0 %v9861_v44  ;;  %2300 = vmatprep.mubr.f32.mxu1 %v6589_v56  ;;  %v7943_v54 = vpop.f32.mrf.mxu1  ;;  %v3293_v56 = vld [vmem:[%s9793_s3 + $0x178] sm:$0xff] }
 0x104   : > { %6276 = vmatprep.subr.mxu0 %v5692_v43  ;;  %6334 = vmatprep.subr.mxu1 %v3293_v56 }
 0x105   : > { %6240 = vmatmul.mubr.f32.gmra.mxu0 %v9862_v34  ;;  %v6596_v34 = vld [vmem:[#allocation2 + $0x3a] sm:$0xff]  ;;  %6335 = vmatpush3.msra.mxu1 %v3293_v56  ;;  %v6605_v56 = vld [vmem:[#allocation2 + $0x82] sm:$0xff] }
 0x106   : > { %2301 = vmatmul.mubr.f32.gmra.mxu1 %v7457_v24  ;;  %6277 = vmatpush3.msra.mxu0 %v5692_v43  ;;  %v7950_v30 = vpop.f32.mrf.mxu1  ;;  %v9865_v24 = vld [vmem:[#allocation11_spill] sm:$0xff] }
 0x107   : > { %6242 = vmatprep.mubr.f32.mxu0 %v9863_v27  ;;  %2305 = vmatprep.mubr.f32.mxu1 %v6590_v49  ;;  %v6598_v27 = vld [vmem:[#allocation2 + $0x99] sm:$0xff] }
 0x108   : > { %6278 = vmatprep.subr.mxu0 %v5691_v25  ;;  %v7953_v13 = vpop.f32.mrf.mxu1 }
 0x109   : > { %6243 = vmatmul.mubr.f32.gmra.mxu0 %v9864_v31 }
 0x10a   : > { %2306 = vmatmul.mubr.f32.gmra.mxu1 %v7479_v61  ;;  %6279 = vmatpush3.msra.mxu0 %v5691_v25  ;;  %v9867_v61 = vld [vmem:[#allocation12_spill] sm:$0xff] }
 0x10b   : > { %6245 = vmatprep.mubr.f32.mxu0 %v9865_v24  ;;  %2310 = vmatprep.mubr.f32.mxu1 %v6591_v42  ;;  %v7961_v33 = vpop.f32.mrf.mxu1  ;;  %v6599_v24 = vld [vmem:[#allocation2 + $0x52] sm:$0xff]  ;;  %v6600_v42 = vld [vmem:[#allocation2 + $0x62] sm:$0xff] }
 0x10c   : > { %9866 = vst [vmem:[#allocation5_spill] sm:$0xff] %v7961_v33  ;;  %6280 = vmatprep.subr.mxu0 %v5690_v20 }
 0x10d   : > { %6246 = vmatmul.mubr.f32.gmra.mxu0 %v7443_v2  ;;  %v7967_v45 = vpop.f32.mrf.mxu1  ;;  %v5688_v2 = vld [vmem:[%s9791_s1 + $0x400] sm:$0xff] }
 0x10e   : > { %2311 = vmatmul.mubr.f32.gmra.mxu1 %v7489_v5  ;;  %6281 = vmatpush3.msra.mxu0 %v5690_v20  ;;  %v7980_v5 = vld [vmem:[#allocation2 + $0x18a] sm:$0xff] }
 0x10f   : > { %6248 = vmatprep.mubr.f32.mxu0 %v9867_v61  ;;  %2315 = vmatprep.mubr.f32.mxu1 %v6592_v51 }
 0x110   : > { %6282 = vmatprep.subr.mxu0 %v5689_v39  ;;  %v7973_v18 = vpop.f32.mrf.mxu1 }
 0x111   : > { %6249 = vmatmul.mubr.f32.gmra.mxu0 %v9868_v21  ;;  %v6602_v21 = vld [vmem:[#allocation2 + $0x6a] sm:$0xff] }
 0x112   : > { %2316 = vmatmul.mubr.f32.gmra.mxu1 %v7506_v38  ;;  %6283 = vmatpush3.msra.mxu0 %v5689_v39  ;;  %v7982_v37 = vpop.f32.mrf.mxu1  ;;  %v6601_v39 = vld [vmem:[#allocation2 + $0xa9] sm:$0xff] }
 0x113   : > { %6251 = vmatprep.mubr.f32.mxu0 %v7971_v60  ;;  %2320 = vmatprep.mubr.f32.mxu1 %v6593_v50  ;;  %v3261_v50 = vld [vmem:[%s9793_s3 + $0x78] sm:$0xff] }
 0x114   : > { %6284 = vmatprep.subr.mxu0 %v5688_v2 }
 0x115   : > { %6252 = vmatmul.mubr.f32.gmra.mxu0 %v7980_v5  ;;  %v905_v4 = vpop.f32.mrf.mxu0  ;;  %v7986_v19 = vpop.f32.mrf.mxu1 }
 0x116   : > { %2321 = vmatmul.mubr.f32.gmra.mxu1 %v7523_v3  ;;  %6285 = vmatpush3.msra.mxu0 %v5688_v2  ;;  %v7990_v38 = vadd.f32 %v7893_v59, %v905_v4  ;;  %v6597_v3 = vld [vmem:[#allocation2 + $0x4a] sm:$0xff] }
 0x117   : > { %2325 = vmatprep.mubr.f32.mxu1 %v6594_v11  ;;  %6286 = vmatprep.mubr.f32.mxu0 %v6595_v26  ;;  %v907_v43 = vpop.f32.mrf.mxu0  ;;  %v7992_v44 = vpop.f32.mrf.mxu1  ;;  %v6604_v4 = vld [vmem:[#allocation2 + $0xb1] sm:$0xff] }
 0x118   : > { %3294 = vmatprep.subr.mxu0 %v7513_v9 }
 0x119   : > { %6287 = vmatmul.mubr.f32.vlgmr.msra.gmra.mxu0 %v6596_v34 }
 0x11a   : > { %2326 = vmatmul.mubr.f32.gmra.mxu1 %v7538_v58  ;;  %6289 = vmatprep.mubr.f32.mxu0 %v6597_v3  ;;  %v910_v59 = vpop.f32.mrf.mxu0  ;;  %v7999_v25 = vpop.f32.mrf.mxu1 }
 0x11b   : > { %2330 = vmatprep.mubr.f32.mxu1 %v6598_v27  ;;  %v8002_v49 = vadd.f32 %v7885_v52, %v910_v59  ;;  %3295 = vmatpush1.msra.mxu0 %v3261_v50  ;;  %v6606_v59 = vld [vmem:[#allocation2 + $0x92] sm:$0xff]  ;;  %v6607_v27 = vld [vmem:[#allocation2 + $0xc1] sm:$0xff] }
 0x11c   : > { %v912_v31 = vpop.f32.mrf.mxu0  ;;  %v8004_v20 = vpop.f32.mrf.mxu1  ;;  %3296 = vmatprep.subr.mxu0 %v7513_v9 }
 0x11d   : > { %6290 = vmatmul.mubr.f32.gmra.mxu0 %v6599_v24 }
 0x11e   : > { %2331 = vmatmul.mubr.f32.gmra.mxu1 %v7554_v28  ;;  %6292 = vmatprep.mubr.f32.mxu0 %v6600_v42  ;;  %v915_v58 = vpop.f32.mrf.mxu0  ;;  %v6603_v28 = vld [vmem:[#allocation2 + $0x7a] sm:$0xff] }
 0x11f   : > { %2335 = vmatprep.mubr.f32.mxu1 %v6601_v39  ;;  %v8008_v61 = vadd.f32 %v7907_v10, %v915_v58  ;;  %v8010_v51 = vpop.f32.mrf.mxu1  ;;  %v3292_v10 = vld [vmem:[%s9793_s3 + $0x170] sm:$0xff]  ;;  %v6608_v42 = vld [vmem:[#allocation2 + $0x9a] sm:$0xff] }
 0x120   : > { %v917_v52 = vpop.f32.mrf.mxu0  ;;  %6336 = vmatprep.subr.mxu1 %v3292_v10 }
 0x121   : > { %9869 = vst [vmem:[#allocation6_spill] sm:$0xff] %v8008_v61  ;;  %6293 = vmatmul.mubr.f32.gmra.mxu0 %v6602_v21  ;;  %v8012_v2 = vpop.f32.mrf.mxu1  ;;  %6337 = vmatpush3.msra.mxu1 %v3292_v10  ;;  %v6609_v52 = vld [vmem:[#allocation2 + $0xaa] sm:$0xff] }
 0x122   : > { %2336 = vmatmul.mubr.f32.gmra.mxu1 %v7569_v57  ;;  %6295 = vmatprep.mubr.f32.mxu0 %v6603_v28  ;;  %v3260_v57 = vld [vmem:[%s9793_s3 + $0x70] sm:$0xff] }
 0x123   : > { %2340 = vmatprep.mubr.f32.mxu1 %v6604_v4  ;;  %v920_v11 = vpop.f32.mrf.mxu0  ;;  %v8021_v26 = vpop.f32.mrf.mxu1  ;;  %3297 = vmatpush1.msra.mxu0 %v3260_v57  ;;  %v6610_v21 = vld [vmem:[#allocation2 + $0xc9] sm:$0xff]  ;;  %v6611_v4 = vld [vmem:[#allocation2 + $0xb2] sm:$0xff] }
 0x124   : > { %v8024_v43 = vadd.f32 %v7900_v1, %v920_v11  ;;  %3298 = vmatprep.subr.mxu0 %v7513_v9  ;;  %v5735_v61 = vld [vmem:[%s9793_s3 + $0x270] sm:$0xff] }
 0x125   : > { %6296 = vmatmul.mubr.f32.gmra.mxu0 %v6605_v56  ;;  %v922_v34 = vpop.f32.mrf.mxu0  ;;  %v8029_v3 = vpop.f32.mrf.mxu1  ;;  %v6612_v56 = vld [vmem:[#allocation2 + $0xc2] sm:$0xff] }
 0x126   : > { %9870 = vst [vmem:[#allocation7_spill] sm:$0xff] %v8024_v43  ;;  %2341 = vmatmul.mubr.f32.gmra.mxu1 %v7584_v48  ;;  %6298 = vmatprep.mubr.f32.mxu0 %v6606_v59  ;;  %v3259_v48 = vld [vmem:[%s9793_s3 + $0x68] sm:$0xff]  ;;  %v6613_v34 = vld [vmem:[#allocation2 + $0xd9] sm:$0xff] }
 0x127   : > { %2345 = vmatprep.mubr.f32.mxu1 %v6607_v27  ;;  %v925_v1 = vpop.f32.mrf.mxu0  ;;  %3299 = vmatpush1.msra.mxu0 %v3259_v48  ;;  %v3290_v48 = vld [vmem:[%s9793_s3 + $0x160] sm:$0xff] }
 0x128   : > { %v8034_v31 = vadd.f32 %v7921_v46, %v925_v1  ;;  %v8036_v24 = vpop.f32.mrf.mxu1  ;;  %v3291_v46 = vld [vmem:[%s9793_s3 + $0x168] sm:$0xff]  ;;  %3300 = vmatprep.subr.mxu0 %v7513_v9 }
 0x129   : > { %6299 = vmatmul.mubr.f32.gmra.mxu0 %v6608_v42  ;;  %v927_v58 = vpop.f32.mrf.mxu0  ;;  %6338 = vmatprep.subr.mxu1 %v3291_v46  ;;  %v6614_v1 = vld [vmem:[#allocation2 + $0xca] sm:$0xff] }
 0x12a   : > { %9871 = vst [vmem:[#allocation8_spill] sm:$0xff] %v8034_v31  ;;  %2346 = vmatmul.mubr.f32.gmra.mxu1 %v7600_v35  ;;  %v8043_v39 = vpop.f32.mrf.mxu1  ;;  %6301 = vmatprep.mubr.f32.mxu0 %v6609_v52  ;;  %v3258_v35 = vld [vmem:[%s9793_s3 + $0x60] sm:$0xff] }
 0x12b   : > { %2350 = vmatprep.mubr.f32.mxu1 %v6610_v21  ;;  %6339 = vmatpush3.msra.mxu1 %v3291_v46  ;;  %v6615_v58 = vld [vmem:[#allocation2 + $0xda] sm:$0xff]  ;;  %v3256_v46 = vld [vmem:[%s9793_s3 + $0x50] sm:$0xff] }
 0x12c   : > { %v930_v50 = vpop.f32.mrf.mxu0  ;;  %v8048_v28 = vpop.f32.mrf.mxu1  ;;  %3301 = vmatpush1.msra.mxu0 %v3258_v35  ;;  %6340 = vmatprep.subr.mxu1 %v3290_v48 }
 0x12d   : > { %v8054_v10 = vadd.f32 %v7915_v32, %v930_v50  ;;  %6302 = vmatmul.mubr.f32.gmra.mxu0 %v6611_v4  ;;  %3302 = vmatprep.subr.mxu0 %v7513_v9  ;;  %v6617_v50 = vld [vmem:[#allocation2 + $0xe2] sm:$0xff]  ;;  %v6618_v4 = vld [vmem:[#allocation2 + $0xf2] sm:$0xff] }
 0x12e   : > { %2351 = vmatmul.mubr.f32.gmra.mxu1 %v7615_v17  ;;  %v932_v11 = vpop.f32.mrf.mxu0  ;;  %v8058_v57 = vpop.f32.mrf.mxu1  ;;  %6304 = vmatprep.mubr.f32.mxu0 %v6612_v56  ;;  %v3257_v17 = vld [vmem:[%s9793_s3 + $0x58] sm:$0xff] }
 0x12f   : > { %9872 = vst [vmem:[#allocation9_spill] sm:$0xff] %v8054_v10  ;;  %2355 = vmatprep.mubr.f32.mxu1 %v6613_v34  ;;  %6341 = vmatpush3.msra.mxu1 %v3290_v48  ;;  %v6619_v34 = vld [vmem:[#allocation2 + $0xf1] sm:$0xff] }
 0x130   : > { %v935_v59 = vpop.f32.mrf.mxu0  ;;  %3303 = vmatpush1.msra.mxu0 %v3257_v17 }
 0x131   : > { %v8062_v32 = vadd.f32 %v7932_v14, %v935_v59  ;;  %v8064_v27 = vpop.f32.mrf.mxu1  ;;  %6305 = vmatmul.mubr.f32.gmra.mxu0 %v6614_v1  ;;  %v6616_v14 = vld [vmem:[#allocation2 + $0xe1] sm:$0xff]  ;;  %3304 = vmatprep.subr.mxu0 %v7513_v9 }
 0x132   : > { %2356 = vmatmul.mubr.f32.gmra.mxu1 %v7630_v22  ;;  %v937_v42 = vpop.f32.mrf.mxu0  ;;  %6307 = vmatprep.mubr.f32.mxu0 %v6615_v58  ;;  %v6620_v1 = vld [vmem:[#allocation2 + $0xfa] sm:$0xff] }
 0x133   : > { %9873 = vst [vmem:[#allocation10_spill] sm:$0xff] %v8062_v32  ;;  %v8073_v52 = vpop.f32.mrf.mxu1  ;;  %2360 = vmatprep.mubr.f32.mxu1 %v6616_v14  ;;  %3305 = vmatpush1.msra.mxu0 %v3256_v46  ;;  %v6621_v42 = vld [vmem:[#allocation2 + $0x10a] sm:$0xff]  ;;  %v3289_v58 = vld [vmem:[%s9793_s3 + $0x158] sm:$0xff] }
 0x134   : > { %3306 = vmatprep.subr.mxu0 %v7513_v9  ;;  %v6622_v14 = vld [vmem:[#allocation2 + $0xf9] sm:$0xff]  ;;  %6342 = vmatprep.subr.mxu1 %v3289_v58 }
 0x135   : > { %v940_v21 = vpop.f32.mrf.mxu0  ;;  %v8078_v22 = vpop.f32.mrf.mxu1  ;;  %6308 = vmatmul.mubr.f32.gmra.mxu0 %v6617_v50  ;;  %6343 = vmatpush3.msra.mxu1 %v3289_v58  ;;  %v6623_v50 = vld [vmem:[#allocation2 + $0x112] sm:$0xff] }
 0x136   : > { %v8082_v35 = vadd.f32 %v7925_v0, %v940_v21  ;;  %2361 = vmatmul.mubr.f32.gmra.mxu1 %v7646_v47  ;;  %6310 = vmatprep.mubr.f32.mxu0 %v6618_v4  ;;  %v3255_v0 = vld [vmem:[%s9793_s3 + $0x48] sm:$0xff] }
 0x137   : > { %v942_v11 = vpop.f32.mrf.mxu0  ;;  %v8085_v56 = vpop.f32.mrf.mxu1  ;;  %2365 = vmatprep.mubr.f32.mxu1 %v6619_v34  ;;  %3307 = vmatpush1.msra.mxu0 %v3255_v0  ;;  %v3253_v0 = vld [vmem:[%s9793_s3 + $0x38] sm:$0xff] }
 0x138   : > { %9874 = vst [vmem:[#allocation11_spill] sm:$0xff] %v8082_v35  ;;  %3308 = vmatprep.subr.mxu0 %v7513_v9  ;;  %v6624_v11 = vld [vmem:[#allocation2 + $0x122] sm:$0xff]  ;;  %v5708_v35 = vld [vmem:[%s9793_s3 + $0x198] sm:$0xff] }
 0x139   : > { %v945_v59 = vpop.f32.mrf.mxu0  ;;  %6311 = vmatmul.mubr.f32.gmra.mxu0 %v6620_v1 }
 0x13a   : > { %v8092_v17 = vadd.f32 %v7943_v54, %v945_v59  ;;  %v8094_v47 = vpop.f32.mrf.mxu1  ;;  %2366 = vmatmul.mubr.f32.gmra.mxu1 %v7661_v16  ;;  %6313 = vmatprep.mubr.f32.mxu0 %v6621_v42  ;;  %v3254_v54 = vld [vmem:[%s9793_s3 + $0x40] sm:$0xff]  ;;  %v6625_v59 = vld [vmem:[#allocation2 + $0x109] sm:$0xff] }
 0x13b   : > { %v947_v48 = vpop.f32.mrf.mxu0  ;;  %2370 = vmatprep.mubr.f32.mxu1 %v6622_v14  ;;  %3309 = vmatpush1.msra.mxu0 %v3254_v54  ;;  %v3288_v14 = vld [vmem:[%s9793_s3 + $0x150] sm:$0xff] }
 0x13c   : > { %9875 = vst [vmem:[#allocation12_spill] sm:$0xff] %v8092_v17  ;;  %v1598_v46 = vpop.f32.mrf.mxu1  ;;  %3310 = vmatprep.subr.mxu0 %v7513_v9  ;;  %v6627_v48 = vld [vmem:[#allocation2 + $0x13a] sm:$0xff]  ;;  %v6628_v54 = vld [vmem:[#allocation2 + $0x111] sm:$0xff]  ;;  %6344 = vmatprep.subr.mxu1 %v3288_v14 }
 0x13d   : > { %v950_v21 = vpop.f32.mrf.mxu0  ;;  %6314 = vmatmul.mubr.f32.gmra.mxu0 %v6623_v50  ;;  %6345 = vmatpush3.msra.mxu1 %v3288_v14 }
 0x13e   : > { %v8105_v16 = vadd.f32 %v7939_v15, %v950_v21  ;;  %v8107_v4 = vpop.f32.mrf.mxu1  ;;  %2371 = vmatmul.mubr.f32.gmra.mxu1 %v7676_v29  ;;  %6316 = vmatprep.mubr.f32.mxu0 %v6624_v11  ;;  %v6626_v15 = vld [vmem:[#allocation2 + $0x12a] sm:$0xff] }
 0x13f   : > { %v952_v34 = vpop.f32.mrf.mxu0  ;;  %2375 = vmatprep.mubr.f32.mxu1 %v6625_v59  ;;  %3311 = vmatpush1.msra.mxu0 %v3253_v0  ;;  %v6630_v59 = vld [vmem:[#allocation2 + $0x152] sm:$0xff] }
 0x140   : > { %9876 = vst [vmem:[#allocation13_spill] sm:$0xff] %v8105_v16  ;;  %v1603_v1 = vpop.f32.mrf.mxu1  ;;  %3312 = vmatprep.subr.mxu0 %v7513_v9  ;;  %v6631_v9 = vld [vmem:[#allocation2 + $0x121] sm:$0xff]  ;;  %v5712_v16 = vld [vmem:[%s9793_s3 + $0x1b8] sm:$0xff] }
 0x141   : > { %v955_v42 = vpop.f32.mrf.mxu0  ;;  %6317 = vmatmul.mubr.f32.gmra.mxu0 %v6626_v15 }
 0x142   : > { %v8115_v58 = vadd.f32 %v7953_v13, %v955_v42  ;;  %v8117_v29 = vpop.f32.mrf.mxu1  ;;  %2376 = vmatmul.mubr.f32.gmra.mxu1 %v7692_v55  ;;  %6319 = vmatprep.mubr.f32.mxu0 %v6627_v48  ;;  %v3252_v13 = vld [vmem:[%s9793_s3 + $0x30] sm:$0xff]  ;;  %v6629_v55 = vld [vmem:[#allocation2 + $0x142] sm:$0xff]  ;;  %v6633_v48 = vld [vmem:[#allocation2 + $0x15a] sm:$0xff] }
 0x143   : > { %9878 = vst [vmem:[#allocation15_spill] sm:$0xff] %v8117_v29  ;;  %v957_v46 = vpop.f32.mrf.mxu0  ;;  %2380 = vmatprep.mubr.f32.mxu1 %v6628_v54  ;;  %3313 = vmatpush1.msra.mxu0 %v3252_v13  ;;  %v8133_v42 = vld [vmem:[#allocation2] sm:$0xff]  ;;  %v3287_v54 = vld [vmem:[%s9793_s3 + $0x148] sm:$0xff] }
 0x144   : > { %9877 = vst [vmem:[#allocation14_spill] sm:$0xff] %v8115_v58  ;;  %v1608_v21 = vpop.f32.mrf.mxu1  ;;  %3314 = vmatprep.subr.mxu0 %v8133_v42  ;;  %v6634_v46 = vld [vmem:[#allocation2 + $0x16a] sm:$0xff]  ;;  %6346 = vmatprep.subr.mxu1 %v3287_v54 }
 0x145   : > { %v960_v50 = vpop.f32.mrf.mxu0  ;;  %6320 = vmatmul.mubr.f32.gmra.mxu0 %v6629_v55  ;;  %v6635_v13 = vld [vmem:[#allocation2 + $0x129] sm:$0xff]  ;;  %6347 = vmatpush3.msra.mxu1 %v3287_v54 }
 0x146   : > { %v8128_v11 = vadd.f32 %v7950_v30, %v960_v50  ;;  %v8130_v34 = vpop.f32.mrf.mxu1  ;;  %2381 = vmatmul.mubr.f32.gmra.mxu1 %v7707_v36  ;;  %6322 = vmatprep.mubr.f32.mxu0 %v6630_v59  ;;  %v3251_v30 = vld [vmem:[%s9793_s3 + $0x28] sm:$0xff]  ;;  %v5751_v58 = vld [vmem:[%s9793_s3 + $0x2f0] sm:$0xff] }
 0x147   : > { %9880 = vst [vmem:[#allocation17_spill] sm:$0xff] %v8130_v34  ;;  %v962_v1 = vpop.f32.mrf.mxu0  ;;  %2385 = vmatprep.mubr.f32.mxu1 %v6631_v9  ;;  %3315 = vmatpush1.msra.mxu0 %v3251_v30  ;;  %v6637_v9 = vld [vmem:[#allocation2 + $0x139] sm:$0xff]  ;;  %v594_v54 = vld [vmem:[#allocation2 + $0x1a2] sm:$0xff] }
 0x148   : > { %9879 = vst [vmem:[#allocation16_spill] sm:$0xff] %v8128_v11  ;;  %v1613_v0 = vpop.f32.mrf.mxu1  ;;  %3316 = vmatprep.subr.mxu0 %v8133_v42  ;;  %v5716_v11 = vld [vmem:[%s9793_s3 + $0x1d8] sm:$0xff] }
 0x149   : > { %v965_v15 = vpop.f32.mrf.mxu0  ;;  %6323 = vmatmul.mubr.f32.gmra.mxu0 %v6633_v48  ;;  %v593_v0 = vld [vmem:[#allocation2 + $0x19a] sm:$0xff] }
 0x14a   : > { %v8140_v36 = vadd.f32 %v7967_v45, %v965_v15  ;;  %v8142_v14 = vpop.f32.mrf.mxu1  ;;  %2386 = vmatmul.mubr.f32.gmra.mxu1 %v7722_v40  ;;  %6325 = vmatprep.mubr.f32.mxu0 %v6634_v46  ;;  %v3250_v45 = vld [vmem:[%s9793_s3 + $0x20] sm:$0xff]  ;;  %v6636_v40 = vld [vmem:[#allocation2 + $0x172] sm:$0xff] }
 0x14b   : > { %9882 = vst [vmem:[#allocation19_spill] sm:$0xff] %v8142_v14  ;;  %v967_v21 = vpop.f32.mrf.mxu0  ;;  %2390 = vmatprep.mubr.f32.mxu1 %v6635_v13  ;;  %3317 = vmatpush1.msra.mxu0 %v3250_v45  ;;  %v3249_v15 = vld [vmem:[%s9793_s3 + $0x18] sm:$0xff]  ;;  %v3286_v48 = vld [vmem:[%s9793_s3 + $0x140] sm:$0xff] }
 0x14c   : > { %9881 = vst [vmem:[#allocation18_spill] sm:$0xff] %v8140_v36  ;;  %v1618_v50 = vpop.f32.mrf.mxu1  ;;  %3318 = vmatprep.subr.mxu0 %v8133_v42  ;;  %6348 = vmatprep.subr.mxu1 %v3286_v48  ;;  %v3285_v21 = vld [vmem:[%s9793_s3 + $0x138] sm:$0xff] }
 0x14d   : > { %v8152_v55 = vpop.f32.mrf.mxu0  ;;  %6326 = vmatmul.mubr.f32.gmra.mxu0 %v6636_v40  ;;  %v6638_v50 = vld [vmem:[#allocation2 + $0x141] sm:$0xff]  ;;  %6349 = vmatpush3.msra.mxu1 %v3286_v48 }
 0x14e   : > { %9883 = vst [vmem:[#allocation20_spill] sm:$0xff] %v8152_v55  ;;  %v8154_v59 = vpop.f32.mrf.mxu1  ;;  %2391 = vmatmul.mubr.f32.gmra.mxu1 %v7740_v6  ;;  %6328 = vmatprep.mubr.f32.mxu0 %v7971_v60 }
 0x14f   : > { %9884 = vst [vmem:[#allocation21_spill] sm:$0xff] %v8154_v59  ;;  %v972_v1 = vpop.f32.mrf.mxu0  ;;  %2395 = vmatprep.mubr.f32.mxu1 %v6637_v9  ;;  %3319 = vmatpush1.msra.mxu0 %v3249_v15 }
 0x150   : > { %v1623_v30 = vpop.f32.mrf.mxu1  ;;  %3320 = vmatprep.subr.mxu0 %v8133_v42  ;;  %6350 = vmatprep.subr.mxu1 %v3285_v21  ;;  %v3284_v1 = vld [vmem:[%s9793_s3 + $0x130] sm:$0xff] }
 0x151   : > { %v975_v46 = vpop.f32.mrf.mxu0  ;;  %6329 = vmatmul.mubr.f32.gmra.mxu0 %v7980_v5  ;;  %v3248_v5 = vld [vmem:[%s9793_s3 + $0x10] sm:$0xff]  ;;  %v3246_v30 = vld [vmem:[%s9793_s3] sm:$0xff]  ;;  %6351 = vmatpush3.msra.mxu1 %v3285_v21  ;;  %v3283_v21 = vld [vmem:[%s9793_s3 + $0x128] sm:$0xff] }
 0x152   : > { %v8167_v6 = vadd.f32 %v7982_v37, %v975_v46  ;;  %v8169_v60 = vpop.f32.mrf.mxu1  ;;  %2396 = vmatmul.mubr.f32.gmra.mxu1 %v7756_v23  ;;  %6331 = vmatprep.mubr.f32.mxu0 %v593_v0  ;;  %v3247_v23 = vld [vmem:[%s9793_s3 + $0x8] sm:$0xff]  ;;  %v6639_v0 = vld [vmem:[#allocation2 + $0x151] sm:$0xff] }
 0x153   : > { %9886 = vst [vmem:[#allocation23_spill] sm:$0xff] %v8169_v60  ;;  %v977_v13 = vpop.f32.mrf.mxu0  ;;  %2400 = vmatprep.mubr.f32.mxu1 %v6638_v50  ;;  %3321 = vmatpush1.msra.mxu0 %v3248_v5  ;;  %v6640_v50 = vld [vmem:[#allocation2 + $0x159] sm:$0xff]  ;;  %v3276_v5 = vld [vmem:[%s9793_s3 + $0xf0] sm:$0xff] }
 0x154   : > { %9885 = vst [vmem:[#allocation22_spill] sm:$0xff] %v8167_v6  ;;  %v1628_v37 = vpop.f32.mrf.mxu1  ;;  %3322 = vmatprep.subr.mxu0 %v8133_v42  ;;  %6352 = vmatprep.subr.mxu1 %v3284_v1 }
 0x155   : > { %v8179_v45 = vpop.f32.mrf.mxu0  ;;  %6332 = vmatmul.mubr.f32.gmra.mxu0 %v594_v54  ;;  %6353 = vmatpush3.msra.mxu1 %v3284_v1  ;;  %v6641_v1 = vld [vmem:[#allocation2 + $0x169] sm:$0xff] }
 0x156   : > { %v8184_v40 = vpop.f32.mrf.mxu1  ;;  %2401 = vmatmul.mubr.f32.gmra.mxu1 %v7769_v62  ;;  %3323 = vmatpush1.msra.mxu0 %v3247_v23  ;;  %v3277_v62 = vld [vmem:[%s9793_s3 + $0xf8] sm:$0xff] }
 0x157   : > { %9887 = vst [vmem:[#allocation24_spill] sm:$0xff] %v8184_v40  ;;  %v982_v9 = vpop.f32.mrf.mxu0  ;;  %2405 = vmatprep.mubr.f32.mxu1 %v6639_v0  ;;  %3324 = vmatprep.subr.mxu0 %v8133_v42  ;;  %v5707_v40 = vld [vmem:[%s9793_s3 + $0x190] sm:$0xff] }
 0x158   : > { %v1633_v15 = vpop.f32.mrf.mxu1  ;;  %3325 = vmatpush1.msra.mxu0 %v3246_v30  ;;  %6354 = vmatprep.subr.mxu1 %v3283_v21  ;;  %v3282_v9 = vld [vmem:[%s9793_s3 + $0x120] sm:$0xff] }
 0x159   : > { %v985_v48 = vpop.f32.mrf.mxu0  ;;  %3326 = vmatprep.subr.mxu0 %v8133_v42  ;;  %v3274_v30 = vld [vmem:[%s9793_s3 + $0xe0] sm:$0xff]  ;;  %6355 = vmatpush3.msra.mxu1 %v3283_v21  ;;  %v6642_v21 = vld [vmem:[#allocation2 + $0x171] sm:$0xff] }
 0x15a   : > { %v8199_v46 = vadd.f32 %v7992_v44, %v985_v48  ;;  %v8201_v54 = vpop.f32.mrf.mxu1  ;;  %2406 = vmatmul.mubr.f32.gmra.mxu1 %v7784_v63  ;;  %3327 = vmatpush2.msra.mxu0 %v3277_v62  ;;  %v3275_v63 = vld [vmem:[%s9793_s3 + $0xe8] sm:$0xff] }
 0x15b   : > { %9888 = vst [vmem:[#allocation25_spill] sm:$0xff] %v8201_v54  ;;  %v987_v13 = vpop.f32.mrf.mxu0  ;;  %2410 = vmatprep.mubr.f32.mxu1 %v6640_v50  ;;  %3328 = vmatprep.subr.mxu0 %v8133_v42 }
 0x15c   : > { %v1638_v44 = vpop.f32.mrf.mxu1  ;;  %3329 = vmatpush2.msra.mxu0 %v3276_v5  ;;  %6356 = vmatprep.subr.mxu1 %v3282_v9  ;;  %v3281_v13 = vld [vmem:[%s9793_s3 + $0x118] sm:$0xff]  ;;  %v3272_v5 = vld [vmem:[%s9793_s3 + $0xd0] sm:$0xff] }
 0x15d   : > { %v8211_v37 = vpop.f32.mrf.mxu0  ;;  %3330 = vmatprep.subr.mxu0 %v8133_v42  ;;  %6357 = vmatpush3.msra.mxu1 %v3282_v9  ;;  %v6643_v9 = vld [vmem:[#allocation2 + $0x181] sm:$0xff] }
 0x15e   : > { %v8217_v23 = vpop.f32.mrf.mxu1  ;;  %2411 = vmatmul.mubr.f32.gmra.mxu1 %v7797_v41  ;;  %3331 = vmatpush2.msra.mxu0 %v3275_v63  ;;  %v3273_v41 = vld [vmem:[%s9793_s3 + $0xd8] sm:$0xff] }
 0x15f   : > { %9889 = vst [vmem:[#allocation26_spill] sm:$0xff] %v8217_v23  ;;  %v992_v0 = vpop.f32.mrf.mxu0  ;;  %2415 = vmatprep.mubr.f32.mxu1 %v6641_v1  ;;  %3332 = vmatprep.subr.mxu0 %v8133_v42  ;;  %v3280_v1 = vld [vmem:[%s9793_s3 + $0x110] sm:$0xff] }
 0x160   : > { %v1643_v15 = vpop.f32.mrf.mxu1  ;;  %3333 = vmatpush2.msra.mxu0 %v3274_v30  ;;  %6358 = vmatprep.subr.mxu1 %v3281_v13 }
 0x161   : > { %v8227_v48 = vpop.f32.mrf.mxu0  ;;  %3334 = vmatprep.subr.mxu0 %v8133_v42  ;;  %v3270_v15 = vld [vmem:[%s9793_s3 + $0xc0] sm:$0xff]  ;;  %6359 = vmatpush3.msra.mxu1 %v3281_v13  ;;  %v6644_v13 = vld [vmem:[#allocation2 + $0x189] sm:$0xff] }
 0x162   : > { %v8233_v62 = vpop.f32.mrf.mxu1  ;;  %2416 = vmatmul.mubr.f32.gmra.mxu1 %v7812_v7  ;;  %3335 = vmatpush2.msra.mxu0 %v3273_v41  ;;  %v3271_v7 = vld [vmem:[%s9793_s3 + $0xc8] sm:$0xff] }
 0x163   : > { %9890 = vst [vmem:[#allocation27_spill] sm:$0xff] %v8233_v62  ;;  %v997_v50 = vpop.f32.mrf.mxu0  ;;  %2420 = vmatprep.mubr.f32.mxu1 %v6642_v21  ;;  %3336 = vmatprep.subr.mxu0 %v8133_v42 }
 0x164   : > { %v1648_v44 = vpop.f32.mrf.mxu1  ;;  %3337 = vmatpush2.msra.mxu0 %v3272_v5  ;;  %6360 = vmatprep.subr.mxu1 %v3280_v1  ;;  %v3279_v5 = vld [vmem:[%s9793_s3 + $0x108] sm:$0xff] }
 0x165   : > { %v8243_v63 = vpop.f32.mrf.mxu0  ;;  %3338 = vmatprep.subr.mxu0 %v8133_v42  ;;  %6361 = vmatpush3.msra.mxu1 %v3280_v1  ;;  %v3266_v1 = vld [vmem:[%s9793_s3 + $0xa0] sm:$0xff] }
 0x166   : > { %v8249_v0 = vpop.f32.mrf.mxu1  ;;  %2421 = vmatmul.mubr.f32.gmra.mxu1 %v7825_v12  ;;  %3339 = vmatpush2.msra.mxu0 %v3271_v7  ;;  %v3269_v12 = vld [vmem:[%s9793_s3 + $0xb8] sm:$0xff]  ;;  %v3268_v7 = vld [vmem:[%s9793_s3 + $0xb0] sm:$0xff] }
 0x167   : > { %9891 = vst [vmem:[#allocation28_spill] sm:$0xff] %v8249_v0  ;;  %v1002_v30 = vpop.f32.mrf.mxu0  ;;  %2425 = vmatprep.mubr.f32.mxu1 %v6643_v9  ;;  %3340 = vmatprep.subr.mxu0 %v8133_v42  ;;  %v521_v9 = vld [vmem:[#allocation2 + $0x199] sm:$0xff] }
 0x168   : > { %v1653_v41 = vpop.f32.mrf.mxu1  ;;  %3341 = vmatpush2.msra.mxu0 %v3270_v15  ;;  %6362 = vmatprep.subr.mxu1 %v3279_v5 }
 0x169   : > { %v8259_v50 = vpop.f32.mrf.mxu0  ;;  %3342 = vmatprep.subr.mxu0 %v8133_v42  ;;  %6363 = vmatpush3.msra.mxu1 %v3279_v5  ;;  %v3264_v5 = vld [vmem:[%s9793_s3 + $0x90] sm:$0xff] }
 0x16a   : > { %v8265_v21 = vpop.f32.mrf.mxu1  ;;  %2426 = vmatmul.mubr.f32.gmra.mxu1 %v7891_v53  ;;  %3343 = vmatpush2.msra.mxu0 %v3269_v12  ;;  %v3267_v53 = vld [vmem:[%s9793_s3 + $0xa8] sm:$0xff] }
 0x16b   : > { %9892 = vst [vmem:[#allocation29_spill] sm:$0xff] %v8265_v21  ;;  %v1007_v44 = vpop.f32.mrf.mxu0  ;;  %2430 = vmatprep.mubr.f32.mxu1 %v6644_v13  ;;  %3344 = vmatprep.subr.mxu0 %v8133_v42 }
 0x16c   : > { %v1658_v30 = vpop.f32.mrf.mxu1  ;;  %3345 = vmatpush2.msra.mxu0 %v3268_v7  ;;  %v3278_v44 = vld [vmem:[%s9793_s3 + $0x100] sm:$0xff] }
 0x16d   : > { %v8275_v41 = vpop.f32.mrf.mxu0  ;;  %3346 = vmatprep.subr.mxu0 %v8133_v42  ;;  %v522_v30 = vld [vmem:[#allocation2 + $0x1a1] sm:$0xff]  ;;  %6364 = vmatprep.subr.mxu1 %v3278_v44 }
 0x16e   : > { %v8281_v15 = vpop.f32.mrf.mxu1  ;;  %2431 = vmatmul.mubr.f32.gmra.mxu1 %v7905_v8  ;;  %3347 = vmatpush2.msra.mxu0 %v3267_v53  ;;  %v3265_v8 = vld [vmem:[%s9793_s3 + $0x98] sm:$0xff]  ;;  %v2942_v7 = vld [vmem:[#allocation2 + $0x1] sm:$0xff] }
 0x16f   : > { %9893 = vst [vmem:[#allocation30_spill] sm:$0xff] %v8281_v15  ;;  %v1012_v12 = vpop.f32.mrf.mxu0  ;;  %2435 = vmatprep.mubr.f32.mxu1 %v521_v9  ;;  %3348 = vmatprep.subr.mxu0 %v8133_v42 }
 0x170   : > { %v1663_v13 = vpop.f32.mrf.mxu1  ;;  %3349 = vmatpush2.msra.mxu0 %v3266_v1  ;;  %3358 = vmatprep.mubr.f32.mxu0 %v2942_v7  ;;  %v3263_v1 = vld [vmem:[%s9793_s3 + $0x88] sm:$0xff] }
 0x171   : > { %v8291_v6 = vpop.f32.mrf.mxu0  ;;  %3350 = vmatprep.subr.mxu0 %v8133_v42  ;;  %v3014_v13 = vld [vmem:[#allocation2 + $0x2] sm:$0xff]  ;;  %6365 = vmatpush3.msra.mxu1 %v3278_v44  ;;  %v3015_v7 = vld [vmem:[#allocation2 + $0xa] sm:$0xff]  ;;  %v5752_v44 = vld [vmem:[%s9793_s3 + $0x2f8] sm:$0xff] }
 0x172   : > { %v8297_v9 = vpop.f32.mrf.mxu1  ;;  %2436 = vmatmul.mubr.f32.gmra.mxu1 %v8133_v42  ;;  %3351 = vmatpush2.msra.mxu0 %v3265_v8  ;;  %v3262_v8 = vld [vmem:[%s9793_s3 + $0x80] sm:$0xff] }
 0x173   : > { %9894 = vst [vmem:[#allocation31_spill] sm:$0xff] %v8297_v9  ;;  %v1017_v12 = vpop.f32.mrf.mxu0  ;;  %2440 = vmatprep.mubr.f32.mxu1 %v522_v30  ;;  %3352 = vmatprep.subr.mxu0 %v8133_v42 }
 0x174   : > { %v1668_v53 = vpop.f32.mrf.mxu1  ;;  %3353 = vmatpush2.msra.mxu0 %v3264_v5  ;;  %3985 = vmatprep.subr.mxu1 %v8133_v42  ;;  %v2943_v5 = vld [vmem:[#allocation2 + $0x9] sm:$0xff] }
 0x175   : > { %v8304_v36 = vpop.f32.mrf.mxu0  ;;  %3354 = vmatprep.subr.mxu0 %v8133_v42 }
 0x176   : > { %v8310_v30 = vpop.f32.mrf.mxu1  ;;  %2441 = vmatmul.mubr.f32.gmra.mxu1 %v8133_v42  ;;  %3355 = vmatpush2.msra.mxu0 %v3263_v1 }
 0x177   : > { %v1022_v12 = vpop.f32.mrf.mxu0  ;;  %6366 = vmatprep.mubr.f32.mxu1 %v3014_v13  ;;  %3356 = vmatprep.subr.mxu0 %v8133_v42 }
 0x178   : > { %v1673_v53 = vpop.f32.mrf.mxu1  ;;  %3357 = vmatpush2.msra.mxu0 %v3262_v8 }
 0x179   : > { %v8321_v9 = vpop.f32.mrf.mxu0  ;;  %3359 = vmatmul.mubr.f32.vlgmr.msra.gmra.mxu0 %v8133_v42  ;;  %6414 = vmatprep.subr.mxu0 %v5752_v44 }
 0x17a   : > { %v8324_v12 = vpop.f32.mrf.mxu1  ;;  %6367 = vmatmul.mubr.f32.vlgmr.msra.gmra.mxu1 %v3015_v7  ;;  %6415 = vmatpush3.msra.mxu0 %v5752_v44 }
 0x17b   : > { %v1027_v21 = vpop.f32.mrf.mxu0  ;;  %3363 = vmatprep.mubr.f32.mxu0 %v2943_v5  ;;  %6416 = vmatprep.subr.mxu0 %v5751_v58 }
 0x17c   : > { %v1678_v13 = vpop.f32.mrf.mxu1  ;;  %6417 = vmatpush3.msra.mxu0 %v5751_v58 }
 0x17d   : > { %v8327_v1 = vpop.f32.mrf.mxu0  ;;  %3364 = vmatmul.mubr.f32.gmra.mxu0 %v8133_v42  ;;  %v5720_v13 = vld [vmem:[%s9793_s3 + $0x1f8] sm:$0xff] }
 0x17e   : > { %v8329_v53 = vpop.f32.mrf.mxu1  ;;  %3986 = vmatpush1.msra.mxu1 %v5720_v13  ;;  %v5718_v13 = vld [vmem:[%s9793_s3 + $0x1e8] sm:$0xff] }
 0x17f   : > { %v1032_v15 = vpop.f32.mrf.mxu0  ;;  %3987 = vmatprep.subr.mxu1 %v8133_v42 }
 0x180   : > { %v1683_v8 = vpop.f32.mrf.mxu1 }
 0x181   : > { %v8335_v21 = vpop.f32.mrf.mxu0  ;;  %v5719_v8 = vld [vmem:[%s9793_s3 + $0x1f0] sm:$0xff] }
 0x182   : > { %v8337_v7 = vpop.f32.mrf.mxu1  ;;  %3988 = vmatpush1.msra.mxu1 %v5719_v8  ;;  %v5717_v8 = vld [vmem:[%s9793_s3 + $0x1e0] sm:$0xff] }
 0x183   : > { %v1037_v44 = vpop.f32.mrf.mxu0  ;;  %3989 = vmatprep.subr.mxu1 %v8133_v42 }
 0x184   : > { %v1688_v5 = vpop.f32.mrf.mxu1  ;;  %v5750_v44 = vld [vmem:[%s9793_s3 + $0x2e8] sm:$0xff]  ;;  %3990 = vmatpush1.msra.mxu1 %v5718_v13  ;;  %v5715_v13 = vld [vmem:[%s9793_s3 + $0x1d0] sm:$0xff] }
 0x185   : > { %v8342_v15 = vpop.f32.mrf.mxu0  ;;  %6418 = vmatprep.subr.mxu0 %v5750_v44  ;;  %3991 = vmatprep.subr.mxu1 %v8133_v42 }
 0x186   : > { %v8344_v62 = vpop.f32.mrf.mxu1  ;;  %6419 = vmatpush3.msra.mxu0 %v5750_v44  ;;  %3992 = vmatpush1.msra.mxu1 %v5717_v8  ;;  %v5749_v8 = vld [vmem:[%s9793_s3 + $0x2e0] sm:$0xff] }
 0x187   : > { %v1042_v58 = vpop.f32.mrf.mxu0  ;;  %3993 = vmatprep.subr.mxu1 %v8133_v42  ;;  %6420 = vmatprep.subr.mxu0 %v5749_v8 }
 0x188   : > { %v1693_v5 = vpop.f32.mrf.mxu1  ;;  %3994 = vmatpush1.msra.mxu1 %v5716_v11  ;;  %v5714_v11 = vld [vmem:[%s9793_s3 + $0x1c8] sm:$0xff]  ;;  %6421 = vmatpush3.msra.mxu0 %v5749_v8 }
 0x189   : > { %v8357_v33 = vpop.f32.mrf.mxu0  ;;  %3995 = vmatprep.subr.mxu1 %v8133_v42 }
 0x18a   : > { %v8359_v55 = vpop.f32.mrf.mxu1  ;;  %3996 = vmatpush1.msra.mxu1 %v5715_v13  ;;  %v5713_v13 = vld [vmem:[%s9793_s3 + $0x1c0] sm:$0xff] }
 0x18b   : > { %v1047_v58 = vpop.f32.mrf.mxu0  ;;  %3997 = vmatprep.subr.mxu1 %v8133_v42 }
 0x18c   : > { %v1698_v5 = vpop.f32.mrf.mxu1  ;;  %3998 = vmatpush1.msra.mxu1 %v5714_v11  ;;  %v5711_v11 = vld [vmem:[%s9793_s3 + $0x1b0] sm:$0xff] }
 0x18d   : > { %v8369_v0 = vpop.f32.mrf.mxu0  ;;  %3999 = vmatprep.subr.mxu1 %v8133_v42 }
 0x18e   : > { %v8371_v44 = vpop.f32.mrf.mxu1  ;;  %4000 = vmatpush1.msra.mxu1 %v5713_v13  ;;  %v5748_v13 = vld [vmem:[%s9793_s3 + $0x2d8] sm:$0xff] }
 0x18f   : > { %v1052_v58 = vpop.f32.mrf.mxu0  ;;  %4001 = vmatprep.subr.mxu1 %v8133_v42  ;;  %6422 = vmatprep.subr.mxu0 %v5748_v13 }
 0x190   : > { %v1703_v5 = vpop.f32.mrf.mxu1  ;;  %4002 = vmatpush1.msra.mxu1 %v5712_v16  ;;  %v5710_v16 = vld [vmem:[%s9793_s3 + $0x1a8] sm:$0xff]  ;;  %6423 = vmatpush3.msra.mxu0 %v5748_v13 }
 0x191   : > { %v8384_v17 = vpop.f32.mrf.mxu0  ;;  %4003 = vmatprep.subr.mxu1 %v8133_v42 }
 0x192   : > { %v8386_v54 = vpop.f32.mrf.mxu1  ;;  %4004 = vmatpush1.msra.mxu1 %v5711_v11  ;;  %v5709_v11 = vld [vmem:[%s9793_s3 + $0x1a0] sm:$0xff] }
 0x193   : > { %v1057_v58 = vpop.f32.mrf.mxu0  ;;  %4005 = vmatprep.subr.mxu1 %v8133_v42 }
 0x194   : > { %v1708_v5 = vpop.f32.mrf.mxu1  ;;  %4006 = vmatpush1.msra.mxu1 %v5710_v16 }
 0x195   : > { %v8396_v23 = vpop.f32.mrf.mxu0  ;;  %4007 = vmatprep.subr.mxu1 %v8133_v42 }
 0x196   : > { %v8398_v8 = vpop.f32.mrf.mxu1  ;;  %4008 = vmatpush1.msra.mxu1 %v5709_v11  ;;  %v5747_v11 = vld [vmem:[%s9793_s3 + $0x2d0] sm:$0xff] }
 0x197   : > { %v1062_v58 = vpop.f32.mrf.mxu0  ;;  %4009 = vmatprep.subr.mxu1 %v8133_v42  ;;  %6424 = vmatprep.subr.mxu0 %v5747_v11 }
 0x198   : > { %v1713_v5 = vpop.f32.mrf.mxu1  ;;  %4010 = vmatpush1.msra.mxu1 %v5708_v35  ;;  %v5706_v35 = vld [vmem:[%s9793_s3 + $0x188] sm:$0xff]  ;;  %6425 = vmatpush3.msra.mxu0 %v5747_v11 }
 0x199   : > { %v8411_v32 = vpop.f32.mrf.mxu0  ;;  %4011 = vmatprep.subr.mxu1 %v8133_v42 }
 0x19a   : > { %v8413_v60 = vpop.f32.mrf.mxu1  ;;  %4012 = vmatpush1.msra.mxu1 %v5707_v40  ;;  %v5705_v40 = vld [vmem:[%s9793_s3 + $0x180] sm:$0xff] }
 0x19b   : > { %v8419_v58 = vpop.f32.mrf.mxu0  ;;  %4013 = vmatprep.subr.mxu1 %v8133_v42 }
 0x19c   : > { %v1718_v5 = vpop.f32.mrf.mxu1  ;;  %4014 = vmatpush1.msra.mxu1 %v5706_v35 }
 0x19d   : > { %v8425_v13 = vpop.f32.mrf.mxu0  ;;  %4015 = vmatprep.subr.mxu1 %v8133_v42 }
 0x19e   : > { %9895 = vst [vmem:[#allocation32_spill] sm:$0xff] %v8425_v13  ;;  %v8427_v16 = vpop.f32.mrf.mxu1  ;;  %4016 = vmatpush1.msra.mxu1 %v5705_v40 }
 0x19f   : > { %v8433_v31 = vpop.f32.mrf.mxu0  ;;  %4017 = vmatprep.subr.mxu1 %v8133_v42 }
 0x1a0   : > { %9896 = vst [vmem:[#allocation33_spill] sm:$0xff] %v8433_v31  ;;  %v1723_v5 = vpop.f32.mrf.mxu1  ;;  %v5731_v31 = vld [vmem:[%s9793_s3 + $0x250] sm:$0xff] }
 0x1a1   : > { %v8442_v14 = vpop.f32.mrf.mxu0 }
 0x1a2   : > { %9897 = vst [vmem:[#allocation34_spill] sm:$0xff] %v8442_v14  ;;  %v8444_v10 = vpop.f32.mrf.mxu1  ;;  %v5736_v14 = vld [vmem:[%s9793_s3 + $0x278] sm:$0xff] }
 0x1a3   : > { %v8450_v5 = vpop.f32.mrf.mxu0  ;;  %4018 = vmatpush2.msra.mxu1 %v5736_v14  ;;  %v5734_v14 = vld [vmem:[%s9793_s3 + $0x268] sm:$0xff] }
 0x1a4   : > { %9898 = vst [vmem:[#allocation35_spill] sm:$0xff] %v8450_v5  ;;  %v1728_v59 = vpop.f32.mrf.mxu1  ;;  %4019 = vmatprep.subr.mxu1 %v8133_v42 }
 0x1a5   : > { %v8456_v11 = vpop.f32.mrf.mxu0  ;;  %v5746_v59 = vld [vmem:[%s9793_s3 + $0x2c8] sm:$0xff]  ;;  %4020 = vmatpush2.msra.mxu1 %v5735_v61  ;;  %v5733_v61 = vld [vmem:[%s9793_s3 + $0x260] sm:$0xff] }
 0x1a6   : > { %9899 = vst [vmem:[#allocation36_spill] sm:$0xff] %v8456_v11  ;;  %v8458_v35 = vpop.f32.mrf.mxu1  ;;  %6426 = vmatprep.subr.mxu0 %v5746_v59  ;;  %4021 = vmatprep.subr.mxu1 %v8133_v42 }
 0x1a7   : > { %v8464_v5 = vpop.f32.mrf.mxu0  ;;  %6427 = vmatpush3.msra.mxu0 %v5746_v59  ;;  %4022 = vmatpush2.msra.mxu1 %v5734_v14 }
 0x1a8   : > { %9900 = vst [vmem:[#allocation37_spill] sm:$0xff] %v8464_v5  ;;  %v1733_v40 = vpop.f32.mrf.mxu1  ;;  %4023 = vmatprep.subr.mxu1 %v8133_v42 }
 0x1a9   : > { %v8473_v11 = vpop.f32.mrf.mxu0  ;;  %4024 = vmatpush2.msra.mxu1 %v5733_v61 }
 0x1aa   : > { %9901 = vst [vmem:[#allocation38_spill] sm:$0xff] %v8473_v11  ;;  %v8475_v43 = vpop.f32.mrf.mxu1  ;;  %4025 = vmatprep.subr.mxu1 %v8133_v42  ;;  %v5732_v11 = vld [vmem:[%s9793_s3 + $0x258] sm:$0xff] }
 0x1ab   : > { %v8481_v40 = vpop.f32.mrf.mxu0  ;;  %4026 = vmatpush2.msra.mxu1 %v5732_v11  ;;  %v5730_v11 = vld [vmem:[%s9793_s3 + $0x248] sm:$0xff] }
 0x1ac   : > { %9902 = vst [vmem:[#allocation39_spill] sm:$0xff] %v8481_v40  ;;  %v1738_v5 = vpop.f32.mrf.mxu1  ;;  %4027 = vmatprep.subr.mxu1 %v8133_v42 }
 0x1ad   : > { %v8487_v59 = vpop.f32.mrf.mxu0  ;;  %v5745_v5 = vld [vmem:[%s9793_s3 + $0x2c0] sm:$0xff]  ;;  %4028 = vmatpush2.msra.mxu1 %v5731_v31 }
 0x1ae   : > { %9903 = vst [vmem:[#allocation40_spill] sm:$0xff] %v8487_v59  ;;  %v8489_v14 = vpop.f32.mrf.mxu1  ;;  %6428 = vmatprep.subr.mxu0 %v5745_v5  ;;  %4029 = vmatprep.subr.mxu1 %v8133_v42  ;;  %v5729_v31 = vld [vmem:[%s9793_s3 + $0x240] sm:$0xff] }
 0x1af   : > { %v8495_v40 = vpop.f32.mrf.mxu0  ;;  %6429 = vmatpush3.msra.mxu0 %v5745_v5  ;;  %4030 = vmatpush2.msra.mxu1 %v5730_v11  ;;  %v5728_v5 = vld [vmem:[%s9793_s3 + $0x238] sm:$0xff] }
 0x1b0   : > { %9904 = vst [vmem:[#allocation41_spill] sm:$0xff] %v8495_v40  ;;  %v1743_v61 = vpop.f32.mrf.mxu1  ;;  %v1206_v40 = vadd.f32 %v7973_v18, %v8179_v45  ;;  %4031 = vmatprep.subr.mxu1 %v8133_v42  ;;  %v1216_v45 = vadd.f32 %v7986_v19, %v8211_v37  ;;  %v5726_v37 = vld [vmem:[%s9793_s3 + $0x228] sm:$0xff] }
 0x1b1   : > { %v8504_v59 = vpop.f32.mrf.mxu0  ;;  %4032 = vmatpush2.msra.mxu1 %v5729_v31 }
 0x1b2   : > { %9905 = vst [vmem:[#allocation42_spill] sm:$0xff] %v8504_v59  ;;  %v8508_v29 = vpop.f32.mrf.mxu1  ;;  %4033 = vmatprep.subr.mxu1 %v8133_v42  ;;  %v1304_v18 = vadd.f32 %v8133_v42, %v1206_v40 }
 0x1b3   : > { %v8514_v61 = vpop.f32.mrf.mxu0  ;;  %4034 = vmatpush2.msra.mxu1 %v5728_v5  ;;  %v5744_v5 = vld [vmem:[%s9793_s3 + $0x2b8] sm:$0xff] }
 0x1b4   : > { %v1748_v13 = vpop.f32.mrf.mxu1  ;;  %4035 = vmatprep.subr.mxu1 %v8133_v42  ;;  %6430 = vmatprep.subr.mxu0 %v5744_v5 }
 0x1b5   : > { %v6229_v11 = vpop.f32.mrf.mxu0  ;;  %v5727_v13 = vld [vmem:[%s9793_s3 + $0x230] sm:$0xff]  ;;  %6431 = vmatpush3.msra.mxu0 %v5744_v5 }
 0x1b6   : > { %v8523_v59 = vpop.f32.mrf.mxu1  ;;  %v1897_v34 = vadd.f32 %v6229_v11, %v8310_v30  ;;  %4036 = vmatpush2.msra.mxu1 %v5727_v13  ;;  %v1306_v11 = vadd.f32 %v8133_v42, %v1216_v45  ;;  %v1305_v45 = vadd.f32 %v8133_v42, %v8199_v46 }
 0x1b7   : > { %v8530_v31 = vpop.f32.mrf.mxu0  ;;  %4037 = vmatprep.subr.mxu1 %v8133_v42 }
 0x1b8   : > { %9906 = vst [vmem:[#allocation43_spill] sm:$0xff] %v8530_v31  ;;  %v8535_v40 = vadd.f32 %v1897_v34, %v1304_v18  ;;  %v1753_v19 = vpop.f32.mrf.mxu1  ;;  %4038 = vmatpush2.msra.mxu1 %v5726_v37  ;;  %v1226_v31 = vadd.f32 %v7999_v25, %v8243_v63  ;;  %v5725_v18 = vld [vmem:[%s9793_s3 + $0x220] sm:$0xff] }
 0x1b9   : > { %v6232_v30 = vpop.f32.mrf.mxu0  ;;  %4039 = vmatprep.subr.mxu1 %v8133_v42  ;;  %v1221_v19 = vadd.f32 %v8004_v20, %v8227_v48 }
 0x1ba   : > { %v1907_v13 = vadd.f32 %v6232_v30, %v8329_v53  ;;  %v8545_v34 = vpop.f32.mrf.mxu1  ;;  %4040 = vmatpush2.msra.mxu1 %v5725_v18  ;;  %v5724_v53 = vld [vmem:[%s9793_s3 + $0x218] sm:$0xff]  ;;  %v1236_v30 = vadd.f32 %v8010_v51, %v8275_v41  ;;  %v1308_v48 = vadd.f32 %v8133_v42, %v1226_v31  ;;  %v5743_v51 = vld [vmem:[%s9793_s3 + $0x2b0] sm:$0xff]  ;;  %v5742_v41 = vld [vmem:[%s9793_s3 + $0x2a8] sm:$0xff] }
 0x1bb   : > { %v1901_v5 = vpop.f32.mrf.mxu0  ;;  %4041 = vmatprep.subr.mxu1 %v8133_v42  ;;  %6432 = vmatprep.subr.mxu0 %v5743_v51 }
 0x1bc   : > { %v8555_v37 = vadd.f32 %v1907_v13, %v1306_v11  ;;  %v1902_v25 = vadd.f32 %v1901_v5, %v8324_v12  ;;  %v2289_v63 = vpop.f32.mrf.mxu1  ;;  %4042 = vmatpush2.msra.mxu1 %v5724_v53  ;;  %v5723_v12 = vld [vmem:[%s9793_s3 + $0x210] sm:$0xff]  ;;  %v1307_v13 = vadd.f32 %v8133_v42, %v1221_v19  ;;  %v5722_v19 = vld [vmem:[%s9793_s3 + $0x208] sm:$0xff]  ;;  %6433 = vmatpush3.msra.mxu0 %v5743_v51 }
 0x1bd   : > { %v6235_v20 = vpop.f32.mrf.mxu0  ;;  %4043 = vmatprep.subr.mxu1 %v8133_v42  ;;  %v1310_v63 = vadd.f32 %v8133_v42, %v1236_v30  ;;  %6434 = vmatprep.subr.mxu0 %v5742_v41 }
 0x1be   : > { %v8565_v18 = vadd.f32 %v1902_v25, %v1305_v45  ;;  %v1917_v46 = vadd.f32 %v6235_v20, %v8344_v62  ;;  %v8568_v11 = vpop.f32.mrf.mxu1  ;;  %4044 = vmatpush2.msra.mxu1 %v5723_v12  ;;  %v1231_v62 = vadd.f32 %v8012_v2, %v8259_v50  ;;  %v5741_v2 = vld [vmem:[%s9793_s3 + $0x2a0] sm:$0xff]  ;;  %6435 = vmatpush3.msra.mxu0 %v5742_v41 }
 0x1bf   : > { %v1911_v5 = vpop.f32.mrf.mxu0  ;;  %4045 = vmatprep.subr.mxu1 %v8133_v42  ;;  %v5721_v50 = vld [vmem:[%s9793_s3 + $0x200] sm:$0xff]  ;;  %6436 = vmatprep.subr.mxu0 %v5741_v2 }
 0x1c0   : > { %v8583_v31 = vadd.f32 %v1917_v46, %v1308_v48  ;;  %v1912_v45 = vadd.f32 %v1911_v5, %v8337_v7  ;;  %v2294_v25 = vpop.f32.mrf.mxu1  ;;  %4046 = vmatpush2.msra.mxu1 %v5722_v19  ;;  %v1246_v7 = vadd.f32 %v8021_v26, %v8304_v36  ;;  %v1309_v12 = vadd.f32 %v8133_v42, %v1231_v62 }
 0x1c1   : > { %v6238_v53 = vpop.f32.mrf.mxu0  ;;  %4047 = vmatprep.subr.mxu1 %v8133_v42  ;;  %v1241_v5 = vadd.f32 %v8029_v3, %v8291_v6  ;;  %6437 = vmatpush3.msra.mxu0 %v5741_v2  ;;  %v1256_v62 = vadd.f32 %v8036_v24, %v8327_v1  ;;  %v1251_v19 = vadd.f32 %v8043_v39, %v8321_v9 }
 0x1c2   : > { %v8599_v20 = vadd.f32 %v1912_v45, %v1307_v13  ;;  %v1927_v48 = vadd.f32 %v6238_v53, %v8371_v44  ;;  %v8602_v46 = vpop.f32.mrf.mxu1  ;;  %4048 = vmatpush2.msra.mxu1 %v5721_v50  ;;  %v5740_v13 = vld [vmem:[%s9793_s3 + $0x298] sm:$0xff]  ;;  %v1312_v41 = vadd.f32 %v8133_v42, %v1246_v7  ;;  %v1266_v1 = vadd.f32 %v8048_v28, %v8342_v15  ;;  %v5739_v28 = vld [vmem:[%s9793_s3 + $0x290] sm:$0xff] }
 0x1c3   : > { %v1921_v30 = vpop.f32.mrf.mxu0  ;;  %6438 = vmatprep.subr.mxu0 %v5740_v13  ;;  %v1311_v25 = vadd.f32 %v8133_v42, %v1241_v5  ;;  %v1314_v24 = vadd.f32 %v8133_v42, %v1256_v62  ;;  %v1313_v39 = vadd.f32 %v8133_v42, %v1251_v19 }
 0x1c4   : > { %v8608_v51 = vadd.f32 %v1927_v48, %v1310_v63  ;;  %v1922_v26 = vadd.f32 %v1921_v30, %v8359_v55  ;;  %v2299_v36 = vpop.f32.mrf.mxu1  ;;  %6439 = vmatpush3.msra.mxu0 %v5740_v13  ;;  %v1316_v15 = vadd.f32 %v8133_v42, %v1266_v1 }
 0x1c5   : > { %v6241_v44 = vpop.f32.mrf.mxu0  ;;  %6440 = vmatprep.subr.mxu0 %v5739_v28 }
 0x1c6   : > { %v8617_v45 = vadd.f32 %v1922_v26, %v1309_v12  ;;  %v1937_v3 = vadd.f32 %v6241_v44, %v8398_v8  ;;  %v8620_v6 = vpop.f32.mrf.mxu1  ;;  %6441 = vmatpush3.msra.mxu0 %v5739_v28 }
 0x1c7   : > { %v1931_v55 = vpop.f32.mrf.mxu0 }
 0x1c8   : > { %v2003_v63 = vadd.f32 %v1937_v3, %v1312_v41  ;;  %v1932_v53 = vadd.f32 %v1931_v55, %v8386_v54  ;;  %v2304_v2 = vpop.f32.mrf.mxu1  ;;  %v1261_v54 = vadd.f32 %v8058_v57, %v8335_v21  ;;  %v1271_v21 = vadd.f32 %v8073_v52, %v8357_v33 }
 0x1c9   : > { %v6244_v50 = vpop.f32.mrf.mxu0  ;;  %v1286_v55 = vadd.f32 %v8078_v22, %v8396_v23  ;;  %v5738_v22 = vld [vmem:[%s9793_s3 + $0x288] sm:$0xff] }
 0x1ca   : > { %2035 = vst [vmem:[#allocation4 + $0xb8] sm:$0xff] %v2003_v63  ;;  %v8629_v8 = vadd.f32 %v1932_v53, %v1311_v25  ;;  %v1947_v7 = vadd.f32 %v6244_v50, %v8427_v16  ;;  %v8632_v48 = vpop.f32.mrf.mxu1  ;;  %v1276_v16 = vadd.f32 %v8064_v27, %v8369_v0  ;;  %v8654_v27 = vld [vmem:[%s9793_s3 + $0x478] sm:$0xff]  ;;  %v1317_v19 = vadd.f32 %v8133_v42, %v1271_v21 }
 0x1cb   : > { %v1941_v30 = vpop.f32.mrf.mxu0  ;;  %6494 = vmatprep.subr.mxu1 %v8654_v27  ;;  %v1281_v63 = vadd.f32 %v8085_v56, %v8384_v17  ;;  %v1320_v23 = vadd.f32 %v8133_v42, %v1286_v55  ;;  %6442 = vmatprep.subr.mxu0 %v5738_v22 }
 0x1cc   : > { %v2005_v9 = vadd.f32 %v1947_v7, %v1314_v24  ;;  %v1942_v12 = vadd.f32 %v1941_v30, %v8413_v60  ;;  %v2309_v5 = vpop.f32.mrf.mxu1  ;;  %v1315_v60 = vadd.f32 %v8133_v42, %v1261_v54  ;;  %6443 = vmatpush3.msra.mxu0 %v5738_v22  ;;  %v9916_v22 = vld [vmem:[#allocation19_spill] sm:$0xff] }
 0x1cd   : > { %v6247_v26 = vpop.f32.mrf.mxu0  ;;  %v1319_v30 = vadd.f32 %v8133_v42, %v1281_v63  ;;  %v9907_v5 = vld [vmem:[#allocation17_spill] sm:$0xff] }
 0x1ce   : > { %2037 = vst [vmem:[#allocation4 + $0xc8] sm:$0xff] %v2005_v9  ;;  %v2004_v36 = vadd.f32 %v1942_v12, %v1313_v39  ;;  %v1957_v44 = vadd.f32 %v6247_v26, %v8458_v35  ;;  %v8645_v13 = vpop.f32.mrf.mxu1  ;;  %v1318_v35 = vadd.f32 %v8133_v42, %v1276_v16  ;;  %v1822_v39 = vadd.f32 %v8419_v58, %v8094_v47  ;;  %v9908_v26 = vld [vmem:[#allocation32_spill] sm:$0xff]  ;;  %v9909_v47 = vld [vmem:[#allocation15_spill] sm:$0xff]  ;;  %v9910_v58 = vld [vmem:[#allocation33_spill] sm:$0xff] }
 0x1cf   : > { %v1951_v57 = vpop.f32.mrf.mxu0 }
 0x1d0   : > { %2036 = vst [vmem:[#allocation4 + $0xc0] sm:$0xff] %v2004_v36  ;;  %v2007_v41 = vadd.f32 %v1957_v44, %v1316_v15  ;;  %v1952_v62 = vadd.f32 %v1951_v57, %v8444_v10  ;;  %v2314_v3 = vpop.f32.mrf.mxu1  ;;  %v1832_v36 = vadd.f32 %v9910_v58, %v9909_v47  ;;  %v9911_v44 = vld [vmem:[#allocation7_spill] sm:$0xff] }
 0x1d1   : > { %v6250_v0 = vpop.f32.mrf.mxu0 }
 0x1d2   : > { %2039 = vst [vmem:[#allocation4 + $0xd8] sm:$0xff] %v2007_v41  ;;  %v2006_v33 = vadd.f32 %v1952_v62, %v1315_v60  ;;  %v1967_v52 = vadd.f32 %v6250_v0, %v8489_v14  ;;  %v8661_v25 = vpop.f32.mrf.mxu1  ;;  %v1827_v14 = vadd.f32 %v8411_v32, %v8107_v4  ;;  %v9912_v62 = vld [vmem:[#allocation6_spill] sm:$0xff]  ;;  %v9913_v0 = vld [vmem:[#allocation21_spill] sm:$0xff] }
 0x1d3   : > { %v1961_v10 = vpop.f32.mrf.mxu0 }
 0x1d4   : > { %2038 = vst [vmem:[#allocation4 + $0xd0] sm:$0xff] %v2006_v33  ;;  %v2009_v53 = vadd.f32 %v1967_v52, %v1318_v35  ;;  %v1962_v2 = vadd.f32 %v1961_v10, %v8475_v43  ;;  %v2319_v50 = vpop.f32.mrf.mxu1  ;;  %v1290_v43 = vadd.f32 %v8133_v42, %v8002_v49  ;;  %v1837_v49 = vadd.f32 %v9908_v26, %v9907_v5  ;;  %v9914_v35 = vld [vmem:[#allocation34_spill] sm:$0xff]  ;;  %v5737_v52 = vld [vmem:[%s9793_s3 + $0x280] sm:$0xff] }
 0x1d5   : > { %v6253_v24 = vpop.f32.mrf.mxu0  ;;  %v1847_v55 = vadd.f32 %v9914_v35, %v9913_v0  ;;  %6444 = vmatprep.subr.mxu0 %v5737_v52  ;;  %v9925_v35 = vld [vmem:[#allocation26_spill] sm:$0xff] }
 0x1d6   : > { %2041 = vst [vmem:[#allocation4 + $0xe8] sm:$0xff] %v2009_v53  ;;  %v2008_v1 = vadd.f32 %v1962_v2, %v1317_v19  ;;  %v1977_v7 = vadd.f32 %v6253_v24, %v8523_v59  ;;  %v8674_v56 = vpop.f32.mrf.mxu1  ;;  %v1289_v59 = vadd.f32 %v8133_v42, %v7990_v38  ;;  %v1981_v12 = vadd.f32 %v1827_v14, %v1290_v43  ;;  %v8696_v42 = vld [vmem:[#allocation2] sm:$0xff] }
 0x1d7   : > { %v1971_v17 = vpop.f32.mrf.mxu0  ;;  %v1292_v57 = vadd.f32 %v8696_v42, %v9911_v44  ;;  %v1291_v3 = vadd.f32 %v8696_v42, %v9912_v62  ;;  %6445 = vmatpush3.msra.mxu0 %v5737_v52 }
 0x1d8   : > { %2040 = vst [vmem:[#allocation4 + $0xe0] sm:$0xff] %v2008_v1  ;;  %v2011_v54 = vadd.f32 %v1977_v7, %v1320_v23  ;;  %v1972_v32 = vadd.f32 %v1971_v17, %v8508_v29  ;;  %v2324_v4 = vpop.f32.mrf.mxu1  ;;  %v8694_v29 = vld [vmem:[%s9792_s2] ss:$0 sm:$0xff]  ;;  %v1980_v60 = vadd.f32 %v1822_v39, %v1289_v59  ;;  %4676 = vmatprep.subr.mxu0 %v8696_v42  ;;  %v9920_v59 = vld [vmem:[#allocation36_spill] sm:$0xff] }
 0x1d9   : > { %v6288_v9 = vpop.f32.mrf.mxu0  ;;  %v1983_v10 = vadd.f32 %v1837_v49, %v1292_v57  ;;  %v1982_v24 = vadd.f32 %v1832_v36, %v1291_v3  ;;  %v9917_v23 = vld [vmem:[#allocation35_spill] sm:$0xff]  ;;  %v9919_v4 = vld [vmem:[#allocation24_spill] sm:$0xff] }
 0x1da   : > { %2043 = vst [vmem:[#allocation4 + $0xf8] sm:$0xff] %v2011_v54  ;;  %v2010_v28 = vadd.f32 %v1972_v32, %v1319_v30  ;;  %v8686_v15 = vpop.f32.mrf.mxu1  ;;  %v2518_v16 = vadd.f32 %v6288_v9, %v8568_v11  ;;  %v1842_v14 = vadd.f32 %v9917_v23, %v9916_v22  ;;  %v1857_v9 = vadd.f32 %v9920_v59, %v9919_v4  ;;  %v9922_v36 = vld [vmem:[#allocation23_spill] sm:$0xff]  ;;  %v9928_v22 = vld [vmem:[#allocation25_spill] sm:$0xff]  ;;  %v9931_v4 = vld [vmem:[#allocation28_spill] sm:$0xff] }
 0x1db   : > { %v2512_v38 = vpop.f32.mrf.mxu0  ;;  %v9929_v23 = vld [vmem:[#allocation39_spill] sm:$0xff]  ;;  %v9932_v59 = vld [vmem:[#allocation40_spill] sm:$0xff] }
 0x1dc   : > { %2042 = vst [vmem:[#allocation4 + $0xf0] sm:$0xff] %v2010_v28  ;;  %v2672_v21 = vadd.f32 %v2518_v16, %v1981_v12  ;;  %v2329_v41 = vpop.f32.mrf.mxu1  ;;  %v2513_v11 = vadd.f32 %v2512_v38, %v8545_v34  ;;  %v9915_v34 = vld [vmem:[#allocation9_spill] sm:$0xff]  ;;  %v9921_v16 = vld [vmem:[#allocation11_spill] sm:$0xff] }
 0x1dd   : > { %v6291_v33 = vpop.f32.mrf.mxu0  ;;  %v1294_v50 = vadd.f32 %v8696_v42, %v9915_v34  ;;  %v1296_v47 = vadd.f32 %v8696_v42, %v9921_v16  ;;  %v9923_v38 = vld [vmem:[#allocation37_spill] sm:$0xff] }
 0x1de   : > { %v2775_v19 = vadd.f32 %v8694_v29, %v2672_v21  ;;  %v2671_v63 = vadd.f32 %v2513_v11, %v1980_v60  ;;  %v8709_v53 = vpop.f32.mrf.mxu1  ;;  %v2528_v2 = vadd.f32 %v6291_v33, %v8620_v6  ;;  %v9918_v6 = vld [vmem:[#allocation8_spill] sm:$0xff]  ;;  %v1852_v44 = vadd.f32 %v9923_v38, %v9922_v36  ;;  %v9927_v34 = vld [vmem:[#allocation13_spill] sm:$0xff] }
 0x1df   : > { %v2522_v1 = vpop.f32.mrf.mxu0  ;;  %v1293_v54 = vadd.f32 %v8696_v42, %v9918_v6  ;;  %v1985_v32 = vadd.f32 %v1847_v55, %v1294_v50  ;;  %v1987_v0 = vadd.f32 %v1857_v9, %v1296_v47  ;;  %v9926_v55 = vld [vmem:[#allocation38_spill] sm:$0xff]  ;;  %v1298_v50 = vadd.f32 %v8696_v42, %v9927_v34  ;;  %v9934_v36 = vld [vmem:[#allocation20_spill] sm:$0xff]  ;;  %v9935_v38 = vld [vmem:[#allocation5_spill] sm:$0xff] }
 0x1e0   : > { %v8716_v7 = vmax.f32 %v2775_v19, 0.0  ;;  %v2774_v43 = vadd.f32 %v8694_v29, %v2671_v63  ;;  %v2674_v17 = vadd.f32 %v2528_v2, %v1983_v10  ;;  %v2334_v30 = vpop.f32.mrf.mxu1  ;;  %v2523_v39 = vadd.f32 %v2522_v1, %v8602_v46  ;;  %v9939_v34 = vld [vmem:[#allocation30_spill] sm:$0xff] }
 0x1e1   : > { %v6294_v12 = vpop.f32.mrf.mxu0  ;;  %v1984_v58 = vadd.f32 %v1842_v14, %v1293_v54  ;;  %v1867_v33 = vadd.f32 %v9926_v55, %v9925_v35  ;;  %v1862_v14 = vadd.f32 %v9929_v23, %v9928_v22  ;;  %v9930_v54 = vld [vmem:[#allocation12_spill] sm:$0xff]  ;;  %v1877_v9 = vadd.f32 %v9932_v59, %v9931_v4 }
 0x1e2   : > { %2839 = vst [vmem:[#allocation2 + $0x21] sm:$0xff] %v8716_v7  ;;  %v8726_v5 = vmax.f32 %v2774_v43, 0.0  ;;  %v2777_v26 = vadd.f32 %v8694_v29, %v2674_v17  ;;  %v2673_v49 = vadd.f32 %v2523_v39, %v1982_v24  ;;  %v8729_v28 = vpop.f32.mrf.mxu1  ;;  %v2538_v46 = vadd.f32 %v6294_v12, %v8645_v13  ;;  %v9924_v13 = vld [vmem:[#allocation10_spill] sm:$0xff] }
 0x1e3   : > { %v2532_v57 = vpop.f32.mrf.mxu0  ;;  %v1295_v3 = vadd.f32 %v8696_v42, %v9924_v13 }
 0x1e4   : > { %2838 = vst [vmem:[#allocation2 + $0x19] sm:$0xff] %v8726_v5  ;;  %v8737_v60 = vmax.f32 %v2777_v26, 0.0  ;;  %v2776_v21 = vadd.f32 %v8694_v29, %v2673_v49  ;;  %v2676_v41 = vadd.f32 %v2538_v46, %v1985_v32  ;;  %v2339_v11 = vpop.f32.mrf.mxu1  ;;  %v2533_v62 = vadd.f32 %v2532_v57, %v8632_v48  ;;  %3368 = vmatprep.mubr.f32.mxu0 %v8726_v5 }
 0x1e5   : > { %v6297_v52 = vpop.f32.mrf.mxu0  ;;  %v1986_v24 = vadd.f32 %v1852_v44, %v1295_v3  ;;  %v1989_v32 = vadd.f32 %v1867_v33, %v1298_v50  ;;  %v1196_v44 = vadd.f32 %v9935_v38, %v9934_v36  ;;  %v9940_v50 = vld [vmem:[#allocation42_spill] sm:$0xff] }
 0x1e6   : > { %2841 = vst [vmem:[#allocation2 + $0x39] sm:$0xff] %v8737_v60  ;;  %v8747_v10 = vmax.f32 %v2776_v21, 0.0  ;;  %v2779_v19 = vadd.f32 %v8694_v29, %v2676_v41  ;;  %v2675_v63 = vadd.f32 %v2533_v62, %v1984_v58  ;;  %v2342_v2 = vpop.f32.mrf.mxu1  ;;  %v2548_v48 = vadd.f32 %v6297_v52, %v8674_v56  ;;  %v9936_v21 = vld [vmem:[#allocation27_spill] sm:$0xff]  ;;  %v9937_v41 = vld [vmem:[#allocation41_spill] sm:$0xff] }
 0x1e7   : > { %v2542_v1 = vpop.f32.mrf.mxu0  ;;  %v1297_v56 = vadd.f32 %v8696_v42, %v9930_v54  ;;  %v1872_v11 = vadd.f32 %v9937_v41, %v9936_v21  ;;  %v9943_v41 = vld [vmem:[#allocation31_spill] sm:$0xff] }
 0x1e8   : > { %2840 = vst [vmem:[#allocation2 + $0x31] sm:$0xff] %v8747_v10  ;;  %v8756_v43 = vmax.f32 %v2779_v19, 0.0  ;;  %v2778_v17 = vadd.f32 %v8694_v29, %v2675_v63  ;;  %v2678_v30 = vadd.f32 %v2548_v48, %v1987_v0  ;;  %v2344_v39 = vpop.f32.mrf.mxu1  ;;  %v2543_v6 = vadd.f32 %v2542_v1, %v8661_v25  ;;  %v9933_v25 = vld [vmem:[#allocation16_spill] sm:$0xff]  ;;  %v9938_v19 = vld [vmem:[#allocation14_spill] sm:$0xff] }
 0x1e9   : > { %v6300_v12 = vpop.f32.mrf.mxu0  ;;  %v1300_v58 = vadd.f32 %v8696_v42, %v9933_v25  ;;  %v1988_v57 = vadd.f32 %v1862_v14, %v1297_v56  ;;  %v8788_v52 = vld [vmem:[#allocation2 + $0x22] sm:$0xff]  ;;  %v1299_v63 = vadd.f32 %v8696_v42, %v9938_v19 }
 0x1ea   : > { %2843 = vst [vmem:[#allocation2 + $0x51] sm:$0xff] %v8756_v43  ;;  %v8765_v26 = vmax.f32 %v2778_v17, 0.0  ;;  %v2781_v49 = vadd.f32 %v8694_v29, %v2678_v30  ;;  %v2677_v46 = vadd.f32 %v2543_v6, %v1986_v24  ;;  %v8768_v16 = vpop.f32.mrf.mxu1  ;;  %v2558_v47 = vadd.f32 %v6300_v12, %v8709_v53  ;;  %v9941_v6 = vld [vmem:[#allocation29_spill] sm:$0xff] }
 0x1eb   : > { %v2552_v62 = vpop.f32.mrf.mxu0  ;;  %v8777_v13 = vld [vmem:[#allocation2 + $0x1a] sm:$0xff]  ;;  %v1991_v48 = vadd.f32 %v1877_v9, %v1300_v58  ;;  %v1887_v24 = vadd.f32 %v9940_v50, %v9939_v34  ;;  %v1302_v30 = vadd.f32 %v8696_v42, %v1196_v44  ;;  %v1990_v39 = vadd.f32 %v1872_v11, %v1299_v63 }
 0x1ec   : > { %v8779_v3 = vld [vmem:[#allocation2 + $0x18] sm:$0xff]  ;;  %2842 = vst [vmem:[#allocation2 + $0x49] sm:$0xff] %v8765_v26  ;;  %v8782_v0 = vmax.f32 %v2781_v49, 0.0  ;;  %v2780_v53 = vadd.f32 %v8694_v29, %v2677_v46  ;;  %v2680_v35 = vadd.f32 %v2558_v47, %v1989_v32  ;;  %v2349_v55 = vpop.f32.mrf.mxu1  ;;  %v2553_v33 = vadd.f32 %v2552_v62, %v8686_v15  ;;  %6369 = vmatprep.mubr.f32.mxu1 %v8777_v13  ;;  %v8805_v4 = vld [vmem:[#allocation2 + $0x20] sm:$0xff] }
 0x1ed   : > { %3369 = vmatmul.mubr.f32.gmra.mxu0 %v8779_v3  ;;  %v6303_v22 = vpop.f32.mrf.mxu0  ;;  %6370 = vmatmul.mubr.f32.gmra.mxu1 %v8788_v52  ;;  %v1882_v54 = vadd.f32 %v8514_v61, %v9941_v6  ;;  %v8814_v61 = vld [vmem:[#allocation2 + $0x3a] sm:$0xff]  ;;  %v1993_v25 = vadd.f32 %v1887_v24, %v1302_v30 }
 0x1ee   : > { %3373 = vmatprep.mubr.f32.mxu0 %v8716_v7  ;;  %2845 = vst [vmem:[#allocation2 + $0x69] sm:$0xff] %v8782_v0  ;;  %v8797_v15 = vmax.f32 %v2780_v53, 0.0  ;;  %v2783_v23 = vadd.f32 %v8694_v29, %v2680_v35  ;;  %v2679_v14 = vadd.f32 %v2553_v33, %v1988_v57  ;;  %v2352_v1 = vpop.f32.mrf.mxu1  ;;  %v2568_v17 = vadd.f32 %v6303_v22, %v2342_v2  ;;  %v9942_v46 = vld [vmem:[#allocation18_spill] sm:$0xff]  ;;  %v9944_v11 = vld [vmem:[#allocation43_spill] sm:$0xff] }
 0x1ef   : > { %v2562_v56 = vpop.f32.mrf.mxu0  ;;  %v8803_v32 = vld [vmem:[#allocation2 + $0x32] sm:$0xff]  ;;  %v1301_v47 = vadd.f32 %v8696_v42, %v9942_v46  ;;  %v1892_v62 = vadd.f32 %v9944_v11, %v9943_v41 }
 0x1f0   : > { %2844 = vst [vmem:[#allocation2 + $0x61] sm:$0xff] %v8797_v15  ;;  %v8808_v59 = vmax.f32 %v2783_v23, 0.0  ;;  %v2782_v9 = vadd.f32 %v8694_v29, %v2679_v14  ;;  %v2682_v12 = vadd.f32 %v2568_v17, %v1991_v48  ;;  %v2354_v49 = vpop.f32.mrf.mxu1  ;;  %v2563_v2 = vadd.f32 %v2562_v56, %v8729_v28  ;;  %6372 = vmatprep.mubr.f32.mxu1 %v8803_v32  ;;  %v8828_v55 = vld [vmem:[#allocation2 + $0x30] sm:$0xff]  ;;  %v9945_v22 = vld [vmem:[#allocation22_spill] sm:$0xff] }
 0x1f1   : > { %3374 = vmatmul.mubr.f32.gmra.mxu0 %v8805_v4  ;;  %v6306_v58 = vpop.f32.mrf.mxu0  ;;  %6373 = vmatmul.mubr.f32.gmra.mxu1 %v8814_v61  ;;  %v1992_v21 = vadd.f32 %v1882_v54, %v1301_v47  ;;  %v8837_v50 = vld [vmem:[#allocation2 + $0x52] sm:$0xff]  ;;  %v1303_v23 = vadd.f32 %v8696_v42, %v9945_v22 }
 0x1f2   : > { %3378 = vmatprep.mubr.f32.mxu0 %v8747_v10  ;;  %2847 = vst [vmem:[#allocation2 + $0x81] sm:$0xff] %v8808_v59  ;;  %v8821_v36 = vmax.f32 %v2782_v9, 0.0  ;;  %v2785_v28 = vadd.f32 %v8694_v29, %v2682_v12  ;;  %v2681_v38 = vadd.f32 %v2563_v2, %v1990_v39  ;;  %v2357_v44 = vpop.f32.mrf.mxu1  ;;  %v2578_v57 = vadd.f32 %v6306_v58, %v2352_v1  ;;  %v8849_v54 = vld [vmem:[#allocation2 + $0x38] sm:$0xff] }
 0x1f3   : > { %v2572_v53 = vpop.f32.mrf.mxu0  ;;  %v8826_v35 = vld [vmem:[#allocation2 + $0x4a] sm:$0xff]  ;;  %v1994_v56 = vadd.f32 %v1892_v62, %v1303_v23 }
 0x1f4   : > { %2846 = vst [vmem:[#allocation2 + $0x79] sm:$0xff] %v8821_v36  ;;  %v8831_v33 = vmax.f32 %v2785_v28, 0.0  ;;  %v2784_v19 = vadd.f32 %v8694_v29, %v2681_v38  ;;  %v2684_v63 = vadd.f32 %v2578_v57, %v1993_v25  ;;  %v2359_v48 = vpop.f32.mrf.mxu1  ;;  %v2573_v34 = vadd.f32 %v2572_v53, %v8768_v16  ;;  %6375 = vmatprep.mubr.f32.mxu1 %v8826_v35  ;;  %v8868_v41 = vld [vmem:[#allocation2 + $0x48] sm:$0xff] }
 0x1f5   : > { %3379 = vmatmul.mubr.f32.gmra.mxu0 %v8828_v55  ;;  %v6309_v24 = vpop.f32.mrf.mxu0  ;;  %6376 = vmatmul.mubr.f32.gmra.mxu1 %v8837_v50  ;;  %v8857_v46 = vld [vmem:[#allocation2 + $0x6a] sm:$0xff] }
 0x1f6   : > { %3383 = vmatprep.mubr.f32.mxu0 %v8737_v60  ;;  %2849 = vst [vmem:[#allocation2 + $0x99] sm:$0xff] %v8831_v33  ;;  %v8844_v14 = vmax.f32 %v2784_v19, 0.0  ;;  %v2787_v16 = vadd.f32 %v8694_v29, %v2684_v63  ;;  %v2683_v1 = vadd.f32 %v2573_v34, %v1992_v21  ;;  %v2362_v17 = vpop.f32.mrf.mxu1 }
 0x1f7   : > { %v2588_v30 = vadd.f32 %v6309_v24, %v2362_v17  ;;  %v2582_v39 = vpop.f32.mrf.mxu0  ;;  %v8847_v6 = vld [vmem:[#allocation2 + $0x62] sm:$0xff] }
 0x1f8   : > { %2848 = vst [vmem:[#allocation2 + $0x91] sm:$0xff] %v8844_v14  ;;  %v8852_v9 = vmax.f32 %v2787_v16, 0.0  ;;  %v2786_v12 = vadd.f32 %v8694_v29, %v2683_v1  ;;  %v2364_v49 = vpop.f32.mrf.mxu1  ;;  %v2583_v2 = vadd.f32 %v2582_v39, %v2357_v44  ;;  %6378 = vmatprep.mubr.f32.mxu1 %v8847_v6  ;;  %v8886_v16 = vld [vmem:[#allocation2 + $0x50] sm:$0xff] }
 0x1f9   : > { %3384 = vmatmul.mubr.f32.gmra.mxu0 %v8849_v54  ;;  %v2686_v47 = vadd.f32 %v2588_v30, %v8535_v40  ;;  %v6312_v25 = vpop.f32.mrf.mxu0  ;;  %6379 = vmatmul.mubr.f32.gmra.mxu1 %v8857_v46  ;;  %v8874_v53 = vld [vmem:[#allocation2 + $0x82] sm:$0xff] }
 0x1fa   : > { %9946 = vst [vmem:[#allocation17_spill] sm:$0xff] %v8852_v9  ;;  %3388 = vmatprep.mubr.f32.mxu0 %v8765_v26  ;;  %2851 = vst [vmem:[#allocation2 + $0xb1] sm:$0xff] %v8852_v9  ;;  %v8863_v58 = vmax.f32 %v2786_v12, 0.0  ;;  %v2685_v28 = vadd.f32 %v2583_v2, %v1994_v56  ;;  %v2367_v38 = vpop.f32.mrf.mxu1 }
 0x1fb   : > { %v2789_v44 = vadd.f32 %v8694_v29, %v2686_v47  ;;  %v2592_v57 = vpop.f32.mrf.mxu0  ;;  %v8866_v21 = vld [vmem:[#allocation2 + $0x7a] sm:$0xff]  ;;  %9947 = vst [vmem:[#allocation32_spill] sm:$0xff] %v8874_v53 }
 0x1fc   : > { %2850 = vst [vmem:[#allocation2 + $0xa9] sm:$0xff] %v8863_v58  ;;  %v2788_v40 = vadd.f32 %v8694_v29, %v2685_v28  ;;  %v2369_v11 = vpop.f32.mrf.mxu1  ;;  %v2593_v62 = vadd.f32 %v2592_v57, %v2367_v38  ;;  %6381 = vmatprep.mubr.f32.mxu1 %v8866_v21 }
 0x1fd   : > { %3389 = vmatmul.mubr.f32.gmra.mxu0 %v8868_v41  ;;  %v8876_v19 = vmax.f32 %v2789_v44, 0.0  ;;  %v6315_v63 = vpop.f32.mrf.mxu0  ;;  %6382 = vmatmul.mubr.f32.gmra.mxu1 %v8874_v53  ;;  %v8892_v39 = vld [vmem:[#allocation2 + $0x9a] sm:$0xff] }
 0x1fe   : > { %3393 = vmatprep.mubr.f32.mxu0 %v8756_v43  ;;  %v8880_v48 = vmax.f32 %v2788_v40, 0.0  ;;  %v2687_v34 = vadd.f32 %v2593_v62, %v8565_v18  ;;  %v2372_v24 = vpop.f32.mrf.mxu1  ;;  %9951 = vst [vmem:[#allocation6_spill] sm:$0xff] %v8892_v39 }
 0x1ff   : > { %9948 = vst [vmem:[#allocation15_spill] sm:$0xff] %v8876_v19  ;;  %2853 = vst [vmem:[#allocation2 + $0xc9] sm:$0xff] %v8876_v19  ;;  %v2598_v22 = vadd.f32 %v6312_v25, %v2372_v24  ;;  %v8884_v23 = vld [vmem:[#allocation2 + $0x92] sm:$0xff]  ;;  %v2602_v30 = vpop.f32.mrf.mxu0  ;;  %v8902_v25 = vld [vmem:[#allocation2 + $0x60] sm:$0xff] }
 0x200   : > { %9949 = vst [vmem:[#allocation33_spill] sm:$0xff] %v8880_v48  ;;  %9950 = vst [vmem:[#allocation7_spill] sm:$0xff] %v8884_v23  ;;  %v2790_v1 = vadd.f32 %v8694_v29, %v2687_v34  ;;  %v2374_v17 = vpop.f32.mrf.mxu1  ;;  %6384 = vmatprep.mubr.f32.mxu1 %v8884_v23  ;;  %v8918_v24 = vld [vmem:[#allocation2 + $0x68] sm:$0xff] }
 0x201   : > { %2852 = vst [vmem:[#allocation2 + $0xc1] sm:$0xff] %v8880_v48  ;;  %3394 = vmatmul.mubr.f32.gmra.mxu0 %v8886_v16  ;;  %v2688_v18 = vadd.f32 %v2598_v22, %v8555_v37  ;;  %6385 = vmatmul.mubr.f32.gmra.mxu1 %v8892_v39  ;;  %v6318_v38 = vpop.f32.mrf.mxu0  ;;  %v8907_v37 = vld [vmem:[#allocation2 + $0xb2] sm:$0xff] }
 0x202   : > { %3398 = vmatprep.mubr.f32.mxu0 %v8797_v15  ;;  %v8897_v56 = vmax.f32 %v2790_v1, 0.0  ;;  %v2377_v12 = vpop.f32.mrf.mxu1  ;;  %9954 = vst [vmem:[#allocation9_spill] sm:$0xff] %v8907_v37 }
 0x203   : > { %v2791_v49 = vadd.f32 %v8694_v29, %v2688_v18  ;;  %v2603_v2 = vadd.f32 %v2602_v30, %v2377_v12  ;;  %v8900_v47 = vld [vmem:[#allocation2 + $0xaa] sm:$0xff]  ;;  %v2612_v1 = vpop.f32.mrf.mxu0 }
 0x204   : > { %9952 = vst [vmem:[#allocation21_spill] sm:$0xff] %v8897_v56  ;;  %9953 = vst [vmem:[#allocation34_spill] sm:$0xff] %v8900_v47  ;;  %v2379_v28 = vpop.f32.mrf.mxu1  ;;  %6387 = vmatprep.mubr.f32.mxu1 %v8900_v47 }
 0x205   : > { %2854 = vst [vmem:[#allocation2 + $0xd9] sm:$0xff] %v8897_v56  ;;  %3399 = vmatmul.mubr.f32.gmra.mxu0 %v8902_v25  ;;  %v8909_v44 = vmax.f32 %v2791_v49, 0.0  ;;  %v2689_v57 = vadd.f32 %v2603_v2, %v8599_v20  ;;  %6388 = vmatmul.mubr.f32.gmra.mxu1 %v8907_v37  ;;  %v8931_v49 = vld [vmem:[#allocation2 + $0x78] sm:$0xff]  ;;  %v6321_v28 = vpop.f32.mrf.mxu0 }
 0x206   : > { %3403 = vmatprep.mubr.f32.mxu0 %v8782_v0  ;;  %v2382_v40 = vpop.f32.mrf.mxu1  ;;  %v8922_v20 = vld [vmem:[#allocation2 + $0xca] sm:$0xff] }
 0x207   : > { %9955 = vst [vmem:[#allocation19_spill] sm:$0xff] %v8909_v44  ;;  %2855 = vst [vmem:[#allocation2 + $0xe1] sm:$0xff] %v8909_v44  ;;  %v2792_v11 = vadd.f32 %v8694_v29, %v2689_v57  ;;  %v2608_v62 = vadd.f32 %v6315_v63, %v2382_v40 }
 0x208   : > { %v8916_v34 = vld [vmem:[#allocation2 + $0xc2] sm:$0xff]  ;;  %v2384_v22 = vpop.f32.mrf.mxu1  ;;  %9957 = vst [vmem:[#allocation8_spill] sm:$0xff] %v8922_v20 }
 0x209   : > { %9956 = vst [vmem:[#allocation35_spill] sm:$0xff] %v8916_v34  ;;  %6390 = vmatprep.mubr.f32.mxu1 %v8916_v34  ;;  %3404 = vmatmul.mubr.f32.gmra.mxu0 %v8918_v24  ;;  %v8924_v17 = vmax.f32 %v2792_v11, 0.0  ;;  %v2690_v30 = vadd.f32 %v2608_v62, %v8583_v31 }
 0x20a   : > { %6391 = vmatmul.mubr.f32.gmra.mxu1 %v8922_v20  ;;  %3408 = vmatprep.mubr.f32.mxu0 %v8821_v36  ;;  %v2387_v63 = vpop.f32.mrf.mxu1 }
 0x20b   : > { %2856 = vst [vmem:[#allocation2 + $0xf1] sm:$0xff] %v8924_v17  ;;  %v2793_v18 = vadd.f32 %v8694_v29, %v2690_v30  ;;  %v2613_v12 = vadd.f32 %v2612_v1, %v2387_v63  ;;  %v8945_v30 = vld [vmem:[#allocation2 + $0x80] sm:$0xff] }
 0x20c   : > { %v2389_v2 = vpop.f32.mrf.mxu1 }
 0x20d   : > { %3409 = vmatmul.mubr.f32.gmra.mxu0 %v8931_v49  ;;  %v8934_v57 = vmax.f32 %v2793_v18, 0.0  ;;  %v2691_v31 = vadd.f32 %v2613_v12, %v8617_v45  ;;  %v2622_v18 = vpop.f32.mrf.mxu0 }
 0x20e   : > { %3413 = vmatprep.mubr.f32.mxu0 %v8808_v59  ;;  %v2392_v40 = vpop.f32.mrf.mxu1  ;;  %v8938_v11 = vld [vmem:[#allocation2 + $0xda] sm:$0xff]  ;;  %v8940_v62 = vld [vmem:[#allocation2 + $0xe2] sm:$0xff] }
 0x20f   : > { %9958 = vst [vmem:[#allocation24_spill] sm:$0xff] %v8938_v11  ;;  %9959 = vst [vmem:[#allocation36_spill] sm:$0xff] %v8940_v62  ;;  %v2794_v22 = vadd.f32 %v8694_v29, %v2691_v31  ;;  %v2618_v1 = vadd.f32 %v6318_v38, %v2392_v40  ;;  %6393 = vmatprep.mubr.f32.mxu1 %v8938_v11  ;;  %v8955_v40 = vld [vmem:[#allocation2 + $0x90] sm:$0xff]  ;;  %v6324_v11 = vpop.f32.mrf.mxu0 }
 0x210   : > { %2857 = vst [vmem:[#allocation2 + $0xf9] sm:$0xff] %v8934_v57  ;;  %v2394_v63 = vpop.f32.mrf.mxu1  ;;  %6394 = vmatmul.mubr.f32.gmra.mxu1 %v8940_v62 }
 0x211   : > { %3414 = vmatmul.mubr.f32.gmra.mxu0 %v8945_v30  ;;  %v8949_v45 = vmax.f32 %v2794_v22, 0.0  ;;  %v2692_v12 = vadd.f32 %v2618_v1, %v8608_v51  ;;  %v2632_v34 = vpop.f32.mrf.mxu0 }
 0x212   : > { %3418 = vmatprep.mubr.f32.mxu0 %v8844_v14  ;;  %v2397_v2 = vpop.f32.mrf.mxu1 }
 0x213   : > { %2858 = vst [vmem:[#allocation2 + $0x109] sm:$0xff] %v8949_v45  ;;  %v2795_v38 = vadd.f32 %v8694_v29, %v2692_v12  ;;  %v2623_v31 = vadd.f32 %v2622_v18, %v2397_v2  ;;  %v8969_v2 = vld [vmem:[#allocation2 + $0x98] sm:$0xff]  ;;  %v6327_v47 = vpop.f32.mrf.mxu0 }
 0x214   : > { %v2399_v63 = vpop.f32.mrf.mxu1 }
 0x215   : > { %3419 = vmatmul.mubr.f32.gmra.mxu0 %v8955_v40  ;;  %v8958_v62 = vmax.f32 %v2795_v38, 0.0  ;;  %v2693_v22 = vadd.f32 %v2623_v31, %v8629_v8  ;;  %v2067_v38 = vld [vmem:[#allocation4 + $0xb8] sm:$0xff]  ;;  %v2642_v23 = vpop.f32.mrf.mxu0 }
 0x216   : > { %3423 = vmatprep.mubr.f32.mxu0 %v8831_v33  ;;  %v2402_v51 = vpop.f32.mrf.mxu1 }
 0x217   : > { %v8962_v1 = vld [vmem:[#allocation2 + $0xf2] sm:$0xff]  ;;  %v8964_v20 = vld [vmem:[#allocation2 + $0xfa] sm:$0xff]  ;;  %2859 = vst [vmem:[#allocation2 + $0x111] sm:$0xff] %v8958_v62  ;;  %v2796_v18 = vadd.f32 %v8694_v29, %v2693_v22  ;;  %v2628_v12 = vadd.f32 %v6321_v28, %v2402_v51  ;;  %v8978_v51 = vld [vmem:[#allocation2 + $0xa8] sm:$0xff] }
 0x218   : > { %9960 = vst [vmem:[#allocation11_spill] sm:$0xff] %v8962_v1  ;;  %9961 = vst [vmem:[#allocation23_spill] sm:$0xff] %v8964_v20  ;;  %6396 = vmatprep.mubr.f32.mxu1 %v8962_v1  ;;  %v2404_v63 = vpop.f32.mrf.mxu1  ;;  %v2068_v1 = vld [vmem:[#allocation4 + $0xc0] sm:$0xff] }
 0x219   : > { %6397 = vmatmul.mubr.f32.gmra.mxu1 %v8964_v20  ;;  %3424 = vmatmul.mubr.f32.gmra.mxu0 %v8969_v2  ;;  %v8973_v8 = vmax.f32 %v2796_v18, 0.0  ;;  %v2694_v31 = vadd.f32 %v2628_v12, %v2067_v38 }
 0x21a   : > { %3428 = vmatprep.mubr.f32.mxu0 %v8863_v58  ;;  %v2407_v37 = vpop.f32.mrf.mxu1 }
 0x21b   : > { %2860 = vst [vmem:[#allocation2 + $0x121] sm:$0xff] %v8973_v8  ;;  %v2797_v28 = vadd.f32 %v8694_v29, %v2694_v31  ;;  %v2633_v22 = vadd.f32 %v2632_v34, %v2407_v37  ;;  %v8991_v31 = vld [vmem:[#allocation2 + $0xb0] sm:$0xff] }
 0x21c   : > { %v2409_v63 = vpop.f32.mrf.mxu1  ;;  %9964 = vst [vmem:[#allocation26_spill] sm:$0xff] %v8991_v31 }
 0x21d   : > { %3429 = vmatmul.mubr.f32.gmra.mxu0 %v8978_v51  ;;  %v8981_v20 = vmax.f32 %v2797_v28, 0.0  ;;  %v2695_v18 = vadd.f32 %v2633_v22, %v2068_v1  ;;  %v2069_v63 = vld [vmem:[#allocation4 + $0xc8] sm:$0xff] }
 0x21e   : > { %3433 = vmatprep.mubr.f32.mxu0 %v8852_v9  ;;  %v2412_v12 = vpop.f32.mrf.mxu1  ;;  %v8984_v38 = vld [vmem:[#allocation2 + $0x10a] sm:$0xff]  ;;  %v8986_v39 = vld [vmem:[#allocation2 + $0x112] sm:$0xff]  ;;  %v6330_v9 = vpop.f32.mrf.mxu0 }
 0x21f   : > { %9962 = vst [vmem:[#allocation37_spill] sm:$0xff] %v8984_v38  ;;  %9963 = vst [vmem:[#allocation10_spill] sm:$0xff] %v8986_v39  ;;  %v2798_v37 = vadd.f32 %v8694_v29, %v2695_v18  ;;  %v2638_v34 = vadd.f32 %v6324_v11, %v2412_v12  ;;  %6399 = vmatprep.mubr.f32.mxu1 %v8984_v38  ;;  %v9000_v12 = vld [vmem:[#allocation2 + $0xc0] sm:$0xff] }
 0x220   : > { %2861 = vst [vmem:[#allocation2 + $0x129] sm:$0xff] %v8981_v20  ;;  %v2414_v28 = vpop.f32.mrf.mxu1  ;;  %6400 = vmatmul.mubr.f32.gmra.mxu1 %v8986_v39  ;;  %9965 = vst [vmem:[#allocation38_spill] sm:$0xff] %v9000_v12  ;;  %v2070_v38 = vld [vmem:[#allocation4 + $0xd0] sm:$0xff] }
 0x221   : > { %3434 = vmatmul.mubr.f32.gmra.mxu0 %v8991_v31  ;;  %v8995_v1 = vmax.f32 %v2798_v37, 0.0  ;;  %v2696_v22 = vadd.f32 %v2638_v34, %v2069_v63 }
 0x222   : > { %3438 = vmatprep.mubr.f32.mxu0 %v8880_v48  ;;  %v2417_v53 = vpop.f32.mrf.mxu1 }
 0x223   : > { %2862 = vst [vmem:[#allocation2 + $0x139] sm:$0xff] %v8995_v1  ;;  %v2799_v11 = vadd.f32 %v8694_v29, %v2696_v22  ;;  %v2643_v18 = vadd.f32 %v2642_v23, %v2417_v53  ;;  %v9013_v22 = vld [vmem:[#allocation2 + $0xc8] sm:$0xff] }
 0x224   : > { %v2419_v28 = vpop.f32.mrf.mxu1 }
 0x225   : > { %3439 = vmatmul.mubr.f32.gmra.mxu0 %v9000_v12  ;;  %v9003_v39 = vmax.f32 %v2799_v11, 0.0  ;;  %v2697_v37 = vadd.f32 %v2643_v18, %v2070_v38  ;;  %v2071_v28 = vld [vmem:[#allocation4 + $0xd8] sm:$0xff]  ;;  %v2652_v12 = vpop.f32.mrf.mxu0 }
 0x226   : > { %3443 = vmatprep.mubr.f32.mxu0 %v8876_v19  ;;  %v2422_v34 = vpop.f32.mrf.mxu1 }
 0x227   : > { %v9006_v63 = vld [vmem:[#allocation2 + $0x122] sm:$0xff]  ;;  %v9008_v48 = vld [vmem:[#allocation2 + $0x12a] sm:$0xff]  ;;  %2863 = vst [vmem:[#allocation2 + $0x141] sm:$0xff] %v9003_v39  ;;  %v2800_v53 = vadd.f32 %v8694_v29, %v2697_v37  ;;  %v2648_v23 = vadd.f32 %v6327_v47, %v2422_v34  ;;  %v9022_v34 = vld [vmem:[#allocation2 + $0xd8] sm:$0xff]  ;;  %v6333_v31 = vpop.f32.mrf.mxu0 }
 0x228   : > { %9966 = vst [vmem:[#allocation13_spill] sm:$0xff] %v9006_v63  ;;  %9967 = vst [vmem:[#allocation25_spill] sm:$0xff] %v9008_v48  ;;  %6402 = vmatprep.mubr.f32.mxu1 %v9006_v63  ;;  %v2424_v11 = vpop.f32.mrf.mxu1  ;;  %v2072_v63 = vld [vmem:[#allocation4 + $0xe0] sm:$0xff] }
 0x229   : > { %6403 = vmatmul.mubr.f32.gmra.mxu1 %v9008_v48  ;;  %3444 = vmatmul.mubr.f32.gmra.mxu0 %v9013_v22  ;;  %v9017_v38 = vmax.f32 %v2800_v53, 0.0  ;;  %v2698_v18 = vadd.f32 %v2648_v23, %v2071_v28  ;;  %9968 = vst [vmem:[#allocation39_spill] sm:$0xff] %v9022_v34 }
 0x22a   : > { %3448 = vmatprep.mubr.f32.mxu0 %v8897_v56  ;;  %v2427_v19 = vpop.f32.mrf.mxu1 }
 0x22b   : > { %2864 = vst [vmem:[#allocation2 + $0x151] sm:$0xff] %v9017_v38  ;;  %v2801_v47 = vadd.f32 %v8694_v29, %v2698_v18  ;;  %v2653_v37 = vadd.f32 %v2652_v12, %v2427_v19  ;;  %v9035_v18 = vld [vmem:[#allocation2 + $0xe0] sm:$0xff] }
 0x22c   : > { %v2429_v11 = vpop.f32.mrf.mxu1  ;;  %9971 = vst [vmem:[#allocation40_spill] sm:$0xff] %v9035_v18 }
 0x22d   : > { %3449 = vmatmul.mubr.f32.gmra.mxu0 %v9022_v34  ;;  %v9025_v48 = vmax.f32 %v2801_v47, 0.0  ;;  %v2699_v53 = vadd.f32 %v2653_v37, %v2072_v63  ;;  %v2073_v11 = vld [vmem:[#allocation4 + $0xe8] sm:$0xff]  ;;  %v2662_v34 = vpop.f32.mrf.mxu0 }
 0x22e   : > { %3453 = vmatprep.mubr.f32.mxu0 %v8909_v44  ;;  %v2432_v23 = vpop.f32.mrf.mxu1  ;;  %v9028_v28 = vld [vmem:[#allocation2 + $0x13a] sm:$0xff]  ;;  %v9030_v56 = vld [vmem:[#allocation2 + $0x142] sm:$0xff] }
 0x22f   : > { %9969 = vst [vmem:[#allocation12_spill] sm:$0xff] %v9028_v28  ;;  %9970 = vst [vmem:[#allocation28_spill] sm:$0xff] %v9030_v56  ;;  %v2802_v19 = vadd.f32 %v8694_v29, %v2699_v53  ;;  %v2658_v12 = vadd.f32 %v6330_v9, %v2432_v23  ;;  %6405 = vmatprep.mubr.f32.mxu1 %v9028_v28  ;;  %v9044_v23 = vld [vmem:[#allocation2 + $0xf0] sm:$0xff]  ;;  %v2074_v28 = vld [vmem:[#allocation4 + $0xf0] sm:$0xff] }
 0x230   : > { %2865 = vst [vmem:[#allocation2 + $0x159] sm:$0xff] %v9025_v48  ;;  %v2434_v47 = vpop.f32.mrf.mxu1  ;;  %6406 = vmatmul.mubr.f32.gmra.mxu1 %v9030_v56 }
 0x231   : > { %3454 = vmatmul.mubr.f32.gmra.mxu0 %v9035_v18  ;;  %v9039_v63 = vmax.f32 %v2802_v19, 0.0  ;;  %v2700_v37 = vadd.f32 %v2658_v12, %v2073_v11 }
 0x232   : > { %3458 = vmatprep.mubr.f32.mxu0 %v8924_v17  ;;  %v2437_v44 = vpop.f32.mrf.mxu1 }
 0x233   : > { %2866 = vst [vmem:[#allocation2 + $0x169] sm:$0xff] %v9039_v63  ;;  %v2803_v9 = vadd.f32 %v8694_v29, %v2700_v37  ;;  %v2663_v53 = vadd.f32 %v2662_v34, %v2437_v44  ;;  %v9057_v37 = vld [vmem:[#allocation2 + $0xf8] sm:$0xff] }
 0x234   : > { %v2439_v47 = vpop.f32.mrf.mxu1 }
 0x235   : > { %3459 = vmatmul.mubr.f32.gmra.mxu0 %v9044_v23  ;;  %v9047_v56 = vmax.f32 %v2803_v9, 0.0  ;;  %v2701_v18 = vadd.f32 %v2663_v53, %v2074_v28  ;;  %v2075_v47 = vld [vmem:[#allocation4 + $0xf8] sm:$0xff] }
 0x236   : > { %3463 = vmatprep.mubr.f32.mxu0 %v8934_v57  ;;  %v2442_v19 = vpop.f32.mrf.mxu1 }
 0x237   : > { %v9050_v12 = vld [vmem:[#allocation2 + $0x152] sm:$0xff]  ;;  %v9052_v11 = vld [vmem:[#allocation2 + $0x15a] sm:$0xff]  ;;  %2867 = vst [vmem:[#allocation2 + $0x171] sm:$0xff] %v9047_v56  ;;  %v2804_v44 = vadd.f32 %v8694_v29, %v2701_v18  ;;  %v2668_v34 = vadd.f32 %v6333_v31, %v2442_v19  ;;  %v9066_v31 = vld [vmem:[#allocation2 + $0x108] sm:$0xff] }
 0x238   : > { %9972 = vst [vmem:[#allocation16_spill] sm:$0xff] %v9050_v12  ;;  %6408 = vmatprep.mubr.f32.mxu1 %v9050_v12  ;;  %v2444_v28 = vpop.f32.mrf.mxu1 }
 0x239   : > { %6409 = vmatmul.mubr.f32.gmra.mxu1 %v9052_v11  ;;  %3464 = vmatmul.mubr.f32.gmra.mxu0 %v9057_v37  ;;  %v9061_v9 = vmax.f32 %v2804_v44, 0.0  ;;  %v2702_v53 = vadd.f32 %v2668_v34, %v2075_v47  ;;  %v9068_v19 = vpop.f32.mrf.mxu0 }
 0x23a   : > { %3468 = vmatprep.mubr.f32.mxu0 %v8949_v45  ;;  %9973 = vst [vmem:[#allocation20_spill] sm:$0xff] %v9068_v19  ;;  %v6368_v47 = vpop.f32.mrf.mxu1  ;;  %v9088_v19 = vld [vmem:[#allocation2 + $0x120] sm:$0xff] }
 0x23b   : > { %2868 = vst [vmem:[#allocation2 + $0x181] sm:$0xff] %v9061_v9  ;;  %v2805_v18 = vadd.f32 %v8694_v29, %v2702_v53  ;;  %v3362_v28 = vpop.f32.mrf.mxu0  ;;  %v9080_v29 = vld [vmem:[#allocation2 + $0x110] sm:$0xff] }
 0x23d   : > { %3469 = vmatmul.mubr.f32.gmra.mxu0 %v9066_v31  ;;  %v9071_v12 = vmax.f32 %v2805_v18, 0.0  ;;  %v3365_v53 = vpop.f32.mrf.mxu0 }
 0x23e   : > { %3473 = vmatprep.mubr.f32.mxu0 %v8958_v62  ;;  %v9074_v44 = vld [vmem:[#allocation2 + $0x16a] sm:$0xff]  ;;  %v9076_v34 = vld [vmem:[#allocation2 + $0x172] sm:$0xff]  ;;  %v9084_v18 = vadd.f32 %v6368_v47, %v3365_v53 }
 0x23f   : > { %9974 = vst [vmem:[#allocation5_spill] sm:$0xff] %v9071_v12  ;;  %2869 = vst [vmem:[#allocation2 + $0x189] sm:$0xff] %v9071_v12  ;;  %6411 = vmatprep.mubr.f32.mxu1 %v9074_v44  ;;  %v3367_v28 = vpop.f32.mrf.mxu0  ;;  %v5799_v12 = vld [vmem:[%s9793_s3 + $0x470] sm:$0xff]  ;;  %v5792_v47 = vld [vmem:[%s9793_s3 + $0x438] sm:$0xff] }
 0x240   : > { %6412 = vmatmul.mubr.f32.gmra.mxu1 %v9076_v34  ;;  %v5791_v53 = vld [vmem:[%s9793_s3 + $0x430] sm:$0xff] }
 0x241   : > { %3474 = vmatmul.mubr.f32.gmra.mxu0 %v9080_v29  ;;  %4049 = vmatprep.mubr.f32.mxu1 %v8726_v5  ;;  %v9098_v5 = vld [vmem:[#allocation2 + $0x128] sm:$0xff]  ;;  %v9979_v28 = vld [vmem:[#allocation33_spill] sm:$0xff] }
 0x242   : > { %3478 = vmatprep.mubr.f32.mxu0 %v8973_v8 }
 0x244   : > { %4050 = vmatmul.mubr.f32.vlgmr.msra.gmra.mxu1 %v8779_v3  ;;  %v5798_v3 = vld [vmem:[%s9793_s3 + $0x468] sm:$0xff] }
 0x245   : > { %3479 = vmatmul.mubr.f32.gmra.mxu0 %v9088_v19  ;;  %4054 = vmatprep.mubr.f32.mxu1 %v8716_v7  ;;  %v9107_v7 = vld [vmem:[#allocation2 + $0x138] sm:$0xff] }
 0x246   : > { %3483 = vmatprep.mubr.f32.mxu0 %v8981_v20  ;;  %6495 = vmatpush3.msra.mxu1 %v8654_v27  ;;  %v5797_v27 = vld [vmem:[%s9793_s3 + $0x460] sm:$0xff] }
 0x247   : > { %6496 = vmatprep.subr.mxu1 %v5799_v12 }
 0x248   : > { %4055 = vmatmul.mubr.f32.gmra.mxu1 %v8805_v4  ;;  %v5796_v4 = vld [vmem:[%s9793_s3 + $0x458] sm:$0xff] }
 0x249   : > { %3484 = vmatmul.mubr.f32.gmra.mxu0 %v9098_v5  ;;  %4059 = vmatprep.mubr.f32.mxu1 %v8747_v10  ;;  %v9116_v10 = vld [vmem:[#allocation2 + $0x140] sm:$0xff] }
 0x24a   : > { %3488 = vmatprep.mubr.f32.mxu0 %v8995_v1  ;;  %6497 = vmatpush3.msra.mxu1 %v5799_v12  ;;  %v5793_v12 = vld [vmem:[%s9793_s3 + $0x440] sm:$0xff] }
 0x24b   : > { %6498 = vmatprep.subr.mxu1 %v5798_v3 }
 0x24c   : > { %4060 = vmatmul.mubr.f32.gmra.mxu1 %v8828_v55  ;;  %v5795_v55 = vld [vmem:[%s9793_s3 + $0x450] sm:$0xff] }
 0x24d   : > { %3489 = vmatmul.mubr.f32.gmra.mxu0 %v9107_v7  ;;  %4064 = vmatprep.mubr.f32.mxu1 %v8737_v60  ;;  %v9125_v60 = vld [vmem:[#allocation2 + $0x150] sm:$0xff] }
 0x24e   : > { %3493 = vmatprep.mubr.f32.mxu0 %v9003_v39  ;;  %6499 = vmatpush3.msra.mxu1 %v5798_v3  ;;  %v9980_v3 = vld [vmem:[#allocation6_spill] sm:$0xff] }
 0x24f   : > { %6500 = vmatprep.subr.mxu1 %v5797_v27 }
 0x250   : > { %4065 = vmatmul.mubr.f32.gmra.mxu1 %v8849_v54  ;;  %v5794_v54 = vld [vmem:[%s9793_s3 + $0x448] sm:$0xff] }
 0x251   : > { %3494 = vmatmul.mubr.f32.gmra.mxu0 %v9116_v10  ;;  %4069 = vmatprep.mubr.f32.mxu1 %v8765_v26  ;;  %v9134_v26 = vld [vmem:[#allocation2 + $0x158] sm:$0xff] }
 0x252   : > { %3498 = vmatprep.mubr.f32.mxu0 %v9017_v38  ;;  %6501 = vmatpush3.msra.mxu1 %v5797_v27  ;;  %v5757_v27 = vld [vmem:[%s9793_s3 + $0x320] sm:$0xff] }
 0x253   : > { %6502 = vmatprep.subr.mxu1 %v5796_v4 }
 0x254   : > { %4070 = vmatmul.mubr.f32.gmra.mxu1 %v8868_v41 }
 0x255   : > { %3499 = vmatmul.mubr.f32.gmra.mxu0 %v9125_v60  ;;  %4074 = vmatprep.mubr.f32.mxu1 %v8756_v43  ;;  %v9143_v43 = vld [vmem:[#allocation2 + $0x168] sm:$0xff] }
 0x256   : > { %3503 = vmatprep.mubr.f32.mxu0 %v9025_v48  ;;  %6503 = vmatpush3.msra.mxu1 %v5796_v4  ;;  %v9981_v4 = vld [vmem:[#allocation34_spill] sm:$0xff] }
 0x257   : > { %6504 = vmatprep.subr.mxu1 %v5795_v55 }
 0x258   : > { %4075 = vmatmul.mubr.f32.gmra.mxu1 %v8886_v16 }
 0x259   : > { %3504 = vmatmul.mubr.f32.gmra.mxu0 %v9134_v26  ;;  %4079 = vmatprep.mubr.f32.mxu1 %v8797_v15  ;;  %v9152_v15 = vld [vmem:[#allocation2 + $0x170] sm:$0xff] }
 0x25a   : > { %3508 = vmatprep.mubr.f32.mxu0 %v9039_v63  ;;  %6505 = vmatpush3.msra.mxu1 %v5795_v55  ;;  %v9982_v55 = vld [vmem:[#allocation38_spill] sm:$0xff] }
 0x25b   : > { %6506 = vmatprep.subr.mxu1 %v5794_v54 }
 0x25c   : > { %4080 = vmatmul.mubr.f32.gmra.mxu1 %v8902_v25 }
 0x25d   : > { %3509 = vmatmul.mubr.f32.gmra.mxu0 %v9143_v43  ;;  %4084 = vmatprep.mubr.f32.mxu1 %v8782_v0  ;;  %v5768_v0 = vld [vmem:[%s9793_s3 + $0x378] sm:$0xff] }
 0x25e   : > { %3513 = vmatprep.mubr.f32.mxu0 %v9047_v56  ;;  %6507 = vmatpush3.msra.mxu1 %v5794_v54  ;;  %v5756_v54 = vld [vmem:[%s9793_s3 + $0x318] sm:$0xff] }
 0x25f   : > { %6508 = vmatprep.subr.mxu1 %v5793_v12 }
 0x260   : > { %4085 = vmatmul.mubr.f32.gmra.mxu1 %v8918_v24 }
 0x261   : > { %3514 = vmatmul.mubr.f32.gmra.mxu0 %v9152_v15  ;;  %4089 = vmatprep.mubr.f32.mxu1 %v8821_v36  ;;  %v5763_v36 = vld [vmem:[%s9793_s3 + $0x350] sm:$0xff] }
 0x262   : > { %6446 = vmatprep.mubr.f32.mxu0 %v8777_v13  ;;  %6509 = vmatpush3.msra.mxu1 %v5793_v12  ;;  %v5767_v13 = vld [vmem:[%s9793_s3 + $0x370] sm:$0xff]  ;;  %v9983_v12 = vld [vmem:[#allocation15_spill] sm:$0xff] }
 0x263   : > { %6510 = vmatprep.subr.mxu1 %v5792_v47 }
 0x264   : > { %4090 = vmatmul.mubr.f32.gmra.mxu1 %v8931_v49 }
 0x265   : > { %6447 = vmatmul.mubr.f32.vlgmr.msra.gmra.mxu0 %v8788_v52  ;;  %4094 = vmatprep.mubr.f32.mxu1 %v8808_v59  ;;  %v5766_v52 = vld [vmem:[%s9793_s3 + $0x368] sm:$0xff]  ;;  %v5764_v59 = vld [vmem:[%s9793_s3 + $0x358] sm:$0xff] }
 0x266   : > { %6449 = vmatprep.mubr.f32.mxu0 %v8803_v32  ;;  %4677 = vmatpush1.msra.mxu0 %v5768_v0  ;;  %v5765_v32 = vld [vmem:[%s9793_s3 + $0x360] sm:$0xff]  ;;  %v5755_v0 = vld [vmem:[%s9793_s3 + $0x310] sm:$0xff] }
 0x267   : > { %6511 = vmatpush3.msra.mxu1 %v5792_v47  ;;  %4678 = vmatprep.subr.mxu0 %v8696_v42  ;;  %v9984_v47 = vld [vmem:[#allocation9_spill] sm:$0xff] }
 0x268   : > { %6512 = vmatprep.subr.mxu1 %v5791_v53  ;;  %4095 = vmatmul.mubr.f32.gmra.mxu1 %v8945_v30 }
 0x269   : > { %4679 = vmatpush1.msra.mxu0 %v5767_v13  ;;  %4099 = vmatprep.mubr.f32.mxu1 %v8844_v14  ;;  %v9976_v14 = vld [vmem:[#allocation32_spill] sm:$0xff] }
 0x26a   : > { %6450 = vmatmul.mubr.f32.gmra.mxu0 %v8814_v61  ;;  %4680 = vmatprep.subr.mxu0 %v8696_v42  ;;  %v9193_v61 = vld [vmem:[#allocation2] sm:$0xff]  ;;  %v5754_v13 = vld [vmem:[%s9793_s3 + $0x308] sm:$0xff] }
 0x26b   : > { %6452 = vmatprep.mubr.f32.mxu0 %v8826_v35  ;;  %4681 = vmatpush1.msra.mxu0 %v5766_v52  ;;  %v5761_v35 = vld [vmem:[%s9793_s3 + $0x340] sm:$0xff]  ;;  %v9986_v52 = vld [vmem:[#allocation21_spill] sm:$0xff] }
 0x26c   : > { %6513 = vmatpush3.msra.mxu1 %v5791_v53  ;;  %4682 = vmatprep.subr.mxu0 %v8696_v42  ;;  %v5762_v42 = vld [vmem:[%s9793_s3 + $0x348] sm:$0xff]  ;;  %v9985_v53 = vld [vmem:[#allocation35_spill] sm:$0xff] }
 0x26d   : > { %4100 = vmatmul.mubr.f32.gmra.mxu1 %v8955_v40  ;;  %4683 = vmatpush1.msra.mxu0 %v5765_v32  ;;  %v9987_v32 = vld [vmem:[#allocation8_spill] sm:$0xff] }
 0x26e   : > { %4104 = vmatprep.mubr.f32.mxu1 %v8831_v33  ;;  %6453 = vmatmul.mubr.f32.gmra.mxu0 %v8837_v50  ;;  %v5760_v33 = vld [vmem:[%s9793_s3 + $0x338] sm:$0xff]  ;;  %v9975_v50 = vld [vmem:[#allocation17_spill] sm:$0xff] }
 0x26f   : > { %4684 = vmatprep.subr.mxu0 %v9193_v61  ;;  %6455 = vmatprep.mubr.f32.mxu0 %v8847_v6  ;;  %v5759_v6 = vld [vmem:[%s9793_s3 + $0x330] sm:$0xff] }
 0x270   : > { %4685 = vmatpush1.msra.mxu0 %v5764_v59  ;;  %v5753_v59 = vld [vmem:[%s9793_s3 + $0x300] sm:$0xff] }
 0x271   : > { %4105 = vmatmul.mubr.f32.gmra.mxu1 %v8969_v2  ;;  %4686 = vmatprep.subr.mxu0 %v9193_v61 }
 0x272   : > { %4109 = vmatprep.mubr.f32.mxu1 %v8863_v58  ;;  %4687 = vmatpush1.msra.mxu0 %v5763_v36  ;;  %v9978_v58 = vld [vmem:[#allocation26_spill] sm:$0xff]  ;;  %v9988_v36 = vld [vmem:[#allocation24_spill] sm:$0xff] }
 0x273   : > { %6456 = vmatmul.mubr.f32.gmra.mxu0 %v8857_v46  ;;  %4688 = vmatprep.subr.mxu0 %v9193_v61  ;;  %v9977_v46 = vld [vmem:[#allocation7_spill] sm:$0xff] }
 0x274   : > { %6458 = vmatprep.mubr.f32.mxu0 %v8866_v21  ;;  %4689 = vmatpush1.msra.mxu0 %v5762_v42  ;;  %v5758_v21 = vld [vmem:[%s9793_s3 + $0x328] sm:$0xff]  ;;  %v9989_v42 = vld [vmem:[#allocation39_spill] sm:$0xff] }
 0x275   : > { %4110 = vmatmul.mubr.f32.gmra.mxu1 %v8978_v51  ;;  %4690 = vmatprep.subr.mxu0 %v9193_v61 }
 0x276   : > { %4114 = vmatprep.mubr.f32.mxu1 %v9975_v50  ;;  %4691 = vmatpush1.msra.mxu0 %v5761_v35  ;;  %v5784_v35 = vld [vmem:[%s9793_s3 + $0x3f8] sm:$0xff]  ;;  %v9991_v50 = vld [vmem:[#allocation36_spill] sm:$0xff] }
 0x277   : > { %6459 = vmatmul.mubr.f32.gmra.mxu0 %v9976_v14  ;;  %4692 = vmatprep.subr.mxu0 %v9193_v61  ;;  %v5783_v14 = vld [vmem:[%s9793_s3 + $0x3f0] sm:$0xff] }
 0x278   : > { %6461 = vmatprep.mubr.f32.mxu0 %v9977_v46  ;;  %4693 = vmatpush1.msra.mxu0 %v5760_v33  ;;  %v9990_v33 = vld [vmem:[#allocation19_spill] sm:$0xff]  ;;  %v9993_v46 = vld [vmem:[#allocation40_spill] sm:$0xff] }
 0x279   : > { %4115 = vmatmul.mubr.f32.gmra.mxu1 %v9978_v58  ;;  %4694 = vmatprep.subr.mxu0 %v9193_v61 }
 0x27a   : > { %4119 = vmatprep.mubr.f32.mxu1 %v9979_v28  ;;  %4695 = vmatpush1.msra.mxu0 %v5759_v6  ;;  %v9992_v6 = vld [vmem:[#allocation11_spill] sm:$0xff] }
 0x27b   : > { %6462 = vmatmul.mubr.f32.gmra.mxu0 %v9980_v3  ;;  %4696 = vmatprep.subr.mxu0 %v9193_v61  ;;  %v9994_v28 = vld [vmem:[#allocation23_spill] sm:$0xff] }
 0x27c   : > { %6464 = vmatprep.mubr.f32.mxu0 %v9981_v4  ;;  %4697 = vmatpush1.msra.mxu0 %v5758_v21  ;;  %v5782_v21 = vld [vmem:[%s9793_s3 + $0x3e8] sm:$0xff]  ;;  %v5781_v3 = vld [vmem:[%s9793_s3 + $0x3e0] sm:$0xff]  ;;  %v9996_v4 = vld [vmem:[#allocation10_spill] sm:$0xff] }
 0x27d   : > { %4120 = vmatmul.mubr.f32.gmra.mxu1 %v9982_v55  ;;  %4698 = vmatprep.subr.mxu0 %v9193_v61 }
 0x27e   : > { %4124 = vmatprep.mubr.f32.mxu1 %v9983_v12  ;;  %4699 = vmatpush1.msra.mxu0 %v5757_v27  ;;  %v9995_v27 = vld [vmem:[#allocation37_spill] sm:$0xff] }
 0x27f   : > { %6465 = vmatmul.mubr.f32.gmra.mxu0 %v9984_v47  ;;  %4700 = vmatprep.subr.mxu0 %v9193_v61  ;;  %v9997_v12 = vld [vmem:[#allocation13_spill] sm:$0xff] }
 0x280   : > { %6467 = vmatprep.mubr.f32.mxu0 %v9985_v53  ;;  %4701 = vmatpush1.msra.mxu0 %v5756_v54  ;;  %v5779_v54 = vld [vmem:[%s9793_s3 + $0x3d0] sm:$0xff]  ;;  %v9999_v53 = vld [vmem:[#allocation12_spill] sm:$0xff] }
 0x281   : > { %4125 = vmatmul.mubr.f32.gmra.mxu1 %v9013_v22  ;;  %4702 = vmatprep.subr.mxu0 %v9193_v61  ;;  %v9998_v47 = vld [vmem:[#allocation25_spill] sm:$0xff] }
 0x282   : > { %4129 = vmatprep.mubr.f32.mxu1 %v9986_v52  ;;  %4703 = vmatpush1.msra.mxu0 %v5755_v0  ;;  %v5777_v0 = vld [vmem:[%s9793_s3 + $0x3c0] sm:$0xff]  ;;  %v5775_v52 = vld [vmem:[%s9793_s3 + $0x3b0] sm:$0xff] }
 0x283   : > { %6468 = vmatmul.mubr.f32.gmra.mxu0 %v9987_v32  ;;  %4704 = vmatprep.subr.mxu0 %v9193_v61  ;;  %v10001_v32 = vld [vmem:[#allocation16_spill] sm:$0xff] }
 0x284   : > { %6470 = vmatprep.mubr.f32.mxu0 %v9988_v36  ;;  %4705 = vmatpush1.msra.mxu0 %v5754_v13  ;;  %v10000_v13 = vld [vmem:[#allocation28_spill] sm:$0xff] }
 0x285   : > { %4130 = vmatmul.mubr.f32.gmra.mxu1 %v9989_v42  ;;  %4706 = vmatprep.subr.mxu0 %v9193_v61  ;;  %v9340_v36 = vld [vmem:[#allocation2 + $0x182] sm:$0xff] }
 0x286   : > { %4134 = vmatprep.mubr.f32.mxu1 %v9990_v33  ;;  %4707 = vmatpush1.msra.mxu0 %v5753_v59  ;;  %v5773_v59 = vld [vmem:[%s9793_s3 + $0x3a0] sm:$0xff]  ;;  %v5771_v33 = vld [vmem:[%s9793_s3 + $0x390] sm:$0xff] }
 0x287   : > { %6471 = vmatmul.mubr.f32.gmra.mxu0 %v9991_v50  ;;  %4708 = vmatprep.subr.mxu0 %v9193_v61  ;;  %v9355_v50 = vld [vmem:[#allocation2 + $0x18a] sm:$0xff] }
 0x288   : > { %6473 = vmatprep.mubr.f32.mxu0 %v9992_v6  ;;  %4709 = vmatpush2.msra.mxu0 %v5784_v35  ;;  %v5790_v35 = vld [vmem:[%s9793_s3 + $0x428] sm:$0xff]  ;;  %v6647_v6 = vld [vmem:[#allocation2 + $0x31] sm:$0xff] }
 0x289   : > { %4135 = vmatmul.mubr.f32.gmra.mxu1 %v9993_v46  ;;  %4710 = vmatprep.subr.mxu0 %v9193_v61 }
 0x28a   : > { %4139 = vmatprep.mubr.f32.mxu1 %v8924_v17  ;;  %4711 = vmatpush2.msra.mxu0 %v5783_v14  ;;  %v5780_v17 = vld [vmem:[%s9793_s3 + $0x3d8] sm:$0xff]  ;;  %v5769_v14 = vld [vmem:[%s9793_s3 + $0x380] sm:$0xff] }
 0x28b   : > { %6474 = vmatmul.mubr.f32.gmra.mxu0 %v9994_v28  ;;  %4712 = vmatprep.subr.mxu0 %v9193_v61  ;;  %v6648_v28 = vld [vmem:[#allocation2 + $0x30] sm:$0xff] }
 0x28c   : > { %6476 = vmatprep.mubr.f32.mxu0 %v9995_v27  ;;  %4713 = vmatpush2.msra.mxu0 %v5782_v21  ;;  %v5788_v21 = vld [vmem:[%s9793_s3 + $0x418] sm:$0xff] }
 0x28d   : > { %4140 = vmatmul.mubr.f32.gmra.mxu1 %v9044_v23  ;;  %4714 = vmatprep.subr.mxu0 %v9193_v61 }
 0x28e   : > { %4144 = vmatprep.mubr.f32.mxu1 %v8934_v57  ;;  %4715 = vmatpush2.msra.mxu0 %v5781_v3  ;;  %v5778_v57 = vld [vmem:[%s9793_s3 + $0x3c8] sm:$0xff]  ;;  %v6649_v3 = vld [vmem:[#allocation2 + $0x39] sm:$0xff] }
 0x28f   : > { %6477 = vmatmul.mubr.f32.gmra.mxu0 %v9996_v4  ;;  %4716 = vmatprep.subr.mxu0 %v9193_v61 }
 0x290   : > { %6479 = vmatprep.mubr.f32.mxu0 %v9997_v12  ;;  %4717 = vmatpush2.msra.mxu0 %v5780_v17  ;;  %v5787_v17 = vld [vmem:[%s9793_s3 + $0x410] sm:$0xff] }
 0x291   : > { %4145 = vmatmul.mubr.f32.gmra.mxu1 %v9057_v37  ;;  %4718 = vmatprep.subr.mxu0 %v9193_v61 }
 0x292   : > { %4149 = vmatprep.mubr.f32.mxu1 %v8949_v45  ;;  %4719 = vmatpush2.msra.mxu0 %v5779_v54  ;;  %v5776_v45 = vld [vmem:[%s9793_s3 + $0x3b8] sm:$0xff]  ;;  %v9379_v54 = vpop.f32.mrf.mxu1 }
 0x293   : > { %6480 = vmatmul.mubr.f32.gmra.mxu0 %v9998_v47  ;;  %4720 = vmatprep.subr.mxu0 %v9193_v61 }
 0x294   : > { %6482 = vmatprep.mubr.f32.mxu0 %v9999_v53  ;;  %4721 = vmatpush2.msra.mxu0 %v5778_v57  ;;  %v6650_v57 = vld [vmem:[#allocation2 + $0x38] sm:$0xff] }
 0x295   : > { %4150 = vmatmul.mubr.f32.gmra.mxu1 %v9066_v31  ;;  %4722 = vmatprep.subr.mxu0 %v9193_v61 }
 0x296   : > { %4154 = vmatprep.mubr.f32.mxu1 %v8958_v62  ;;  %4723 = vmatpush2.msra.mxu0 %v5777_v0  ;;  %v5774_v62 = vld [vmem:[%s9793_s3 + $0x3a8] sm:$0xff] }
 0x297   : > { %6483 = vmatmul.mubr.f32.gmra.mxu0 %v10000_v13  ;;  %4724 = vmatprep.subr.mxu0 %v9193_v61  ;;  %v6651_v0 = vld [vmem:[#allocation2 + $0x49] sm:$0xff] }
 0x298   : > { %6485 = vmatprep.mubr.f32.mxu0 %v10001_v32  ;;  %4725 = vmatpush2.msra.mxu0 %v5776_v45 }
 0x299   : > { %4155 = vmatmul.mubr.f32.gmra.mxu1 %v9080_v29  ;;  %4726 = vmatprep.subr.mxu0 %v9193_v61 }
 0x29a   : > { %4159 = vmatprep.mubr.f32.mxu1 %v8973_v8  ;;  %4727 = vmatpush2.msra.mxu0 %v5775_v52  ;;  %v5772_v8 = vld [vmem:[%s9793_s3 + $0x398] sm:$0xff]  ;;  %v5785_v52 = vld [vmem:[%s9793_s3 + $0x400] sm:$0xff] }
 0x29b   : > { %6486 = vmatmul.mubr.f32.gmra.mxu0 %v9052_v11  ;;  %4728 = vmatprep.subr.mxu0 %v9193_v61 }
 0x29c   : > { %6488 = vmatprep.mubr.f32.mxu0 %v9074_v44  ;;  %4729 = vmatpush2.msra.mxu0 %v5774_v62 }
 0x29d   : > { %4160 = vmatmul.mubr.f32.gmra.mxu1 %v9088_v19  ;;  %4730 = vmatprep.subr.mxu0 %v9193_v61 }
 0x29e   : > { %4164 = vmatprep.mubr.f32.mxu1 %v8981_v20  ;;  %4731 = vmatpush2.msra.mxu0 %v5773_v59  ;;  %v5770_v20 = vld [vmem:[%s9793_s3 + $0x388] sm:$0xff] }
 0x29f   : > { %6489 = vmatmul.mubr.f32.gmra.mxu0 %v9076_v34  ;;  %4732 = vmatprep.subr.mxu0 %v9193_v61 }
 0x2a0   : > { %6491 = vmatprep.mubr.f32.mxu0 %v9340_v36  ;;  %4733 = vmatpush2.msra.mxu0 %v5772_v8  ;;  %v6652_v8 = vld [vmem:[#allocation2 + $0x51] sm:$0xff] }
 0x2a1   : > { %4165 = vmatmul.mubr.f32.gmra.mxu1 %v9098_v5  ;;  %4734 = vmatprep.subr.mxu0 %v9193_v61 }
 0x2a2   : > { %6514 = vmatprep.subr.mxu1 %v5790_v35  ;;  %4169 = vmatprep.mubr.f32.mxu1 %v8995_v1  ;;  %v5789_v1 = vld [vmem:[%s9793_s3 + $0x420] sm:$0xff] }
 0x2a3   : > { %4735 = vmatpush2.msra.mxu0 %v5771_v33  ;;  %6515 = vmatpush3.msra.mxu1 %v5790_v35 }
 0x2a4   : > { %6492 = vmatmul.mubr.f32.gmra.mxu0 %v9355_v50  ;;  %4736 = vmatprep.subr.mxu0 %v9193_v61 }
 0x2a5   : > { %4737 = vmatpush2.msra.mxu0 %v5770_v20  ;;  %4740 = vmatprep.mubr.f32.mxu0 %v6647_v6 }
 0x2a6   : > { %4170 = vmatmul.mubr.f32.gmra.mxu1 %v9107_v7  ;;  %4738 = vmatprep.subr.mxu0 %v9193_v61 }
 0x2a7   : > { %4174 = vmatprep.mubr.f32.mxu1 %v9003_v39  ;;  %4739 = vmatpush2.msra.mxu0 %v5769_v14  ;;  %v5786_v39 = vld [vmem:[%s9793_s3 + $0x408] sm:$0xff] }
 0x2a8   : > { %4741 = vmatmul.mubr.f32.vlgmr.msra.gmra.mxu0 %v6648_v28  ;;  %6516 = vmatprep.subr.mxu1 %v5789_v1 }
 0x2a9   : > { %4745 = vmatprep.mubr.f32.mxu0 %v6649_v3  ;;  %6517 = vmatpush3.msra.mxu1 %v5789_v1 }
 0x2aa   : > { %4175 = vmatmul.mubr.f32.gmra.mxu1 %v9116_v10  ;;  %6518 = vmatprep.subr.mxu1 %v5788_v21 }
 0x2ab   : > { %4179 = vmatprep.mubr.f32.mxu1 %v9017_v38  ;;  %6519 = vmatpush3.msra.mxu1 %v5788_v21 }
 0x2ac   : > { %4746 = vmatmul.mubr.f32.gmra.mxu0 %v6650_v57  ;;  %6520 = vmatprep.subr.mxu1 %v5787_v17  ;;  %v6654_v57 = vld [vmem:[#allocation2 + $0x69] sm:$0xff] }
 0x2ad   : > { %4750 = vmatprep.mubr.f32.mxu0 %v6651_v0  ;;  %v3370_v45 = vpop.f32.mrf.mxu0  ;;  %6521 = vmatpush3.msra.mxu1 %v5787_v17  ;;  %v6371_v38 = vpop.f32.mrf.mxu1 }
 0x2ae   : > { %4180 = vmatmul.mubr.f32.gmra.mxu1 %v9125_v60  ;;  %6522 = vmatprep.subr.mxu1 %v5786_v39 }
 0x2af   : > { %4184 = vmatprep.mubr.f32.mxu1 %v9025_v48  ;;  %v3372_v62 = vpop.f32.mrf.mxu0  ;;  %6523 = vmatpush3.msra.mxu1 %v5786_v39  ;;  %v3595_v59 = vpop.f32.mrf.mxu1 }
 0x2b0   : > { %4751 = vmatmul.mubr.f32.gmra.mxu0 %v8868_v41  ;;  %6524 = vmatprep.subr.mxu1 %v5785_v52  ;;  %v9387_v35 = vadd.f32 %v3595_v59, %v3370_v45  ;;  %v6653_v41 = vld [vmem:[#allocation2 + $0x61] sm:$0xff]  ;;  %v6655_v62 = vld [vmem:[#allocation2 + $0x79] sm:$0xff] }
 0x2b1   : > { %4755 = vmatprep.mubr.f32.mxu0 %v6652_v8  ;;  %v3375_v33 = vpop.f32.mrf.mxu0  ;;  %6525 = vmatpush3.msra.mxu1 %v5785_v52  ;;  %v6374_v14 = vpop.f32.mrf.mxu1  ;;  %v9404_v59 = vld [vmem:[#allocation2 + $0x180] sm:$0xff] }
 0x2b2   : > { %4185 = vmatmul.mubr.f32.gmra.mxu1 %v9134_v26  ;;  %v9390_v20 = vadd.f32 %v6371_v38, %v3375_v33  ;;  %v10003_v33 = vld [vmem:[#allocation5_spill] sm:$0xff] }
 0x2b3   : > { %4189 = vmatprep.mubr.f32.mxu1 %v9039_v63  ;;  %v3377_v6 = vpop.f32.mrf.mxu0  ;;  %v3605_v1 = vpop.f32.mrf.mxu1 }
 0x2b4   : > { %4756 = vmatmul.mubr.f32.gmra.mxu0 %v8886_v16 }
 0x2b5   : > { %4760 = vmatprep.mubr.f32.mxu0 %v6653_v41  ;;  %v3380_v21 = vpop.f32.mrf.mxu0  ;;  %v6377_v3 = vpop.f32.mrf.mxu1  ;;  %v9411_v41 = vld [vmem:[#allocation2 + $0x188] sm:$0xff] }
 0x2b6   : > { %4190 = vmatmul.mubr.f32.gmra.mxu1 %v9143_v43  ;;  %v9395_v28 = vadd.f32 %v3605_v1, %v3380_v21  ;;  %v6656_v1 = vld [vmem:[#allocation2 + $0x81] sm:$0xff] }
 0x2b7   : > { %4194 = vmatprep.mubr.f32.mxu1 %v9047_v56  ;;  %v3382_v17 = vpop.f32.mrf.mxu0  ;;  %v3615_v39 = vpop.f32.mrf.mxu1 }
 0x2b8   : > { %4761 = vmatmul.mubr.f32.gmra.mxu0 %v8902_v25 }
 0x2b9   : > { %4765 = vmatprep.mubr.f32.mxu0 %v6654_v57  ;;  %v3385_v0 = vpop.f32.mrf.mxu0  ;;  %v6380_v45 = vpop.f32.mrf.mxu1  ;;  %v6657_v57 = vld [vmem:[#allocation2 + $0x32] sm:$0xff] }
 0x2ba   : > { %4195 = vmatmul.mubr.f32.gmra.mxu1 %v9152_v15  ;;  %v9400_v16 = vadd.f32 %v6374_v14, %v3385_v0  ;;  %v6658_v0 = vld [vmem:[#allocation2 + $0x91] sm:$0xff] }
 0x2bb   : > { %4199 = vmatprep.mubr.f32.mxu1 %v9061_v9  ;;  %v3387_v52 = vpop.f32.mrf.mxu0  ;;  %v3625_v38 = vpop.f32.mrf.mxu1 }
 0x2bc   : > { %4766 = vmatmul.mubr.f32.gmra.mxu0 %v8918_v24 }
 0x2bd   : > { %4770 = vmatprep.mubr.f32.mxu0 %v6655_v62  ;;  %v3390_v25 = vpop.f32.mrf.mxu0  ;;  %v6383_v14 = vpop.f32.mrf.mxu1  ;;  %v6659_v62 = vld [vmem:[#allocation2 + $0x3a] sm:$0xff] }
 0x2be   : > { %4200 = vmatmul.mubr.f32.gmra.mxu1 %v9404_v59  ;;  %v9407_v8 = vadd.f32 %v3615_v39, %v3390_v25 }
 0x2bf   : > { %4204 = vmatprep.mubr.f32.mxu1 %v10003_v33  ;;  %v3392_v6 = vpop.f32.mrf.mxu0  ;;  %v3635_v17 = vpop.f32.mrf.mxu1 }
 0x2c0   : > { %10002 = vst [vmem:[#allocation27_spill] sm:$0xff] %v9407_v8  ;;  %4771 = vmatmul.mubr.f32.gmra.mxu0 %v8931_v49  ;;  %v6660_v6 = vld [vmem:[#allocation2 + $0x4a] sm:$0xff] }
 0x2c1   : > { %4775 = vmatprep.mubr.f32.mxu0 %v6656_v1  ;;  %v3395_v24 = vpop.f32.mrf.mxu0  ;;  %v6386_v25 = vpop.f32.mrf.mxu1 }
 0x2c2   : > { %4205 = vmatmul.mubr.f32.gmra.mxu1 %v9411_v41  ;;  %v9414_v21 = vadd.f32 %v6377_v3, %v3395_v24  ;;  %v6661_v3 = vld [vmem:[#allocation2 + $0x99] sm:$0xff] }
 0x2c3   : > { %6526 = vmatprep.mubr.f32.mxu1 %v6657_v57  ;;  %v3397_v39 = vpop.f32.mrf.mxu0  ;;  %v6662_v57 = vld [vmem:[#allocation2 + $0x52] sm:$0xff] }
 0x2c4   : > { %4776 = vmatmul.mubr.f32.gmra.mxu0 %v8945_v30  ;;  %v3645_v30 = vpop.f32.mrf.mxu1 }
 0x2c5   : > { %4780 = vmatprep.mubr.f32.mxu0 %v6658_v0  ;;  %v3400_v52 = vpop.f32.mrf.mxu0  ;;  %v6663_v0 = vld [vmem:[#allocation2 + $0x62] sm:$0xff] }
 0x2c6   : > { %6527 = vmatmul.mubr.f32.vlgmr.msra.gmra.mxu1 %v6659_v62  ;;  %v9417_v49 = vadd.f32 %v3625_v38, %v3400_v52  ;;  %v6664_v38 = vld [vmem:[#allocation2 + $0xa9] sm:$0xff] }
 0x2c7   : > { %6529 = vmatprep.mubr.f32.mxu1 %v6660_v6  ;;  %v3402_v1 = vpop.f32.mrf.mxu0  ;;  %v6665_v62 = vld [vmem:[#allocation2 + $0x6a] sm:$0xff] }
 0x2c8   : > { %4781 = vmatmul.mubr.f32.gmra.mxu0 %v8955_v40  ;;  %v6389_v40 = vpop.f32.mrf.mxu1  ;;  %v6666_v1 = vld [vmem:[#allocation2 + $0x7a] sm:$0xff] }
 0x2c9   : > { %4785 = vmatprep.mubr.f32.mxu0 %v6661_v3  ;;  %v3405_v24 = vpop.f32.mrf.mxu0 }
 0x2ca   : > { %6530 = vmatmul.mubr.f32.gmra.mxu1 %v6662_v57  ;;  %v9420_v39 = vadd.f32 %v6380_v45, %v3405_v24  ;;  %v6667_v45 = vld [vmem:[#allocation2 + $0xb1] sm:$0xff]  ;;  %v6668_v57 = vld [vmem:[#allocation2 + $0x82] sm:$0xff] }
 0x2cb   : > { %6532 = vmatprep.mubr.f32.mxu1 %v6663_v0  ;;  %v3407_v8 = vpop.f32.mrf.mxu0  ;;  %v6669_v0 = vld [vmem:[#allocation2 + $0x92] sm:$0xff] }
 0x2cc   : > { %4786 = vmatmul.mubr.f32.gmra.mxu0 %v8969_v2  ;;  %v3655_v2 = vpop.f32.mrf.mxu1 }
 0x2cd   : > { %4790 = vmatprep.mubr.f32.mxu0 %v6664_v38  ;;  %v3410_v52 = vpop.f32.mrf.mxu0 }
 0x2ce   : > { %6533 = vmatmul.mubr.f32.gmra.mxu1 %v6665_v62  ;;  %v9423_v6 = vadd.f32 %v3635_v17, %v3410_v52  ;;  %v6670_v17 = vld [vmem:[#allocation2 + $0xc1] sm:$0xff] }
 0x2cf   : > { %6535 = vmatprep.mubr.f32.mxu1 %v6666_v1  ;;  %v3412_v3 = vpop.f32.mrf.mxu0  ;;  %v6671_v62 = vld [vmem:[#allocation2 + $0x9a] sm:$0xff] }
 0x2d0   : > { %4791 = vmatmul.mubr.f32.gmra.mxu0 %v8978_v51  ;;  %v6392_v51 = vpop.f32.mrf.mxu1  ;;  %v6672_v3 = vld [vmem:[#allocation2 + $0xaa] sm:$0xff] }
 0x2d1   : > { %4795 = vmatprep.mubr.f32.mxu0 %v6667_v45  ;;  %v3415_v24 = vpop.f32.mrf.mxu0 }
 0x2d2   : > { %6536 = vmatmul.mubr.f32.gmra.mxu1 %v6668_v57  ;;  %v9426_v8 = vadd.f32 %v6383_v14, %v3415_v24  ;;  %v6673_v14 = vld [vmem:[#allocation2 + $0xc9] sm:$0xff]  ;;  %v6674_v57 = vld [vmem:[#allocation2 + $0xb2] sm:$0xff] }
 0x2d3   : > { %6538 = vmatprep.mubr.f32.mxu1 %v6669_v0  ;;  %v3417_v38 = vpop.f32.mrf.mxu0 }
 0x2d4   : > { %4796 = vmatmul.mubr.f32.gmra.mxu0 %v9978_v58  ;;  %v3665_v58 = vpop.f32.mrf.mxu1  ;;  %v6675_v38 = vld [vmem:[#allocation2 + $0xc2] sm:$0xff] }
 0x2d5   : > { %4800 = vmatprep.mubr.f32.mxu0 %v6670_v17  ;;  %v3420_v52 = vpop.f32.mrf.mxu0 }
 0x2d6   : > { %6539 = vmatmul.mubr.f32.gmra.mxu1 %v6671_v62  ;;  %v9429_v1 = vadd.f32 %v3645_v30, %v3420_v52  ;;  %v6395_v30 = vpop.f32.mrf.mxu1  ;;  %v6676_v52 = vld [vmem:[#allocation2 + $0xd9] sm:$0xff] }
 0x2d7   : > { %6541 = vmatprep.mubr.f32.mxu1 %v6672_v3  ;;  %v3422_v45 = vpop.f32.mrf.mxu0  ;;  %v6677_v3 = vld [vmem:[#allocation2 + $0xca] sm:$0xff] }
 0x2d8   : > { %10004 = vst [vmem:[#allocation41_spill] sm:$0xff] %v9429_v1  ;;  %4801 = vmatmul.mubr.f32.gmra.mxu0 %v9982_v55  ;;  %v6678_v45 = vld [vmem:[#allocation2 + $0xda] sm:$0xff] }
 0x2d9   : > { %4805 = vmatprep.mubr.f32.mxu0 %v6673_v14  ;;  %v3425_v24 = vpop.f32.mrf.mxu0 }
 0x2da   : > { %6542 = vmatmul.mubr.f32.gmra.mxu1 %v6674_v57  ;;  %v9432_v0 = vadd.f32 %v6386_v25, %v3425_v24  ;;  %v3675_v25 = vpop.f32.mrf.mxu1  ;;  %v6679_v24 = vld [vmem:[#allocation2 + $0xe1] sm:$0xff] }
 0x2db   : > { %6544 = vmatprep.mubr.f32.mxu1 %v6675_v38  ;;  %v3427_v17 = vpop.f32.mrf.mxu0  ;;  %v6680_v38 = vld [vmem:[#allocation2 + $0xe2] sm:$0xff] }
 0x2dc   : > { %4806 = vmatmul.mubr.f32.gmra.mxu0 %v9013_v22  ;;  %v6398_v17 = vpop.f32.mrf.mxu1 }
 0x2dd   : > { %4810 = vmatprep.mubr.f32.mxu0 %v6676_v52  ;;  %v3430_v62 = vpop.f32.mrf.mxu0  ;;  %v6681_v52 = vld [vmem:[#allocation2 + $0xf2] sm:$0xff] }
 0x2de   : > { %6545 = vmatmul.mubr.f32.gmra.mxu1 %v6677_v3  ;;  %v9435_v55 = vadd.f32 %v3655_v2, %v3430_v62  ;;  %v6682_v2 = vld [vmem:[#allocation2 + $0xf1] sm:$0xff]  ;;  %v6683_v3 = vld [vmem:[#allocation2 + $0xfa] sm:$0xff] }
 0x2df   : > { %6547 = vmatprep.mubr.f32.mxu1 %v6678_v45  ;;  %v3432_v14 = vpop.f32.mrf.mxu0  ;;  %v3685_v45 = vpop.f32.mrf.mxu1 }
 0x2e0   : > { %4811 = vmatmul.mubr.f32.gmra.mxu0 %v9989_v42 }
 0x2e1   : > { %4815 = vmatprep.mubr.f32.mxu0 %v6679_v24  ;;  %v3435_v57 = vpop.f32.mrf.mxu0  ;;  %v6684_v24 = vld [vmem:[#allocation2 + $0xf9] sm:$0xff] }
 0x2e2   : > { %6548 = vmatmul.mubr.f32.gmra.mxu1 %v6680_v38  ;;  %v9438_v22 = vadd.f32 %v6389_v40, %v3435_v57  ;;  %v6401_v40 = vpop.f32.mrf.mxu1  ;;  %v6685_v38 = vld [vmem:[#allocation2 + $0x109] sm:$0xff] }
 0x2e3   : > { %6550 = vmatprep.mubr.f32.mxu1 %v6681_v52  ;;  %v3437_v1 = vpop.f32.mrf.mxu0 }
 0x2e4   : > { %4816 = vmatmul.mubr.f32.gmra.mxu0 %v9993_v46 }
 0x2e5   : > { %4820 = vmatprep.mubr.f32.mxu0 %v6682_v2  ;;  %v3440_v62 = vpop.f32.mrf.mxu0 }
 0x2e6   : > { %6551 = vmatmul.mubr.f32.gmra.mxu1 %v6683_v3  ;;  %v9441_v42 = vadd.f32 %v3665_v58, %v3440_v62  ;;  %v3695_v58 = vpop.f32.mrf.mxu1  ;;  %v6687_v62 = vld [vmem:[#allocation2 + $0x121] sm:$0xff]  ;;  %v6688_v3 = vld [vmem:[#allocation2 + $0x129] sm:$0xff] }
 0x2e7   : > { %6553 = vmatprep.mubr.f32.mxu1 %v9995_v27  ;;  %v3442_v14 = vpop.f32.mrf.mxu0 }
 0x2e8   : > { %4821 = vmatmul.mubr.f32.gmra.mxu0 %v9044_v23 }
 0x2e9   : > { %4825 = vmatprep.mubr.f32.mxu0 %v6684_v24  ;;  %v3445_v57 = vpop.f32.mrf.mxu0  ;;  %v9453_v52 = vpop.f32.mrf.mxu1 }
 0x2ea   : > { %6554 = vmatmul.mubr.f32.gmra.mxu1 %v9996_v4  ;;  %v9446_v46 = vadd.f32 %v6392_v51, %v3445_v57  ;;  %v6686_v51 = vld [vmem:[#allocation2 + $0x111] sm:$0xff] }
 0x2eb   : > { %6556 = vmatprep.mubr.f32.mxu1 %v9997_v12  ;;  %v3447_v1 = vpop.f32.mrf.mxu0  ;;  %v3705_v2 = vpop.f32.mrf.mxu1 }
 0x2ec   : > { %4826 = vmatmul.mubr.f32.gmra.mxu0 %v9057_v37 }
 0x2ed   : > { %4830 = vmatprep.mubr.f32.mxu0 %v6685_v38  ;;  %v3450_v27 = vpop.f32.mrf.mxu0 }
 0x2ee   : > { %6557 = vmatmul.mubr.f32.gmra.mxu1 %v9998_v47  ;;  %v9451_v23 = vadd.f32 %v3675_v25, %v3450_v27 }
 0x2ef   : > { %6559 = vmatprep.mubr.f32.mxu1 %v9999_v53  ;;  %v3452_v4 = vpop.f32.mrf.mxu0 }
 0x2f0   : > { %4831 = vmatmul.mubr.f32.gmra.mxu0 %v9066_v31  ;;  %v9462_v25 = vpop.f32.mrf.mxu1 }
 0x2f1   : > { %4835 = vmatprep.mubr.f32.mxu0 %v6686_v51  ;;  %v3455_v12 = vpop.f32.mrf.mxu0 }
 0x2f2   : > { %6560 = vmatmul.mubr.f32.gmra.mxu1 %v10000_v13  ;;  %v9458_v37 = vadd.f32 %v6395_v30, %v3455_v12  ;;  %v3715_v30 = vpop.f32.mrf.mxu1 }
 0x2f3   : > { %6562 = vmatprep.mubr.f32.mxu1 %v10001_v32  ;;  %v3457_v47 = vpop.f32.mrf.mxu0 }
 0x2f4   : > { %4836 = vmatmul.mubr.f32.gmra.mxu0 %v9080_v29 }
 0x2f5   : > { %4840 = vmatprep.mubr.f32.mxu0 %v6687_v62  ;;  %v3460_v53 = vpop.f32.mrf.mxu0 }
 0x2f6   : > { %6563 = vmatmul.mubr.f32.gmra.mxu1 %v9052_v11  ;;  %v9465_v31 = vadd.f32 %v3685_v45, %v3460_v53  ;;  %v3048_v45 = vld [vmem:[#allocation2 + $0x19a] sm:$0xff] }
 0x2f7   : > { %6565 = vmatprep.mubr.f32.mxu1 %v9074_v44  ;;  %v3462_v13 = vpop.f32.mrf.mxu0  ;;  %v6689_v44 = vld [vmem:[#allocation2 + $0x139] sm:$0xff] }
 0x2f8   : > { %4841 = vmatmul.mubr.f32.gmra.mxu0 %v9088_v19 }
 0x2f9   : > { %4845 = vmatprep.mubr.f32.mxu0 %v6688_v3  ;;  %v3465_v32 = vpop.f32.mrf.mxu0  ;;  %v9472_v14 = vpop.f32.mrf.mxu1 }
 0x2fa   : > { %6566 = vmatmul.mubr.f32.gmra.mxu1 %v9076_v34  ;;  %v9470_v29 = vadd.f32 %v6398_v17, %v3465_v32  ;;  %v3049_v34 = vld [vmem:[#allocation2 + $0x1a2] sm:$0xff] }
 0x2fb   : > { %6568 = vmatprep.mubr.f32.mxu1 %v9340_v36  ;;  %v3467_v11 = vpop.f32.mrf.mxu0  ;;  %v3725_v57 = vpop.f32.mrf.mxu1  ;;  %v6690_v17 = vld [vmem:[#allocation2 + $0x141] sm:$0xff] }
 0x2fc   : > { %4846 = vmatmul.mubr.f32.gmra.mxu0 %v9098_v5 }
 0x2fd   : > { %4850 = vmatprep.mubr.f32.mxu0 %v6689_v44  ;;  %v3470_v24 = vpop.f32.mrf.mxu0 }
 0x2fe   : > { %6569 = vmatmul.mubr.f32.gmra.mxu1 %v9355_v50  ;;  %v9477_v19 = vadd.f32 %v3695_v58, %v3470_v24  ;;  %v6691_v50 = vld [vmem:[#allocation2 + $0x151] sm:$0xff] }
 0x2ff   : > { %v3472_v1 = vpop.f32.mrf.mxu0  ;;  %6571 = vmatprep.mubr.f32.mxu1 %v3048_v45 }
 0x300   : > { %4851 = vmatmul.mubr.f32.gmra.mxu0 %v9107_v7  ;;  %v6413_v36 = vpop.f32.mrf.mxu1 }
 0x301   : > { %4855 = vmatprep.mubr.f32.mxu0 %v6690_v17  ;;  %v3475_v38 = vpop.f32.mrf.mxu0  ;;  %v2976_v17 = vld [vmem:[#allocation2 + $0x199] sm:$0xff] }
 0x302   : > { %v9480_v27 = vadd.f32 %v6401_v40, %v3475_v38  ;;  %6572 = vmatmul.mubr.f32.gmra.mxu1 %v3049_v34  ;;  %v3735_v5 = vpop.f32.mrf.mxu1 }
 0x303   : > { %v3477_v4 = vpop.f32.mrf.mxu0 }
 0x304   : > { %4856 = vmatmul.mubr.f32.gmra.mxu0 %v9116_v10  ;;  %v9483_v58 = vpop.f32.mrf.mxu1 }
 0x305   : > { %4860 = vmatprep.mubr.f32.mxu0 %v6691_v50  ;;  %v3480_v51 = vpop.f32.mrf.mxu0  ;;  %v2977_v50 = vld [vmem:[#allocation2 + $0x1a1] sm:$0xff] }
 0x306   : > { %v9485_v12 = vadd.f32 %v3705_v2, %v3480_v51  ;;  %v4053_v47 = vpop.f32.mrf.mxu1 }
 0x307   : > { %v3482_v7 = vpop.f32.mrf.mxu0 }
 0x308   : > { %4861 = vmatmul.mubr.f32.gmra.mxu0 %v9125_v60  ;;  %v4056_v40 = vpop.f32.mrf.mxu1 }
 0x309   : > { %4865 = vmatprep.mubr.f32.mxu0 %v9025_v48  ;;  %v3485_v62 = vpop.f32.mrf.mxu0 }
 0x30a   : > { %v9490_v53 = vadd.f32 %v9453_v52, %v3485_v62  ;;  %v4058_v13 = vpop.f32.mrf.mxu1 }
 0x30b   : > { %v3487_v10 = vpop.f32.mrf.mxu0  ;;  %v10005_v13 = vld [vmem:[#allocation20_spill] sm:$0xff] }
 0x30c   : > { %4866 = vmatmul.mubr.f32.gmra.mxu0 %v9134_v26  ;;  %v9494_v3 = vpop.f32.mrf.mxu1 }
 0x30d   : > { %4870 = vmatprep.mubr.f32.mxu0 %v9039_v63  ;;  %v3490_v2 = vpop.f32.mrf.mxu0 }
 0x30e   : > { %v9496_v32 = vadd.f32 %v3715_v30, %v3490_v2  ;;  %v4063_v11 = vpop.f32.mrf.mxu1  ;;  %v3745_v2 = vadd.f32 %v9193_v61, %v9084_v18  ;;  %v3746_v18 = vadd.f32 %v9193_v61, %v9387_v35 }
 0x30f   : > { %v3492_v60 = vpop.f32.mrf.mxu0 }
 0x310   : > { %4871 = vmatmul.mubr.f32.gmra.mxu0 %v9143_v43  ;;  %v4066_v48 = vpop.f32.mrf.mxu1 }
 0x311   : > { %4875 = vmatprep.mubr.f32.mxu0 %v9047_v56  ;;  %v3495_v52 = vpop.f32.mrf.mxu0 }
 0x312   : > { %v9501_v45 = vadd.f32 %v9462_v25, %v3495_v52  ;;  %v4068_v44 = vpop.f32.mrf.mxu1 }
 0x313   : > { %v3497_v26 = vpop.f32.mrf.mxu0 }
 0x314   : > { %4876 = vmatmul.mubr.f32.gmra.mxu0 %v9152_v15  ;;  %v4071_v63 = vpop.f32.mrf.mxu1 }
 0x315   : > { %4880 = vmatprep.mubr.f32.mxu0 %v9061_v9  ;;  %v3500_v30 = vpop.f32.mrf.mxu0 }
 0x316   : > { %v9505_v24 = vadd.f32 %v3725_v57, %v3500_v30  ;;  %v4073_v1 = vpop.f32.mrf.mxu1 }
 0x317   : > { %v3502_v34 = vpop.f32.mrf.mxu0 }
 0x318   : > { %4881 = vmatmul.mubr.f32.gmra.mxu0 %v9404_v59  ;;  %v4076_v56 = vpop.f32.mrf.mxu1  ;;  %v3747_v34 = vadd.f32 %v9193_v61, %v9390_v20 }
 0x319   : > { %4885 = vmatprep.mubr.f32.mxu0 %v10003_v33  ;;  %v3505_v43 = vpop.f32.mrf.mxu0 }
 0x31a   : > { %v9510_v25 = vadd.f32 %v9472_v14, %v3505_v43  ;;  %v4078_v38 = vpop.f32.mrf.mxu1 }
 0x31b   : > { %v3507_v15 = vpop.f32.mrf.mxu0 }
 0x31c   : > { %4886 = vmatmul.mubr.f32.gmra.mxu0 %v9411_v41  ;;  %v4081_v9 = vpop.f32.mrf.mxu1  ;;  %v3586_v41 = vadd.f32 %v9379_v54, %v10005_v13 }
 0x31d   : > { %4890 = vmatprep.mubr.f32.mxu0 %v2976_v17  ;;  %v3510_v57 = vpop.f32.mrf.mxu0 }
 0x31e   : > { %v9513_v4 = vadd.f32 %v3735_v5, %v3510_v57  ;;  %v4083_v51 = vpop.f32.mrf.mxu1  ;;  %v3744_v44 = vadd.f32 %v9193_v61, %v3586_v41 }
 0x31f   : > { %v3512_v59 = vpop.f32.mrf.mxu0 }
 0x320   : > { %4891 = vmatmul.mubr.f32.gmra.mxu0 %v9193_v61  ;;  %v4086_v33 = vpop.f32.mrf.mxu1  ;;  %v3749_v59 = vadd.f32 %v9193_v61, %v9400_v16  ;;  %v10006_v16 = vld [vmem:[#allocation27_spill] sm:$0xff] }
 0x321   : > { %4895 = vmatprep.mubr.f32.mxu0 %v2977_v50  ;;  %v3515_v47 = vpop.f32.mrf.mxu0 }
 0x322   : > { %v9516_v14 = vadd.f32 %v6413_v36, %v3515_v47  ;;  %v4088_v7 = vpop.f32.mrf.mxu1 }
 0x323   : > { %v3517_v62 = vpop.f32.mrf.mxu0 }
 0x324   : > { %4896 = vmatmul.mubr.f32.gmra.mxu0 %v9193_v61  ;;  %v4091_v10 = vpop.f32.mrf.mxu1 }
 0x325   : > { %v6448_v5 = vpop.f32.mrf.mxu0 }
 0x326   : > { %v4282_v11 = vadd.f32 %v6448_v5, %v4056_v40  ;;  %v4093_v60 = vpop.f32.mrf.mxu1 }
 0x327   : > { %v4276_v52 = vpop.f32.mrf.mxu0 }
 0x328   : > { %v9524_v26 = vadd.f32 %v4282_v11, %v3745_v2  ;;  %v4277_v36 = vadd.f32 %v4276_v52, %v9483_v58  ;;  %v4096_v30 = vpop.f32.mrf.mxu1 }
 0x32a   : > { %v9527_v1 = vadd.f32 %v4277_v36, %v3744_v44  ;;  %v6451_v54 = vpop.f32.mrf.mxu0  ;;  %v4098_v43 = vpop.f32.mrf.mxu1 }
 0x32b   : > { %v4292_v17 = vadd.f32 %v6451_v54, %v4066_v48  ;;  %v3748_v48 = vadd.f32 %v9193_v61, %v9395_v28 }
 0x32c   : > { %v4286_v38 = vpop.f32.mrf.mxu0 }
 0x32d   : > { %v9533_v40 = vadd.f32 %v4292_v17, %v3747_v34  ;;  %v4101_v15 = vpop.f32.mrf.mxu1  ;;  %v4287_v57 = vadd.f32 %v4286_v38, %v9494_v3  ;;  %v3751_v3 = vadd.f32 %v9193_v61, %v9414_v21 }
 0x32e   : > { %v6454_v51 = vpop.f32.mrf.mxu0 }
 0x32f   : > { %v9536_v50 = vadd.f32 %v4287_v57, %v3746_v18  ;;  %v4103_v58 = vpop.f32.mrf.mxu1  ;;  %v4302_v47 = vadd.f32 %v6454_v51, %v4076_v56  ;;  %v3750_v56 = vadd.f32 %v9193_v61, %v10006_v16 }
 0x330   : > { %v4296_v7 = vpop.f32.mrf.mxu0 }
 0x331   : > { %v4106_v20 = vpop.f32.mrf.mxu1  ;;  %v9542_v62 = vadd.f32 %v4302_v47, %v3749_v59  ;;  %v4297_v35 = vadd.f32 %v4296_v7, %v4071_v63  ;;  %v3753_v63 = vadd.f32 %v9193_v61, %v9420_v39 }
 0x333   : > { %v4108_v13 = vpop.f32.mrf.mxu1  ;;  %v6457_v41 = vpop.f32.mrf.mxu0  ;;  %v9546_v5 = vadd.f32 %v4297_v35, %v3748_v48 }
 0x334   : > { %v4312_v2 = vadd.f32 %v6457_v41, %v4086_v33  ;;  %v3752_v33 = vadd.f32 %v9193_v61, %v9417_v49 }
 0x335   : > { %v4111_v11 = vpop.f32.mrf.mxu1  ;;  %v4306_v60 = vpop.f32.mrf.mxu0 }
 0x336   : > { %v9550_v52 = vadd.f32 %v4312_v2, %v3751_v3  ;;  %v4307_v44 = vadd.f32 %v4306_v60, %v4081_v9  ;;  %v3755_v9 = vadd.f32 %v9193_v61, %v9426_v8  ;;  %v10007_v3 = vld [vmem:[#allocation41_spill] sm:$0xff] }
 0x337   : > { %v4113_v28 = vpop.f32.mrf.mxu1  ;;  %v6460_v36 = vpop.f32.mrf.mxu0 }
 0x338   : > { %v9554_v54 = vadd.f32 %v4307_v44, %v3750_v56  ;;  %v4322_v34 = vadd.f32 %v6460_v36, %v4096_v30  ;;  %v3754_v30 = vadd.f32 %v9193_v61, %v9423_v6  ;;  %v3758_v36 = vadd.f32 %v9193_v61, %v9435_v55 }
 0x339   : > { %v4116_v21 = vpop.f32.mrf.mxu1  ;;  %v4316_v43 = vpop.f32.mrf.mxu0 }
 0x33a   : > { %v9558_v17 = vadd.f32 %v4322_v34, %v3753_v63  ;;  %v4317_v38 = vadd.f32 %v4316_v43, %v4091_v10  ;;  %v3757_v10 = vadd.f32 %v9193_v61, %v9432_v0 }
 0x33b   : > { %v4118_v18 = vpop.f32.mrf.mxu1  ;;  %v6463_v57 = vpop.f32.mrf.mxu0 }
 0x33c   : > { %v9562_v58 = vadd.f32 %v4317_v38, %v3752_v33  ;;  %v4332_v51 = vadd.f32 %v6463_v57, %v4106_v20  ;;  %v3756_v20 = vadd.f32 %v9193_v61, %v10007_v3  ;;  %v3761_v18 = vadd.f32 %v9193_v61, %v9446_v46 }
 0x33d   : > { %v4121_v39 = vpop.f32.mrf.mxu1  ;;  %v4326_v59 = vpop.f32.mrf.mxu0 }
 0x33e   : > { %v9566_v47 = vadd.f32 %v4332_v51, %v3755_v9  ;;  %v4327_v7 = vadd.f32 %v4326_v59, %v4101_v15  ;;  %v3759_v15 = vadd.f32 %v9193_v61, %v9438_v22  ;;  %v3760_v22 = vadd.f32 %v9193_v61, %v9441_v42 }
 0x33f   : > { %v4123_v49 = vpop.f32.mrf.mxu1  ;;  %v6466_v48 = vpop.f32.mrf.mxu0 }
 0x340   : > { %v9570_v35 = vadd.f32 %v4327_v7, %v3754_v30  ;;  %v4342_v13 = vadd.f32 %v6466_v48, %v4116_v21  ;;  %v3762_v49 = vadd.f32 %v9193_v61, %v9451_v23 }
 0x341   : > { %v4126_v8 = vpop.f32.mrf.mxu1  ;;  %v4336_v41 = vpop.f32.mrf.mxu0 }
 0x342   : > { %v9574_v2 = vadd.f32 %v4342_v13, %v3757_v10  ;;  %v4337_v60 = vadd.f32 %v4336_v41, %v4111_v11  ;;  %v9598_v41 = vld [vmem:[#allocation2] sm:$0xff] }
 0x343   : > { %v4128_v6 = vpop.f32.mrf.mxu1  ;;  %v6469_v16 = vpop.f32.mrf.mxu0  ;;  %v3763_v3 = vadd.f32 %v9598_v41, %v9458_v37  ;;  %v3764_v61 = vadd.f32 %v9598_v41, %v9465_v31  ;;  %v3765_v37 = vadd.f32 %v9598_v41, %v9470_v29  ;;  %v3766_v31 = vadd.f32 %v9598_v41, %v9477_v19 }
 0x344   : > { %v9578_v56 = vadd.f32 %v4337_v60, %v3756_v20  ;;  %v4352_v44 = vadd.f32 %v6469_v16, %v4126_v8  ;;  %v3767_v29 = vadd.f32 %v9598_v41, %v9480_v27  ;;  %v3768_v19 = vadd.f32 %v9598_v41, %v9485_v12 }
 0x345   : > { %v4131_v0 = vpop.f32.mrf.mxu1  ;;  %v4346_v28 = vpop.f32.mrf.mxu0  ;;  %v3769_v27 = vadd.f32 %v9598_v41, %v9490_v53  ;;  %v3770_v12 = vadd.f32 %v9598_v41, %v9496_v32  ;;  %v3771_v53 = vadd.f32 %v9598_v41, %v9501_v45  ;;  %v3772_v32 = vadd.f32 %v9598_v41, %v9505_v24 }
 0x346   : > { %v9582_v63 = vadd.f32 %v4352_v44, %v3759_v15  ;;  %v4347_v34 = vadd.f32 %v4346_v28, %v4121_v39  ;;  %v3773_v45 = vadd.f32 %v9598_v41, %v9510_v25  ;;  %v3774_v24 = vadd.f32 %v9598_v41, %v9513_v4 }
 0x347   : > { %v4133_v21 = vpop.f32.mrf.mxu1  ;;  %v6472_v43 = vpop.f32.mrf.mxu0  ;;  %v3775_v25 = vadd.f32 %v9598_v41, %v9516_v14 }
 0x348   : > { %v9584_v33 = vadd.f32 %v4347_v34, %v3758_v36 }
 0x349   : > { %v4136_v11 = vpop.f32.mrf.mxu1  ;;  %v4356_v38 = vpop.f32.mrf.mxu0 }
 0x34a   : > { %v4362_v57 = vadd.f32 %v6472_v43, %v4136_v11  ;;  %v4357_v9 = vadd.f32 %v4356_v38, %v4131_v0 }
 0x34b   : > { %v4138_v51 = vpop.f32.mrf.mxu1  ;;  %v6475_v59 = vpop.f32.mrf.mxu0 }
 0x34c   : > { %v9590_v55 = vadd.f32 %v4362_v57, %v3761_v18  ;;  %v9592_v30 = vadd.f32 %v4357_v9, %v3760_v22 }
 0x34d   : > { %v4141_v39 = vpop.f32.mrf.mxu1  ;;  %v4366_v7 = vpop.f32.mrf.mxu0 }
 0x34e   : > { %v4367_v48 = vadd.f32 %v4366_v7, %v4141_v39 }
 0x34f   : > { %v4143_v10 = vpop.f32.mrf.mxu1  ;;  %v6478_v13 = vpop.f32.mrf.mxu0 }
 0x350   : > { %v9596_v42 = vadd.f32 %v4367_v48, %v3762_v49 }
 0x351   : > { %v4146_v8 = vpop.f32.mrf.mxu1  ;;  %v4376_v46 = vpop.f32.mrf.mxu0 }
 0x352   : > { %v4372_v20 = vadd.f32 %v6475_v59, %v4146_v8 }
 0x353   : > { %v4148_v60 = vpop.f32.mrf.mxu1  ;;  %v6481_v6 = vpop.f32.mrf.mxu0 }
 0x354   : > { %v9602_v16 = vadd.f32 %v4372_v20, %v3763_v3 }
 0x355   : > { %v4151_v15 = vpop.f32.mrf.mxu1  ;;  %v4386_v44 = vpop.f32.mrf.mxu0 }
 0x356   : > { %v4377_v23 = vadd.f32 %v4376_v46, %v4151_v15 }
 0x357   : > { %v4153_v0 = vpop.f32.mrf.mxu1  ;;  %v6484_v28 = vpop.f32.mrf.mxu0 }
 0x358   : > { %v9606_v36 = vadd.f32 %v4377_v23, %v3764_v61 }
 0x359   : > { %v4156_v34 = vpop.f32.mrf.mxu1  ;;  %v4396_v21 = vpop.f32.mrf.mxu0 }
 0x35a   : > { %v4382_v43 = vadd.f32 %v6478_v13, %v4156_v34 }
 0x35b   : > { %v4158_v11 = vpop.f32.mrf.mxu1  ;;  %v6487_v38 = vpop.f32.mrf.mxu0 }
 0x35c   : > { %v9610_v22 = vadd.f32 %v4382_v43, %v3765_v37 }
 0x35d   : > { %v4161_v18 = vpop.f32.mrf.mxu1  ;;  %v4406_v57 = vpop.f32.mrf.mxu0 }
 0x35e   : > { %v4387_v9 = vadd.f32 %v4386_v44, %v4161_v18 }
 0x35f   : > { %v4163_v51 = vpop.f32.mrf.mxu1  ;;  %v6490_v59 = vpop.f32.mrf.mxu0 }
 0x360   : > { %v9614_v39 = vadd.f32 %v4387_v9, %v3766_v31 }
 0x361   : > { %v4166_v7 = vpop.f32.mrf.mxu1  ;;  %v4416_v49 = vpop.f32.mrf.mxu0 }
 0x362   : > { %v4392_v48 = vadd.f32 %v6481_v6, %v4166_v7 }
 0x363   : > { %v4168_v10 = vpop.f32.mrf.mxu1 }
 0x364   : > { %v9618_v13 = vadd.f32 %v4392_v48, %v3767_v29  ;;  %v6493_v8 = vpop.f32.mrf.mxu0 }
 0x366   : > { %v4171_v46 = vpop.f32.mrf.mxu1  ;;  %v4426_v3 = vpop.f32.mrf.mxu0 }
 0x367   : > { %v4397_v20 = vadd.f32 %v4396_v21, %v4171_v46 }
 0x368   : > { %v4173_v60 = vpop.f32.mrf.mxu1  ;;  %v4742_v15 = vpop.f32.mrf.mxu0 }
 0x369   : > { %v9622_v44 = vadd.f32 %v4397_v20, %v3768_v19 }
 0x36a   : > { %v4176_v61 = vpop.f32.mrf.mxu1  ;;  %v4744_v23 = vpop.f32.mrf.mxu0 }
 0x36b   : > { %v4402_v6 = vadd.f32 %v6484_v28, %v4176_v61 }
 0x36c   : > { %v4178_v0 = vpop.f32.mrf.mxu1  ;;  %v4747_v34 = vpop.f32.mrf.mxu0 }
 0x36d   : > { %v9626_v37 = vadd.f32 %v4402_v6, %v3769_v27 }
 0x36e   : > { %v4181_v43 = vpop.f32.mrf.mxu1  ;;  %v4749_v11 = vpop.f32.mrf.mxu0 }
 0x36f   : > { %v4407_v21 = vadd.f32 %v4406_v57, %v4181_v43 }
 0x370   : > { %v4183_v18 = vpop.f32.mrf.mxu1  ;;  %v4752_v31 = vpop.f32.mrf.mxu0 }
 0x371   : > { %v9630_v9 = vadd.f32 %v4407_v21, %v3770_v12 }
 0x372   : > { %v4186_v51 = vpop.f32.mrf.mxu1  ;;  %v4754_v7 = vpop.f32.mrf.mxu0 }
 0x373   : > { %v4412_v28 = vadd.f32 %v6487_v38, %v4186_v51 }
 0x374   : > { %v4188_v29 = vpop.f32.mrf.mxu1  ;;  %v4757_v48 = vpop.f32.mrf.mxu0 }
 0x375   : > { %v9634_v10 = vadd.f32 %v4412_v28, %v3771_v53 }
 0x376   : > { %v4191_v46 = vpop.f32.mrf.mxu1  ;;  %v4759_v19 = vpop.f32.mrf.mxu0 }
 0x377   : > { %v4417_v57 = vadd.f32 %v4416_v49, %v4191_v46 }
 0x378   : > { %v4193_v20 = vpop.f32.mrf.mxu1  ;;  %v4762_v60 = vpop.f32.mrf.mxu0 }
 0x379   : > { %v9638_v61 = vadd.f32 %v4417_v57, %v3772_v32 }
 0x37a   : > { %v4196_v23 = vpop.f32.mrf.mxu1  ;;  %v4764_v27 = vpop.f32.mrf.mxu0 }
 0x37b   : > { %v4422_v38 = vadd.f32 %v6490_v59, %v4196_v23 }
 0x37c   : > { %v4198_v6 = vpop.f32.mrf.mxu1  ;;  %v4767_v0 = vpop.f32.mrf.mxu0 }
 0x37d   : > { %v9642_v43 = vadd.f32 %v4422_v38, %v3773_v45 }
 0x37e   : > { %v4201_v11 = vpop.f32.mrf.mxu1  ;;  %v4769_v12 = vpop.f32.mrf.mxu0 }
 0x37f   : > { %v4427_v49 = vadd.f32 %v4426_v3, %v4201_v11  ;;  %v9655_v3 = vld [vmem:[%s9794_s4] ss:$0 sm:$0xff] }
 0x380   : > { %v4203_v21 = vpop.f32.mrf.mxu1  ;;  %v4772_v18 = vpop.f32.mrf.mxu0 }
 0x381   : > { %v9646_v51 = vadd.f32 %v4427_v49, %v3774_v24 }
 0x382   : > { %v4206_v7 = vpop.f32.mrf.mxu1  ;;  %v4774_v53 = vpop.f32.mrf.mxu0 }
 0x383   : > { %v4432_v59 = vadd.f32 %v6493_v8, %v4206_v7 }
 0x384   : > { %v4208_v28 = vpop.f32.mrf.mxu1  ;;  %v4777_v29 = vpop.f32.mrf.mxu0 }
 0x385   : > { %v9650_v46 = vadd.f32 %v4432_v59, %v3775_v25 }
 0x386   : > { %v4779_v19 = vpop.f32.mrf.mxu0  ;;  %v6528_v32 = vpop.f32.mrf.mxu1 }
 0x387   : > { %v4973_v57 = vadd.f32 %v6528_v32, %v4747_v34 }
 0x388   : > { %v4782_v20 = vpop.f32.mrf.mxu0  ;;  %v4967_v4 = vpop.f32.mrf.mxu1 }
 0x389   : > { %v5127_v23 = vadd.f32 %v4973_v57, %v9524_v26  ;;  %v4968_v27 = vadd.f32 %v4967_v4, %v4742_v15 }
 0x38a   : > { %v4784_v45 = vpop.f32.mrf.mxu0  ;;  %v6531_v14 = vpop.f32.mrf.mxu1 }
 0x38b   : > { %v5126_v41 = vadd.f32 %v4968_v27, %v9527_v1  ;;  %v4983_v8 = vadd.f32 %v6531_v14, %v4757_v48  ;;  %v5230_v38 = vadd.f32 %v9655_v3, %v5127_v23 }
 0x38c   : > { %v4787_v6 = vpop.f32.mrf.mxu0  ;;  %v4977_v11 = vpop.f32.mrf.mxu1 }
 0x38d   : > { %v5129_v34 = vadd.f32 %v4983_v8, %v9533_v40  ;;  %v4978_v12 = vadd.f32 %v4977_v11, %v4752_v31  ;;  %v5229_v24 = vadd.f32 %v9655_v3, %v5126_v41  ;;  %v5262_v49 = vmax.f32 %v5230_v38, 0.0 }
 0x38e   : > { %v4789_v21 = vpop.f32.mrf.mxu0  ;;  %v6534_v7 = vpop.f32.mrf.mxu1 }
 0x38f   : > { %v5128_v26 = vadd.f32 %v4978_v12, %v9536_v50  ;;  %v4993_v15 = vadd.f32 %v6534_v7, %v4767_v0  ;;  %v5261_v53 = vmax.f32 %v5229_v24, 0.0  ;;  %5360 = vst [vmem:[#allocation4 + $0x8] sm:$0xff] %v5262_v49  ;;  %v5232_v1 = vadd.f32 %v9655_v3, %v5129_v34 }
 0x390   : > { %v4792_v48 = vpop.f32.mrf.mxu0  ;;  %v4987_v25 = vpop.f32.mrf.mxu1 }
 0x391   : > { %v5131_v59 = vadd.f32 %v4993_v15, %v9542_v62  ;;  %v4988_v28 = vadd.f32 %v4987_v25, %v4762_v60  ;;  %5293 = vxpose.xlu0.b32.start [1/16] (narrow) %v5261_v53, 8  ;;  %5359 = vst [vmem:[#allocation4] sm:$0xff] %v5261_v53  ;;  %v5231_v40 = vadd.f32 %v9655_v3, %v5128_v26  ;;  %v5264_v31 = vmax.f32 %v5232_v1, 0.0 }
 0x392   : > { %v4794_v19 = vpop.f32.mrf.mxu0  ;;  %v6537_v32 = vpop.f32.mrf.mxu1 }
 0x393   : > { %v5130_v57 = vadd.f32 %v4988_v28, %v9546_v5  ;;  %v5003_v50 = vadd.f32 %v6537_v32, %v4777_v29  ;;  %v5263_v0 = vmax.f32 %v5231_v40, 0.0  ;;  %5362 = vst [vmem:[#allocation4 + $0x18] sm:$0xff] %v5264_v31  ;;  %v9668_v4 = vadd.f32 %v9655_v3, %v5131_v59 }
 0x394   : > { %v4797_v23 = vpop.f32.mrf.mxu0  ;;  %v4997_v27 = vpop.f32.mrf.mxu1 }
 0x395   : > { %v5133_v62 = vadd.f32 %v5003_v50, %v9550_v52  ;;  %v4998_v60 = vadd.f32 %v4997_v27, %v4772_v18  ;;  %5294 = vxpose.xlu0.b32.cont [2/16] (narrow) %v5262_v49, 8  ;;  %5361 = vst [vmem:[#allocation4 + $0x10] sm:$0xff] %v5263_v0  ;;  %v5233_v45 = vadd.f32 %v9655_v3, %v5130_v57  ;;  %v5266_v14 = vmax.f32 %v9668_v4, 0.0 }
 0x396   : > { %v4799_v41 = vpop.f32.mrf.mxu0  ;;  %v6540_v8 = vpop.f32.mrf.mxu1 }
 0x397   : > { %v5132_v5 = vadd.f32 %v4998_v60, %v9554_v54  ;;  %v5013_v29 = vadd.f32 %v6540_v8, %v4787_v6  ;;  %v5265_v38 = vmax.f32 %v5233_v45, 0.0  ;;  %5364 = vst [vmem:[#allocation4 + $0x28] sm:$0xff] %v5266_v14  ;;  %v9675_v11 = vadd.f32 %v9655_v3, %v5133_v62 }
 0x398   : > { %v4802_v34 = vpop.f32.mrf.mxu0  ;;  %v5007_v12 = vpop.f32.mrf.mxu1 }
 0x399   : > { %v5135_v52 = vadd.f32 %v5013_v29, %v9558_v17  ;;  %v5008_v18 = vadd.f32 %v5007_v12, %v4782_v20  ;;  %5295 = vxpose.xlu0.b32.cont [3/16] (narrow) %v5263_v0, 8  ;;  %5363 = vst [vmem:[#allocation4 + $0x20] sm:$0xff] %v5265_v38  ;;  %v5235_v24 = vadd.f32 %v9655_v3, %v5132_v5  ;;  %v5268_v49 = vmax.f32 %v9675_v11, 0.0 }
 0x39a   : > { %v4804_v21 = vpop.f32.mrf.mxu0  ;;  %v6543_v7 = vpop.f32.mrf.mxu1 }
 0x39b   : > { %v5134_v54 = vadd.f32 %v5008_v18, %v9562_v58  ;;  %v5023_v6 = vadd.f32 %v6543_v7, %v4797_v23  ;;  %v5267_v26 = vmax.f32 %v5235_v24, 0.0  ;;  %5366 = vst [vmem:[#allocation4 + $0x38] sm:$0xff] %v5268_v49  ;;  %v9684_v15 = vadd.f32 %v9655_v3, %v5135_v52 }
 0x39c   : > { %v4807_v17 = vpop.f32.mrf.mxu0  ;;  %v5017_v20 = vpop.f32.mrf.mxu1 }
 0x39d   : > { %v5137_v53 = vadd.f32 %v5023_v6, %v9566_v47  ;;  %v5018_v1 = vadd.f32 %v5017_v20, %v4792_v48  ;;  %5296 = vxpose.xlu0.b32.cont [4/16] (narrow) %v5264_v31, 8  ;;  %5365 = vst [vmem:[#allocation4 + $0x30] sm:$0xff] %v5267_v26  ;;  %v9688_v25 = vadd.f32 %v9655_v3, %v5134_v54  ;;  %v5270_v58 = vmax.f32 %v9684_v15, 0.0 }
 0x39e   : > { %v4809_v59 = vpop.f32.mrf.mxu0  ;;  %v6546_v28 = vpop.f32.mrf.mxu1 }
 0x39f   : > { %v5136_v40 = vadd.f32 %v5018_v1, %v9570_v35  ;;  %v5033_v19 = vadd.f32 %v6546_v28, %v4807_v17  ;;  %v5269_v32 = vmax.f32 %v9688_v25, 0.0  ;;  %5368 = vst [vmem:[#allocation4 + $0x48] sm:$0xff] %v5270_v58  ;;  %v9696_v47 = vadd.f32 %v9655_v3, %v5137_v53 }
 0x3a0   : > { %v4812_v48 = vpop.f32.mrf.mxu0  ;;  %v5027_v31 = vpop.f32.mrf.mxu1 }
 0x3a1   : > { %v5139_v57 = vadd.f32 %v5033_v19, %v9574_v2  ;;  %v5028_v50 = vadd.f32 %v5027_v31, %v4802_v34  ;;  %5297 = vxpose.xlu0.b32.cont [5/16] (narrow) %v5265_v38, 8  ;;  %5367 = vst [vmem:[#allocation4 + $0x40] sm:$0xff] %v5269_v32  ;;  %v9700_v0 = vadd.f32 %v9655_v3, %v5136_v40  ;;  %v5272_v35 = vmax.f32 %v9696_v47, 0.0 }
 0x3a2   : > { %v4814_v4 = vpop.f32.mrf.mxu0  ;;  %v6549_v23 = vpop.f32.mrf.mxu1 }
 0x3a3   : > { %v5138_v27 = vadd.f32 %v5028_v50, %v9578_v56  ;;  %v5271_v62 = vmax.f32 %v9700_v0, 0.0  ;;  %5370 = vst [vmem:[#allocation4 + $0x58] sm:$0xff] %v5272_v35  ;;  %v9708_v60 = vadd.f32 %v9655_v3, %v5139_v57 }
 0x3a4   : > { %v4817_v2 = vpop.f32.mrf.mxu0  ;;  %v5037_v45 = vpop.f32.mrf.mxu1 }
 0x3a5   : > { %v5043_v41 = vadd.f32 %v6549_v23, %v4817_v2  ;;  %v5038_v8 = vadd.f32 %v5037_v45, %v4812_v48  ;;  %5298 = vxpose.xlu0.b32.cont [6/16] (narrow) %v5266_v14, 8  ;;  %5369 = vst [vmem:[#allocation4 + $0x50] sm:$0xff] %v5271_v62  ;;  %v9711_v5 = vadd.f32 %v9655_v3, %v5138_v27  ;;  %v5274_v29 = vmax.f32 %v9708_v60, 0.0 }
 0x3a6   : > { %v4819_v56 = vpop.f32.mrf.mxu0  ;;  %v6552_v38 = vpop.f32.mrf.mxu1 }
 0x3a7   : > { %v5141_v34 = vadd.f32 %v5043_v41, %v9582_v63  ;;  %v5140_v12 = vadd.f32 %v5038_v8, %v9584_v33  ;;  %v5273_v52 = vmax.f32 %v9711_v5, 0.0  ;;  %5372 = vst [vmem:[#allocation4 + $0x68] sm:$0xff] %v5274_v29 }
 0x3a8   : > { %v4822_v18 = vpop.f32.mrf.mxu0  ;;  %v5047_v24 = vpop.f32.mrf.mxu1 }
 0x3a9   : > { %v5048_v14 = vadd.f32 %v5047_v24, %v4822_v18  ;;  %5299 = vxpose.xlu0.b32.cont [7/16] (narrow) %v5267_v26, 8  ;;  %5371 = vst [vmem:[#allocation4 + $0x60] sm:$0xff] %v5273_v52  ;;  %v9722_v21 = vadd.f32 %v9655_v3, %v5140_v12  ;;  %v9725_v7 = vadd.f32 %v9655_v3, %v5141_v34 }
 0x3aa   : > { %v4824_v63 = vpop.f32.mrf.mxu0  ;;  %v6555_v17 = vpop.f32.mrf.mxu1 }
 0x3ab   : > { %v5142_v33 = vadd.f32 %v5048_v14, %v9592_v30  ;;  %v5275_v54 = vmax.f32 %v9722_v21, 0.0  ;;  %v5276_v6 = vmax.f32 %v9725_v7, 0.0 }
 0x3ac   : > { %v4827_v20 = vpop.f32.mrf.mxu0  ;;  %v5057_v59 = vpop.f32.mrf.mxu1 }
 0x3ad   : > { %v5053_v53 = vadd.f32 %v6552_v38, %v4827_v20  ;;  %5300 = vxpose.xlu0.b32.cont [8/16] (narrow) %v5268_v49, 8  ;;  %v5245_v26 = vadd.f32 %v9655_v3, %v5142_v33  ;;  %5373 = vst [vmem:[#allocation4 + $0x70] sm:$0xff] %v5275_v54  ;;  %5374 = vst [vmem:[#allocation4 + $0x78] sm:$0xff] %v5276_v6 }
 0x3ae   : > { %v4829_v1 = vpop.f32.mrf.mxu0  ;;  %v6558_v31 = vpop.f32.mrf.mxu1 }
 0x3af   : > { %v5143_v30 = vadd.f32 %v5053_v53, %v9590_v55  ;;  %v5277_v25 = vmax.f32 %v5245_v26, 0.0  ;;  %v5393_v1 = vld [vmem:[#allocation4 + $0x10] ss:$2 sm:$0xff] }
 0x3b0   : > { %v4832_v28 = vpop.f32.mrf.mxu0  ;;  %v5067_v23 = vpop.f32.mrf.mxu1 }
 0x3b1   : > { %v5058_v40 = vadd.f32 %v5057_v59, %v4832_v28  ;;  %5325 = vxpose.xlu1.b32.start [1/16] (narrow) %v5277_v25, 8  ;;  %5375 = vst [vmem:[#allocation4 + $0x80] sm:$0xff] %v5277_v25  ;;  %5301 = vxpose.xlu0.b32.cont [9/16] (narrow) %v5269_v32, 8  ;;  %v5246_v11 = vadd.f32 %v9655_v3, %v5143_v30  ;;  %v5425_v30 = vld [vmem:[#allocation4 + $0x11] ss:$2 sm:$0xff] }
 0x3b2   : > { %v4834_v49 = vpop.f32.mrf.mxu0  ;;  %v6561_v15 = vpop.f32.mrf.mxu1  ;;  %v5423_v59 = vld [vmem:[#allocation4 + $0x1] ss:$2 sm:$0xff] }
 0x3b3   : > { %v5144_v19 = vadd.f32 %v5058_v40, %v9596_v42  ;;  %v5278_v48 = vmax.f32 %v5246_v11, 0.0 }
 0x3b4   : > { %v4837_v57 = vpop.f32.mrf.mxu0  ;;  %v5077_v12 = vpop.f32.mrf.mxu1 }
 0x3b5   : > { %v5063_v50 = vadd.f32 %v6555_v17, %v4837_v57  ;;  %5376 = vst [vmem:[#allocation4 + $0x88] sm:$0xff] %v5278_v48  ;;  %5326 = vxpose.xlu1.b32.cont [2/16] (narrow) %v5278_v48, 8  ;;  %5302 = vxpose.xlu0.b32.cont [10/16] (narrow) %v5270_v58, 8  ;;  %v5247_v55 = vadd.f32 %v9655_v3, %v5144_v19  ;;  %v5397_v19 = vld [vmem:[#allocation4 + $0x30] ss:$2 sm:$0xff] }
 0x3b6   : > { %v4839_v0 = vpop.f32.mrf.mxu0  ;;  %v6564_v63 = vpop.f32.mrf.mxu1  ;;  %v5429_v48 = vld [vmem:[#allocation4 + $0x31] ss:$2 sm:$0xff] }
 0x3b7   : > { %v5145_v4 = vadd.f32 %v5063_v50, %v9602_v16  ;;  %v5279_v32 = vmax.f32 %v5247_v55, 0.0  ;;  %v5395_v50 = vld [vmem:[#allocation4 + $0x20] ss:$2 sm:$0xff]  ;;  %v5427_v55 = vld [vmem:[#allocation4 + $0x21] ss:$2 sm:$0xff] }
 0x3b8   : > { %v4842_v27 = vpop.f32.mrf.mxu0  ;;  %v5087_v53 = vpop.f32.mrf.mxu1 }
 0x3b9   : > { %v5068_v2 = vadd.f32 %v5067_v23, %v4842_v27  ;;  %5377 = vst [vmem:[#allocation4 + $0x90] sm:$0xff] %v5279_v32  ;;  %5327 = vxpose.xlu1.b32.cont [3/16] (narrow) %v5279_v32, 8  ;;  %5303 = vxpose.xlu0.b32.cont [11/16] (narrow) %v5271_v62, 8  ;;  %v5248_v42 = vadd.f32 %v9655_v3, %v5145_v4 }
 0x3ba   : > { %v4844_v45 = vpop.f32.mrf.mxu0  ;;  %v6567_v11 = vpop.f32.mrf.mxu1  ;;  %v5457_v32 = vmax.f32 %v5397_v19, %v5429_v48 }
 0x3bb   : > { %v5146_v41 = vadd.f32 %v5068_v2, %v9606_v36  ;;  %v5280_v8 = vmax.f32 %v5248_v42, 0.0  ;;  %v5401_v2 = vld [vmem:[#allocation4 + $0x50] ss:$2 sm:$0xff]  ;;  %v5433_v42 = vld [vmem:[#allocation4 + $0x51] ss:$2 sm:$0xff] }
 0x3bc   : > { %v4847_v58 = vpop.f32.mrf.mxu0  ;;  %v5097_v23 = vpop.f32.mrf.mxu1 }
 0x3bd   : > { %v5073_v56 = vadd.f32 %v6558_v31, %v4847_v58  ;;  %5378 = vst [vmem:[#allocation4 + $0x98] sm:$0xff] %v5280_v8  ;;  %5328 = vxpose.xlu1.b32.cont [4/16] (narrow) %v5280_v8, 8  ;;  %5304 = vxpose.xlu0.b32.cont [12/16] (narrow) %v5272_v35, 8  ;;  %v5249_v16 = vadd.f32 %v9655_v3, %v5146_v41  ;;  %v5399_v8 = vld [vmem:[#allocation4 + $0x40] ss:$2 sm:$0xff] }
 0x3be   : > { %v4849_v38 = vpop.f32.mrf.mxu0 }
 0x3bf   : > { %v5147_v34 = vadd.f32 %v5073_v56, %v9610_v22  ;;  %v5281_v62 = vmax.f32 %v5249_v16, 0.0  ;;  %v5459_v16 = vmax.f32 %v5401_v2, %v5433_v42  ;;  %v6570_v38 = vpop.f32.mrf.mxu1 }
 0x3c0   : > { %v4852_v18 = vpop.f32.mrf.mxu0 }
 0x3c1   : > { %v5078_v24 = vadd.f32 %v5077_v12, %v4852_v18  ;;  %5379 = vst [vmem:[#allocation4 + $0xa0] sm:$0xff] %v5281_v62  ;;  %5329 = vxpose.xlu1.b32.cont [5/16] (narrow) %v5281_v62, 8  ;;  %5305 = vxpose.xlu0.b32.cont [13/16] (narrow) %v5273_v52, 8  ;;  %v5250_v36 = vadd.f32 %v9655_v3, %v5147_v34  ;;  %v5405_v62 = vld [vmem:[#allocation4 + $0x70] ss:$2 sm:$0xff] }
 0x3c2   : > { %v4854_v14 = vpop.f32.mrf.mxu0  ;;  %v5437_v12 = vld [vmem:[#allocation4 + $0x71] ss:$2 sm:$0xff] }
 0x3c3   : > { %v5148_v47 = vadd.f32 %v5078_v24, %v9614_v39  ;;  %v5282_v35 = vmax.f32 %v5250_v36, 0.0 }
 0x3c4   : > { %v4857_v33 = vpop.f32.mrf.mxu0 }
 0x3c5   : > { %v5083_v17 = vadd.f32 %v6561_v15, %v4857_v33  ;;  %5380 = vst [vmem:[#allocation4 + $0xa8] sm:$0xff] %v5282_v35  ;;  %5330 = vxpose.xlu1.b32.cont [6/16] (narrow) %v5282_v35, 8  ;;  %5306 = vxpose.xlu0.b32.cont [14/16] (narrow) %v5274_v29, 8  ;;  %v5251_v22 = vadd.f32 %v9655_v3, %v5148_v47  ;;  %v5391_v29 = vld [vmem:[#allocation4] ss:$2 sm:$0xff] }
 0x3c6   : > { %v4859_v20 = vpop.f32.mrf.mxu0  ;;  %v5431_v15 = vld [vmem:[#allocation4 + $0x41] ss:$2 sm:$0xff]  ;;  %v5403_v47 = vld [vmem:[#allocation4 + $0x60] ss:$2 sm:$0xff] }
 0x3c7   : > { %v5149_v5 = vadd.f32 %v5083_v17, %v9618_v13  ;;  %v5283_v52 = vmax.f32 %v5251_v22, 0.0  ;;  %v5455_v13 = vmax.f32 %v5393_v1, %v5425_v30  ;;  %v5458_v36 = vmax.f32 %v5399_v8, %v5431_v15  ;;  %v5435_v35 = vld [vmem:[#allocation4 + $0x61] ss:$2 sm:$0xff]  ;;  %v5107_v22 = vpop.f32.mrf.mxu1 }
 0x3c8   : > { %v4862_v26 = vpop.f32.mrf.mxu0  ;;  %v5461_v17 = vmax.f32 %v5405_v62, %v5437_v12  ;;  %v5460_v1 = vmax.f32 %v5403_v47, %v5435_v35 }
 0x3c9   : > { %v5088_v39 = vadd.f32 %v5087_v53, %v4862_v26  ;;  %5381 = vst [vmem:[#allocation4 + $0xb0] sm:$0xff] %v5283_v52  ;;  %5331 = vxpose.xlu1.b32.cont [7/16] (narrow) %v5283_v52, 8  ;;  %5307 = vxpose.xlu0.b32.cont [15/16] (narrow) %v5275_v54, 8  ;;  %v5252_v25 = vadd.f32 %v9655_v3, %v5149_v5  ;;  %v5409_v5 = vld [vmem:[#allocation4 + $0x90] ss:$2 sm:$0xff] }
 0x3ca   : > { %v4864_v60 = vpop.f32.mrf.mxu0  ;;  %v5454_v54 = vmax.f32 %v5391_v29, %v5423_v59  ;;  %v5472_v33 = vmax.f32 %v5458_v36, %v5459_v16  ;;  %v5441_v52 = vld [vmem:[#allocation4 + $0x91] ss:$2 sm:$0xff]  ;;  %v5473_v59 = vmax.f32 %v5460_v1, %v5461_v17 }
 0x3cb   : > { %v5150_v28 = vadd.f32 %v5088_v39, %v9622_v44  ;;  %v5284_v40 = vmax.f32 %v5252_v25, 0.0  ;;  %v6573_v39 = vpop.f32.mrf.mxu1  ;;  %v5407_v25 = vld [vmem:[#allocation4 + $0x80] ss:$2 sm:$0xff]  ;;  %v5439_v60 = vld [vmem:[#allocation4 + $0x81] ss:$2 sm:$0xff] }
 0x3cc   : > { %v4867_v49 = vpop.f32.mrf.mxu0  ;;  %v5470_v4 = vmax.f32 %v5454_v54, %v5455_v13  ;;  %v5462_v48 = vmax.f32 %v5407_v25, %v5439_v60  ;;  %v5411_v54 = vld [vmem:[#allocation4 + $0xa0] ss:$2 sm:$0xff] }
 0x3cd   : > { %v5093_v31 = vadd.f32 %v6564_v63, %v4867_v49  ;;  %5382 = vst [vmem:[#allocation4 + $0xb8] sm:$0xff] %v5284_v40  ;;  %5332 = vxpose.xlu1.b32.cont [8/16] (narrow) %v5284_v40, 8  ;;  %5308 = vxpose.xlu0.b32.end [16/16] (narrow) %v5276_v6, 8  ;;  %v5253_v21 = vadd.f32 %v9655_v3, %v5150_v28 }
 0x3ce   : > { %v4869_v57 = vpop.f32.mrf.mxu0  ;;  %v5456_v6 = vmax.f32 %v5395_v50, %v5427_v55  ;;  %v5463_v28 = vmax.f32 %v5409_v5, %v5441_v52 }
 0x3cf   : > { %v5151_v44 = vadd.f32 %v5093_v31, %v9626_v37  ;;  %v5285_v0 = vmax.f32 %v5253_v21, 0.0  ;;  %v5117_v21 = vpop.f32.mrf.mxu1  ;;  %v5443_v57 = vld [vmem:[#allocation4 + $0xa1] ss:$2 sm:$0xff] }
 0x3d0   : > { %v4872_v27 = vpop.f32.mrf.mxu0  ;;  %v5471_v56 = vmax.f32 %v5456_v6, %v5457_v32  ;;  %v5474_v55 = vmax.f32 %v5462_v48, %v5463_v28 }
 0x3d1   : > { %v5098_v45 = vadd.f32 %v5097_v23, %v4872_v27  ;;  %5383 = vst [vmem:[#allocation4 + $0xc0] sm:$0xff] %v5285_v0  ;;  %5333 = vxpose.xlu1.b32.cont [9/16] (narrow) %v5285_v0, 8  ;;  %5478 = vxpose.xlu0.b32.start [1/8] (short) (narrow) %v5470_v4, 8  ;;  %v5254_v7 = vadd.f32 %v9655_v3, %v5151_v44 }
 0x3d2   : > { %v4874_v41 = vpop.f32.mrf.mxu0  ;;  %v5464_v23 = vmax.f32 %v5411_v54, %v5443_v57 }
 0x3d3   : > { %v5152_v58 = vadd.f32 %v5098_v45, %v9630_v9  ;;  %v5286_v37 = vmax.f32 %v5254_v7, 0.0 }
 0x3d4   : > { %v4877_v34 = vpop.f32.mrf.mxu0  ;;  %v5413_v13 = vld [vmem:[#allocation4 + $0xb0] ss:$2 sm:$0xff] }
 0x3d5   : > { %v5103_v18 = vadd.f32 %v6567_v11, %v4877_v34  ;;  %5384 = vst [vmem:[#allocation4 + $0xc8] sm:$0xff] %v5286_v37  ;;  %5334 = vxpose.xlu1.b32.cont [10/16] (narrow) %v5286_v37, 8  ;;  %5479 = vxpose.xlu0.b32.cont [2/8] (short) (narrow) %v5471_v56, 8  ;;  %v5255_v24 = vadd.f32 %v9655_v3, %v5152_v58  ;;  %v5445_v11 = vld [vmem:[#allocation4 + $0xb1] ss:$2 sm:$0xff] }
 0x3d6   : > { %v4879_v14 = vpop.f32.mrf.mxu0  ;;  %v5465_v44 = vmax.f32 %v5413_v13, %v5445_v11 }
 0x3d7   : > { %v5153_v63 = vadd.f32 %v5103_v18, %v9634_v10  ;;  %v5287_v9 = vmax.f32 %v5255_v24, 0.0 }
 0x3d8   : > { %v4882_v20 = vpop.f32.mrf.mxu0  ;;  %v5475_v6 = vmax.f32 %v5464_v23, %v5465_v44 }
 0x3d9   : > { %v5108_v53 = vadd.f32 %v5107_v22, %v4882_v20  ;;  %5385 = vst [vmem:[#allocation4 + $0xd0] sm:$0xff] %v5287_v9  ;;  %5335 = vxpose.xlu1.b32.cont [11/16] (narrow) %v5287_v9, 8  ;;  %5480 = vxpose.xlu0.b32.cont [3/8] (short) (narrow) %v5472_v33, 8  ;;  %v5256_v26 = vadd.f32 %v9655_v3, %v5153_v63 }
 0x3da   : > { %v4884_v30 = vpop.f32.mrf.mxu0 }
 0x3db   : > { %v5154_v10 = vadd.f32 %v5108_v53, %v9638_v61  ;;  %v5288_v29 = vmax.f32 %v5256_v26, 0.0 }
 0x3dc   : > { %v4887_v40 = vpop.f32.mrf.mxu0  ;;  %v5415_v27 = vld [vmem:[#allocation4 + $0xc0] ss:$2 sm:$0xff]  ;;  %v5447_v2 = vld [vmem:[#allocation4 + $0xc1] ss:$2 sm:$0xff] }
 0x3dd   : > { %v5113_v49 = vadd.f32 %v6570_v38, %v4887_v40  ;;  %5386 = vst [vmem:[#allocation4 + $0xd8] sm:$0xff] %v5288_v29  ;;  %5336 = vxpose.xlu1.b32.cont [12/16] (narrow) %v5288_v29, 8  ;;  %5481 = vxpose.xlu0.b32.cont [4/8] (short) (narrow) %v5473_v59, 8  ;;  %v5257_v19 = vadd.f32 %v9655_v3, %v5154_v10 }
 0x3de   : > { %v4889_v31 = vpop.f32.mrf.mxu0  ;;  %v5466_v15 = vmax.f32 %v5415_v27, %v5447_v2 }
 0x3df   : > { %v5155_v50 = vadd.f32 %v5113_v49, %v9642_v43  ;;  %v5289_v61 = vmax.f32 %v5257_v19, 0.0 }
 0x3e0   : > { %v4892_v0 = vpop.f32.mrf.mxu0 }
 0x3e1   : > { %v5118_v4 = vadd.f32 %v5117_v21, %v4892_v0  ;;  %5387 = vst [vmem:[#allocation4 + $0xe0] sm:$0xff] %v5289_v61  ;;  %5337 = vxpose.xlu1.b32.cont [13/16] (narrow) %v5289_v61, 8  ;;  %5482 = vxpose.xlu0.b32.cont [5/8] (short) (narrow) %v5474_v55, 8  ;;  %v5258_v32 = vadd.f32 %v9655_v3, %v5155_v50 }
 0x3e2   : > { %v4894_v42 = vpop.f32.mrf.mxu0 }
 0x3e3   : > { %v5156_v45 = vadd.f32 %v5118_v4, %v9646_v51  ;;  %v5290_v7 = vmax.f32 %v5258_v32, 0.0 }
 0x3e4   : > { %v4897_v41 = vpop.f32.mrf.mxu0  ;;  %v5417_v43 = vld [vmem:[#allocation4 + $0xd0] ss:$2 sm:$0xff]  ;;  %v5449_v8 = vld [vmem:[#allocation4 + $0xd1] ss:$2 sm:$0xff] }
 0x3e5   : > { %v5123_v58 = vadd.f32 %v6573_v39, %v4897_v41  ;;  %5388 = vst [vmem:[#allocation4 + $0xe8] sm:$0xff] %v5290_v7  ;;  %5338 = vxpose.xlu1.b32.cont [14/16] (narrow) %v5290_v7, 8  ;;  %5483 = vxpose.xlu0.b32.cont [6/8] (short) (narrow) %v5475_v6, 8  ;;  %v5259_v37 = vadd.f32 %v9655_v3, %v5156_v45 }
 0x3e6   : > { %v5467_v56 = vmax.f32 %v5417_v43, %v5449_v8  ;;  %v4899_v16 = vpop.f32.mrf.mxu0 }
 0x3e7   : > { %v5157_v38 = vadd.f32 %v5123_v58, %v9650_v46  ;;  %v5291_v34 = vmax.f32 %v5259_v37, 0.0 }
 0x3e8   : > { %v5476_v62 = vmax.f32 %v5466_v15, %v5467_v56 }
 0x3e9   : > { %5389 = vst [vmem:[#allocation4 + $0xf0] sm:$0xff] %v5291_v34  ;;  %5339 = vxpose.xlu1.b32.cont [15/16] (narrow) %v5291_v34, 8  ;;  %v5260_v51 = vadd.f32 %v9655_v3, %v5157_v38 }
 0x3ea   : > { %5484 = vxpose.xlu0.b32.cont [7/8] (short) (narrow) %v5476_v62, 8 }
 0x3eb   : > { %v5292_v12 = vmax.f32 %v5260_v51, 0.0 }
 0x3ec   : > { %v5419_v18 = vld [vmem:[#allocation4 + $0xe0] ss:$2 sm:$0xff]  ;;  %v5451_v24 = vld [vmem:[#allocation4 + $0xe1] ss:$2 sm:$0xff] }
 0x3ed   : > { %5390 = vst [vmem:[#allocation4 + $0xf8] sm:$0xff] %v5292_v12  ;;  %5340 = vxpose.xlu1.b32.end [16/16] (narrow) %v5292_v12, 8  ;;  %v5468_v47 = vmax.f32 %v5419_v18, %v5451_v24 }
 0x3f4   : > { %v5421_v36 = vld [vmem:[#allocation4 + $0xf0] ss:$2 sm:$0xff]  ;;  %v5453_v14 = vld [vmem:[#allocation4 + $0xf1] ss:$2 sm:$0xff] }
 0x3f5   : > { %v5469_v35 = vmax.f32 %v5421_v36, %v5453_v14 }
 0x3f7   : > { %v5477_v63 = vmax.f32 %v5468_v47, %v5469_v35 }
 0x3f9   : > { %5485 = vxpose.xlu0.b32.end [8/8] (short) (narrow) %v5477_v63, 8 }
 0x40d   : > { %v5309_v46 = vpop.trf.xlu0 }
 0x40e   : > { %5357 = vst [vmem:[%s258_s20] sm:$0xff] %v5309_v46 }
 0x42d   : > { %v5341_v3 = vpop.trf.xlu1 }
 0x42e   : > { %5358 = vst [vmem:[%s258_s20 + $0x8] sm:$0xff] %v5341_v3 }
 0x459   : > { %v5494_v9 = vpop.trf.xlu0 }
 0x45a   : > { %5511 = vst.msk [vmem:[%s262_s26] sm:$0xff] %vm5510_vm1, %v5494_v9 }
 0x45b PF: > { %s17_s21 = sadd.s32 1, %s6761_s21  }
 0x45c   : > { %p14_p4 = scmp.ge.s32.totalorder %s17_s21, 4  }
 0x45e   :  { %16 = sbr.rel (!%p14_p4) target bundleno = 1 (0x1), region = 118 }

</bundles_post_ra>
